<compile_context>
chip_gen: v7x
topology: tpu7x:2x2x1
jax: 0.10.0
libtpu: 0.0.40
codegen_flags: <defaults>
</compile_context>

<pallas_src>
import functools
import math

import jax
import jax.numpy as jnp
from jax.experimental import pallas as pl
from jax.experimental.pallas import tpu as pltpu

PATCH = 16      # Segmenter2.patch_size
LN_EPS = 1e-5   # torch.nn.LayerNorm default


# --------------------------------------------------------------------------
# Small helpers (used inside kernels)
# --------------------------------------------------------------------------

def _row_tile(m, candidates=(1024, 512, 256, 128, 64, 32, 16, 8)):
    """Largest row tile dividing m (2nd-minor block dim must be %8 or full)."""
    for t in candidates:
        if m % t == 0:
            return t
    return m  # fall back to a single full block


def _ln(x, g, b, eps):
    mean = jnp.mean(x, axis=-1, keepdims=True)
    xc = x - mean
    var = jnp.mean(xc * xc, axis=-1, keepdims=True)
    return xc * jax.lax.rsqrt(var + eps) * g + b


def _gelu_tanh(x):
    # TODO(synk): torch nn.GELU defaults to exact erf; tanh approximation keeps the
    # transcendental on the EUP and lowers robustly in Mosaic (small numeric drift).
    c = math.sqrt(2.0 / math.pi)
    return 0.5 * x * (1.0 + jnp.tanh(c * (x + 0.044715 * x * x * x)))


# --------------------------------------------------------------------------
# Pallas kernels
# --------------------------------------------------------------------------

def _patch_embed_kernel(x_ref, w_ref, b_ref, pos_ref, o_ref):
    # patch-embed matmul fused with bias + positional embedding add
    x = x_ref[0].astype(jnp.bfloat16)
    w = w_ref[...].astype(jnp.bfloat16)
    y = jnp.dot(x, w, preferred_element_type=jnp.float32)
    o_ref[0] = (y + b_ref[...] + pos_ref[...]).astype(o_ref.dtype)


def patch_embed(patches, w, b, pos):
    """patches:(B,N,Cp) @ w:(Cp,D) + b + pos:(N,D) -> (B,N,D)."""
    B, N, Cp = patches.shape
    D = w.shape[1]
    ce = pl.CostEstimate(flops=2 * B * N * Cp * D, transcendentals=0,
                         bytes_accessed=B * N * Cp * 4 + Cp * D * 2 + B * N * D * 4)
    return pl.pallas_call(
        _patch_embed_kernel,
        grid=(B,),
        in_specs=[pl.BlockSpec((1, N, Cp), lambda i: (i, 0, 0)),
                  pl.BlockSpec((Cp, D), lambda i: (0, 0)),
                  pl.BlockSpec((1, D), lambda i: (0, 0)),
                  pl.BlockSpec((N, D), lambda i: (0, 0))],
        out_specs=pl.BlockSpec((1, N, D), lambda i: (i, 0, 0)),
        out_shape=jax.ShapeDtypeStruct((B, N, D), jnp.float32),
        compiler_params=pltpu.CompilerParams(dimension_semantics=("parallel",)),
        cost_estimate=ce,
    )(patches, w, b.reshape(1, D), pos)


def _ln_qkv_kernel(x_ref, g_ref, bg_ref, wq_ref, wk_ref, wv_ref,
                   bq_ref, bk_ref, bv_ref, q_ref, k_ref, v_ref, *, eps):
    # fused LayerNorm -> q/k/v projections (bf16 MXU operands, f32 accumulate)
    h = _ln(x_ref[...].astype(jnp.float32), g_ref[...], bg_ref[...], eps)
    hb = h.astype(jnp.bfloat16)
    q_ref[...] = (jnp.dot(hb, wq_ref[...].astype(jnp.bfloat16),
                          preferred_element_type=jnp.float32) + bq_ref[...]).astype(q_ref.dtype)
    k_ref[...] = (jnp.dot(hb, wk_ref[...].astype(jnp.bfloat16),
                          preferred_element_type=jnp.float32) + bk_ref[...]).astype(k_ref.dtype)
    v_ref[...] = (jnp.dot(hb, wv_ref[...].astype(jnp.bfloat16),
                          preferred_element_type=jnp.float32) + bv_ref[...]).astype(v_ref.dtype)


def ln_qkv(x, g, bg, wq, wk, wv, bq, bk, bv):
    """q,k,v = LN(x) @ W{q,k,v} + b{q,k,v};  x:(M,D) -> 3 x (M,D)."""
    M, D = x.shape
    tm = _row_tile(M)
    row = lambda i: (i, 0)
    rep = lambda i: (0, 0)
    ce = pl.CostEstimate(flops=6 * M * D * D, transcendentals=0,
                         bytes_accessed=M * D * 4 + 3 * D * D * 2 + 3 * M * D * 4)
    sds = jax.ShapeDtypeStruct((M, D), jnp.float32)
    return pl.pallas_call(
        functools.partial(_ln_qkv_kernel, eps=LN_EPS),
        grid=(M // tm,),
        in_specs=[pl.BlockSpec((tm, D), row),
                  pl.BlockSpec((1, D), rep), pl.BlockSpec((1, D), rep),
                  pl.BlockSpec((D, D), rep), pl.BlockSpec((D, D), rep), pl.BlockSpec((D, D), rep),
                  pl.BlockSpec((1, D), rep), pl.BlockSpec((1, D), rep), pl.BlockSpec((1, D), rep)],
        out_specs=[pl.BlockSpec((tm, D), row), pl.BlockSpec((tm, D), row), pl.BlockSpec((tm, D), row)],
        out_shape=(sds, sds, sds),
        compiler_params=pltpu.CompilerParams(dimension_semantics=("parallel",)),
        cost_estimate=ce,
    )(x, g.reshape(1, D), bg.reshape(1, D), wq, wk, wv,
      bq.reshape(1, D), bk.reshape(1, D), bv.reshape(1, D))


def _attn_kernel(q_ref, k_ref, v_ref, o_ref, *, n_heads):
    # per-batch multi-head attention; heads handled by a static in-kernel loop so
    # the HBM-level layout stays (B, T, D) (no XLA head transposes).
    q_all = q_ref[0].astype(jnp.float32)
    k_all = k_ref[0]
    v_all = v_ref[0]
    T, D = q_all.shape
    dh = D // n_heads
    scale = dh ** -0.5
    outs = []
    # TODO(synk): for long sequences switch to an online-softmax (flash) loop tiled
    # over KV instead of materializing the full (T, T) score matrix per head.
    for h in range(n_heads):
        sl = slice(h * dh, (h + 1) * dh)
        qh = (q_all[:, sl] * scale).astype(jnp.bfloat16)   # fold 1/sqrt(dh) into q
        kh = k_all[:, sl].astype(jnp.bfloat16)
        vh = v_all[:, sl].astype(jnp.bfloat16)
        s = jax.lax.dot_general(qh, kh, (((1,), (1,)), ((), ())),
                                preferred_element_type=jnp.float32)   # no explicit k.T
        s = s - jnp.max(s, axis=-1, keepdims=True)
        p = jnp.exp(s)
        p = p * pl.reciprocal(jnp.sum(p, axis=-1, keepdims=True), approx=True)
        outs.append(jnp.dot(p.astype(jnp.bfloat16), vh,
                            preferred_element_type=jnp.float32))
    out = outs[0] if n_heads == 1 else jnp.concatenate(outs, axis=-1)
    o_ref[0] = out.astype(o_ref.dtype)


def attention(q, k, v, n_heads):
    """q,k,v: (B,T,D) -> (B,T,D); softmax(q k^T / sqrt(dh)) v per head."""
    B, T, D = q.shape
    spec = pl.BlockSpec((1, T, D), lambda i: (i, 0, 0))
    ce = pl.CostEstimate(flops=4 * B * T * T * D, transcendentals=B * n_heads * T * T,
                         bytes_accessed=4 * B * T * D * 4)
    return pl.pallas_call(
        functools.partial(_attn_kernel, n_heads=n_heads),
        grid=(B,),
        in_specs=[spec, spec, spec],
        out_specs=pl.BlockSpec((1, T, D), lambda i: (i, 0, 0)),
        out_shape=jax.ShapeDtypeStruct((B, T, D), jnp.float32),
        compiler_params=pltpu.CompilerParams(dimension_semantics=("parallel",)),
        cost_estimate=ce,
    )(q, k, v)


def _proj_residual_kernel(res_ref, a_ref, w_ref, b_ref, o_ref):
    # attention out-projection fused with the residual add
    y = jnp.dot(a_ref[...].astype(jnp.bfloat16), w_ref[...].astype(jnp.bfloat16),
                preferred_element_type=jnp.float32) + b_ref[...]
    o_ref[...] = (res_ref[...] + y).astype(o_ref.dtype)


def proj_residual(res, a, w, b):
    """out = res + a @ w + b;  res,a:(M,D) w:(D,D)."""
    M, D = res.shape
    tm = _row_tile(M)
    row = lambda i: (i, 0)
    rep = lambda i: (0, 0)
    return pl.pallas_call(
        _proj_residual_kernel,
        grid=(M // tm,),
        in_specs=[pl.BlockSpec((tm, D), row), pl.BlockSpec((tm, D), row),
                  pl.BlockSpec((D, D), rep), pl.BlockSpec((1, D), rep)],
        out_specs=pl.BlockSpec((tm, D), row),
        out_shape=jax.ShapeDtypeStruct((M, D), jnp.float32),
        compiler_params=pltpu.CompilerParams(dimension_semantics=("parallel",)),
    )(res, a, w, b.reshape(1, D))


def _mlp_residual_kernel(x_ref, g_ref, bg_ref, w1_ref, b1_ref, w2_ref, b2_ref,
                         o_ref, *, eps):
    # fused LN -> fc1 -> GELU -> fc2 -> residual add (one HBM round-trip per tile)
    x = x_ref[...].astype(jnp.float32)
    h = _ln(x, g_ref[...], bg_ref[...], eps)
    h1 = jnp.dot(h.astype(jnp.bfloat16), w1_ref[...].astype(jnp.bfloat16),
                 preferred_element_type=jnp.float32) + b1_ref[...]
    h1 = _gelu_tanh(h1)                                    # f32 on the VPU/EUP
    y = jnp.dot(h1.astype(jnp.bfloat16), w2_ref[...].astype(jnp.bfloat16),
                preferred_element_type=jnp.float32) + b2_ref[...]
    o_ref[...] = (x + y).astype(o_ref.dtype)


def mlp_residual(x, g, bg, w1, b1, w2, b2):
    """out = x + fc2(gelu(fc1(LN(x))));  x:(M,D) w1:(D,F) w2:(F,D)."""
    M, D = x.shape
    F = w1.shape[1]
    tm = _row_tile(M)
    row = lambda i: (i, 0)
    rep = lambda i: (0, 0)
    ce = pl.CostEstimate(flops=4 * M * D * F, transcendentals=M * F,
                         bytes_accessed=2 * M * D * 4 + 2 * D * F * 2)
    return pl.pallas_call(
        functools.partial(_mlp_residual_kernel, eps=LN_EPS),
        grid=(M // tm,),
        in_specs=[pl.BlockSpec((tm, D), row),
                  pl.BlockSpec((1, D), rep), pl.BlockSpec((1, D), rep),
                  pl.BlockSpec((D, F), rep), pl.BlockSpec((1, F), rep),
                  pl.BlockSpec((F, D), rep), pl.BlockSpec((1, D), rep)],
        out_specs=pl.BlockSpec((tm, D), row),
        out_shape=jax.ShapeDtypeStruct((M, D), jnp.float32),
        compiler_params=pltpu.CompilerParams(dimension_semantics=("parallel",)),
        cost_estimate=ce,
    )(x, g.reshape(1, D), bg.reshape(1, D), w1, b1.reshape(1, F), w2, b2.reshape(1, D))


def _ln_linear_kernel(x_ref, g_ref, bg_ref, w_ref, b_ref, o_ref, *, eps):
    h = _ln(x_ref[...].astype(jnp.float32), g_ref[...], bg_ref[...], eps)
    y = jnp.dot(h.astype(jnp.bfloat16), w_ref[...].astype(jnp.bfloat16),
                preferred_element_type=jnp.float32) + b_ref[...]
    o_ref[...] = y.astype(o_ref.dtype)


def ln_linear(x, g, bg, w, b):
    """out = LN(x) @ w + b (fused encoder-final-norm + decoder projection)."""
    M, K = x.shape
    N = w.shape[1]
    tm = _row_tile(M)
    row = lambda i: (i, 0)
    rep = lambda i: (0, 0)
    ce = pl.CostEstimate(flops=2 * M * K * N, transcendentals=0,
                         bytes_accessed=M * K * 4 + K * N * 2 + M * N * 4)
    return pl.pallas_call(
        functools.partial(_ln_linear_kernel, eps=LN_EPS),
        grid=(M // tm,),
        in_specs=[pl.BlockSpec((tm, K), row),
                  pl.BlockSpec((1, K), rep), pl.BlockSpec((1, K), rep),
                  pl.BlockSpec((K, N), rep), pl.BlockSpec((1, N), rep)],
        out_specs=pl.BlockSpec((tm, N), row),
        out_shape=jax.ShapeDtypeStruct((M, N), jnp.float32),
        compiler_params=pltpu.CompilerParams(dimension_semantics=("parallel",)),
        cost_estimate=ce,
    )(x, g.reshape(1, K), bg.reshape(1, K), w, b.reshape(1, N))


def _mask_head_kernel(p_ref, c_ref, g_ref, bg_ref, wp_ref, wc_ref, mg_ref, mb_ref,
                      o_ref, *, eps):
    # fused: dec_norm LN -> proj_patch / proj_classes -> L2-normalize ->
    #        class-mask matmul (emitted (n_cls, N), lane-dense) -> mask_norm LN.
    pat = _ln(p_ref[0].astype(jnp.float32), g_ref[...], bg_ref[...], eps)
    cls = _ln(c_ref[0].astype(jnp.float32), g_ref[...], bg_ref[...], eps)
    pat = jnp.dot(pat.astype(jnp.bfloat16), wp_ref[...].astype(jnp.bfloat16),
                  preferred_element_type=jnp.float32)
    cls = jnp.dot(cls.astype(jnp.bfloat16), wc_ref[...].astype(jnp.bfloat16),
                  preferred_element_type=jnp.float32)
    pat = pat * jax.lax.rsqrt(jnp.sum(pat * pat, axis=-1, keepdims=True) + 1e-12)
    cls = cls * jax.lax.rsqrt(jnp.sum(cls * cls, axis=-1, keepdims=True) + 1e-12)
    m = jax.lax.dot_general(cls.astype(jnp.bfloat16), pat.astype(jnp.bfloat16),
                            (((1,), (1,)), ((), ())),
                            preferred_element_type=jnp.float32)          # (n_cls, N)
    # mask_norm: LayerNorm over the class axis (axis 0 in this layout)
    mean = jnp.mean(m, axis=0, keepdims=True)
    mc = m - mean
    var = jnp.mean(mc * mc, axis=0, keepdims=True)
    o_ref[0] = (mc * jax.lax.rsqrt(var + eps) * mg_ref[...] + mb_ref[...]).astype(o_ref.dtype)


def mask_head(patches, cls_feat, dn_g, dn_b, wp, wc, mn_g, mn_b):
    """patches:(B,N,D), cls_feat:(B,K,D) -> masks (B,K,N) (K = n_cls)."""
    B, N, D = patches.shape
    K = cls_feat.shape[1]
    return pl.pallas_call(
        functools.partial(_mask_head_kernel, eps=LN_EPS),
        grid=(B,),
        in_specs=[pl.BlockSpec((1, N, D), lambda i: (i, 0, 0)),
                  pl.BlockSpec((1, K, D), lambda i: (i, 0, 0)),
                  pl.BlockSpec((1, D), lambda i: (0, 0)),
                  pl.BlockSpec((1, D), lambda i: (0, 0)),
                  pl.BlockSpec((D, D), lambda i: (0, 0)),
                  pl.BlockSpec((D, D), lambda i: (0, 0)),
                  pl.BlockSpec((K, 1), lambda i: (0, 0)),
                  pl.BlockSpec((K, 1), lambda i: (0, 0))],
        out_specs=pl.BlockSpec((1, K, N), lambda i: (i, 0, 0)),
        out_shape=jax.ShapeDtypeStruct((B, K, N), jnp.float32),
        compiler_params=pltpu.CompilerParams(dimension_semantics=("parallel",)),
    )(patches, cls_feat, dn_g.reshape(1, D), dn_b.reshape(1, D), wp, wc,
      mn_g.reshape(K, 1), mn_b.reshape(K, 1))


def _upsample_sigmoid_kernel(m_ref, ah_ref, aw_ref, o_ref, *, apply_sigmoid):
    # separable bilinear upsample; width-contraction first keeps the long axis
    # (W) in lanes; sigmoid denominator via EUP reciprocal.
    m = m_ref[0].astype(jnp.float32)    # (gh, gw)
    ah = ah_ref[...]                    # (H, gh)
    aw = aw_ref[...]                    # (W, gw)
    t = jax.lax.dot_general(m, aw, (((1,), (1,)), ((), ())),
                            preferred_element_type=jnp.float32)    # (gh, W)
    y = jnp.dot(ah, t, preferred_element_type=jnp.float32)          # (H, W)
    if apply_sigmoid:
        y = pl.reciprocal(1.0 + jnp.exp(-y), approx=True)
    o_ref[0] = y


def upsample_sigmoid(m, ah, aw, apply_sigmoid=True):
    """m:(BC,gh,gw), ah:(H,gh), aw:(W,gw) -> (BC,H,W)."""
    BC, gh, gw = m.shape
    H, W = ah.shape[0], aw.shape[0]
    return pl.pallas_call(
        functools.partial(_upsample_sigmoid_kernel, apply_sigmoid=apply_sigmoid),
        grid=(BC,),
        in_specs=[pl.BlockSpec((1, gh, gw), lambda i: (i, 0, 0)),
                  pl.BlockSpec((H, gh), lambda i: (0, 0)),
                  pl.BlockSpec((W, gw), lambda i: (0, 0))],
        out_specs=pl.BlockSpec((1, H, W), lambda i: (i, 0, 0)),
        out_shape=jax.ShapeDtypeStruct((BC, H, W), jnp.float32),
        compiler_params=pltpu.CompilerParams(dimension_semantics=("parallel",)),
    )(m, ah, aw)


# --------------------------------------------------------------------------
# Glue: bilinear matrix (PyTorch align_corners=False semantics)
# --------------------------------------------------------------------------

def bilinear_matrix(out_size, in_size):
    scale = in_size / out_size
    i = jnp.arange(out_size, dtype=jnp.float32)
    src = (i + 0.5) * scale - 0.5
    src = jnp.maximum(src, 0.0)  # torch clamps negative source coords to 0
    i0f = jnp.floor(src)
    frac = src - i0f
    i0 = jnp.clip(i0f.astype(jnp.int32), 0, in_size - 1)
    i1 = jnp.minimum(i0 + 1, in_size - 1)
    oh0 = jax.nn.one_hot(i0, in_size, dtype=jnp.float32)
    oh1 = jax.nn.one_hot(i1, in_size, dtype=jnp.float32)
    return oh0 * (1.0 - frac)[:, None] + oh1 * frac[:, None]


# --------------------------------------------------------------------------
# Model (ViT encoder + MaskTransformer decoder), built from the kernels
# --------------------------------------------------------------------------

def make_params(key, *, c_in, d_model, d_ff, n_layers_enc, n_layers_dec,
                n_tokens_enc, n_cls):
    keys = iter(jax.random.split(key, 256))

    def nrm(k, shape, std=0.02, dtype=jnp.bfloat16):
        # matmul weights stored bf16 (MXU operands); LN params / biases stay f32
        return (std * jax.random.normal(k, shape, jnp.float32)).astype(dtype)

    def block():
        return {
            "ln1_g": jnp.ones((d_model,), jnp.float32),
            "ln1_b": jnp.zeros((d_model,), jnp.float32),
            "wq": nrm(next(keys), (d_model, d_model)),
            "wk": nrm(next(keys), (d_model, d_model)),
            "wv": nrm(next(keys), (d_model, d_model)),
            "bq": jnp.zeros((d_model,), jnp.float32),
            "bk": jnp.zeros((d_model,), jnp.float32),
            "bv": jnp.zeros((d_model,), jnp.float32),
            "proj_w": nrm(next(keys), (d_model, d_model)),
            "proj_b": jnp.zeros((d_model,), jnp.float32),
            "ln2_g": jnp.ones((d_model,), jnp.float32),
            "ln2_b": jnp.zeros((d_model,), jnp.float32),
            "fc1_w": nrm(next(keys), (d_model, d_ff)),
            "fc1_b": jnp.zeros((d_ff,), jnp.float32),
            "fc2_w": nrm(next(keys), (d_ff, d_model)),
            "fc2_b": jnp.zeros((d_model,), jnp.float32),
        }

    p = {
        # patch-embed conv (stride = kernel = PATCH) expressed as a matmul
        "pe_w": nrm(next(keys), (c_in * PATCH * PATCH, d_model)),
        "pe_b": jnp.zeros((d_model,), jnp.float32),
        "cls_token": 0.02 * jax.random.normal(next(keys), (1, 1, d_model), jnp.float32),
        "pos_embed": 0.02 * jax.random.normal(next(keys), (1, n_tokens_enc + 1, d_model), jnp.float32),
        "enc_blocks": [block() for _ in range(n_layers_enc)],
        "enc_norm_g": jnp.ones((d_model,), jnp.float32),
        "enc_norm_b": jnp.zeros((d_model,), jnp.float32),
        # MaskTransformer decoder
        "proj_dec_w": nrm(next(keys), (d_model, d_model)),
        "proj_dec_b": jnp.zeros((d_model,), jnp.float32),
        "cls_emb": 0.02 * jax.random.normal(next(keys), (1, n_cls, d_model), jnp.float32),
        "dec_blocks": [block() for _ in range(n_layers_dec)],
        "dec_norm_g": jnp.ones((d_model,), jnp.float32),
        "dec_norm_b": jnp.zeros((d_model,), jnp.float32),
        "proj_patch": ((d_model ** -0.5) *
                       jax.random.normal(next(keys), (d_model, d_model), jnp.float32)).astype(jnp.bfloat16),
        "proj_classes": ((d_model ** -0.5) *
                         jax.random.normal(next(keys), (d_model, d_model), jnp.float32)).astype(jnp.bfloat16),
        "mask_norm_g": jnp.ones((n_cls,), jnp.float32),
        "mask_norm_b": jnp.zeros((n_cls,), jnp.float32),
    }
    return p


def transformer_block(x, p, n_heads):
    B, T, D = x.shape
    x2 = x.reshape(B * T, D)
    q, k, v = ln_qkv(x2, p["ln1_g"], p["ln1_b"],
                     p["wq"], p["wk"], p["wv"], p["bq"], p["bk"], p["bv"])
    o = attention(q.reshape(B, T, D), k.reshape(B, T, D), v.reshape(B, T, D), n_heads)
    x2 = proj_residual(x2, o.reshape(B * T, D), p["proj_w"], p["proj_b"])
    x2 = mlp_residual(x2, p["ln2_g"], p["ln2_b"],
                      p["fc1_w"], p["fc1_b"], p["fc2_w"], p["fc2_b"])
    return x2.reshape(B, T, D)


def encoder_forward(im, p, *, n_heads):
    B, C, H, W = im.shape
    gh, gw = H // PATCH, W // PATCH
    N = gh * gw
    D = p["pe_b"].shape[0]
    # conv(kernel=stride=PATCH) == unfold + matmul
    # TODO(synk): the 6-D unfold transpose is an XLA HBM copy; for production image
    # sizes it could be folded into the patch-embed kernel via element-indexed blocks.
    patches = im.reshape(B, C, gh, PATCH, gw, PATCH).transpose(0, 2, 4, 1, 3, 5)
    patches = patches.reshape(B, N, C * PATCH * PATCH)
    x = patch_embed(patches, p["pe_w"], p["pe_b"], p["pos_embed"][0, 1:])   # +pos fused
    cls = jnp.broadcast_to(p["cls_token"] + p["pos_embed"][:, :1], (B, 1, D))
    x = jnp.concatenate([cls, x], axis=1)
    for blk in p["enc_blocks"]:
        x = transformer_block(x, blk, n_heads)
    return x  # pre final-norm; the encoder LN is fused into the decoder projection


def decoder_forward(feats, im_size, p, *, n_cls, n_heads):
    B, N, D = feats.shape
    Hp, Wp = im_size
    gh, gw = Hp // PATCH, Wp // PATCH
    # fused encoder-final-LayerNorm + proj_dec (LN is per-token, commutes with slicing)
    x = ln_linear(feats.reshape(B * N, D), p["enc_norm_g"], p["enc_norm_b"],
                  p["proj_dec_w"], p["proj_dec_b"]).reshape(B, N, D)
    cls_emb = jnp.broadcast_to(p["cls_emb"], (B, n_cls, D))
    x = jnp.concatenate([x, cls_emb], axis=1)
    for blk in p["dec_blocks"]:
        x = transformer_block(x, blk, n_heads)
    patches, cls_feat = x[:, :N], x[:, N:]
    masks = mask_head(patches, cls_feat, p["dec_norm_g"], p["dec_norm_b"],
                      p["proj_patch"], p["proj_classes"],
                      p["mask_norm_g"], p["mask_norm_b"])          # (B, n_cls, N)
    return masks.reshape(B, n_cls, gh, gw)                          # no transpose needed


def segmenter2_forward(im, p, *, n_cls, n_heads, sigmoid=True):
    """Segmenter2.forward with reg=False, up_scale=False, distilled=False."""
    B, C, H_ori, W_ori = im.shape
    pad_h, pad_w = (-H_ori) % PATCH, (-W_ori) % PATCH
    im_p = jnp.pad(im, ((0, 0), (0, 0), (0, pad_h), (0, pad_w)))
    Hp, Wp = im_p.shape[2], im_p.shape[3]
    x = encoder_forward(im_p, p, n_heads=n_heads)
    feats = x[:, 1:]  # drop CLS token (num_extra_tokens = 1)
    masks = decoder_forward(feats, (Hp, Wp), p, n_cls=n_cls, n_heads=n_heads)
    gh, gw = masks.shape[2], masks.shape[3]
    ah = bilinear_matrix(H_ori, gh)
    aw = bilinear_matrix(W_ori, gw)
    out = upsample_sigmoid(masks.reshape(B * n_cls, gh, gw), ah, aw, apply_sigmoid=sigmoid)
    return out.reshape(B, n_cls, H_ori, W_ori)


# --------------------------------------------------------------------------

if __name__ == "__main__":
    B, C, H, W = 2, 3, 32, 32       # NCHW input, like the PyTorch module
    n_cls = 4                       # config['dataset']['n_cls']
    d_model = 64                    # encoder d_model
    d_ff = 4 * d_model
    n_heads = max(1, d_model // 64)  # Segmenter.create_decoder: n_heads = dim // 64
    n_layers_enc, n_layers_dec = 2, 1
    n_tokens_enc = (H // PATCH) * (W // PATCH)

    key = jax.random.PRNGKey(0)
    k_im, k_par = jax.random.split(key)
    im = jax.random.normal(k_im, (B, C, H, W), jnp.float32)
    params = make_params(k_par, c_in=C, d_model=d_model, d_ff=d_ff,
                         n_layers_enc=n_layers_enc, n_layers_dec=n_layers_dec,
                         n_tokens_enc=n_tokens_enc, n_cls=n_cls)

    fwd = jax.jit(functools.partial(segmenter2_forward, n_cls=n_cls,
                                    n_heads=n_heads, sigmoid=True))
    out = jax.block_until_ready(fwd(im, params))
    assert out.shape == (B, n_cls, H, W), out.shape
    assert bool(jnp.all(jnp.isfinite(out)))
    print("KERNEL_OK")
</pallas_src>

<mosaic_0001>
module attributes {stable_mosaic.version = 11 : i64} {
  func.func @_patch_embed_kernel(%arg0: i32, %arg1: memref<1x4x768xf32, #tpu.memory_space<vmem>>, %arg2: memref<768x64xbf16, #tpu.memory_space<vmem>>, %arg3: memref<1x64xf32, #tpu.memory_space<vmem>>, %arg4: memref<4x64xf32, #tpu.memory_space<vmem>>, %arg5: memref<1x4x64xf32, #tpu.memory_space<vmem>>) attributes {dimension_semantics = [#tpu.dimension_semantics<parallel>], iteration_bounds = array<i64: 2>, scalar_prefetch = 0 : i64, scratch_operands = 0 : i64, tpu.core_type = #tpu.core_type<tc>, window_params = [{transform_indices = @transform_0, window_bounds = array<i64: 1, 4, 768>}, {pipeline_mode = #tpu.pipeline_mode<synchronous>, transform_indices = @transform_1, window_bounds = array<i64: 768, 64>}, {pipeline_mode = #tpu.pipeline_mode<synchronous>, transform_indices = @transform_2, window_bounds = array<i64: 1, 64>}, {pipeline_mode = #tpu.pipeline_mode<synchronous>, transform_indices = @transform_3, window_bounds = array<i64: 4, 64>}, {transform_indices = @transform_4, window_bounds = array<i64: 1, 4, 64>}]} {
    %c0 = arith.constant 0 : index
    %c0_0 = arith.constant 0 : index
    %c0_1 = arith.constant 0 : index
    %0 = vector.load %arg1[%c0, %c0_0, %c0_1] : memref<1x4x768xf32, #tpu.memory_space<vmem>>, vector<1x4x768xf32>
    %1 = vector.shape_cast %0 : vector<1x4x768xf32> to vector<4x768xf32>
    %2 = arith.truncf %1 : vector<4x768xf32> to vector<4x768xbf16>
    %c0_2 = arith.constant 0 : index
    %c0_3 = arith.constant 0 : index
    %3 = vector.load %arg2[%c0_2, %c0_3] : memref<768x64xbf16, #tpu.memory_space<vmem>>, vector<768x64xbf16>
    %cst = arith.constant dense<0.000000e+00> : vector<4x64xf32>
    %4 = tpu.matmul %2, %3, %cst {dimension_numbers = #tpu.dot_dimension_numbers<[1], [0], [0], [1], [0, 0, 1, 1], [], []>} : vector<4x768xbf16>, vector<768x64xbf16>, vector<4x64xf32> -> vector<4x64xf32>
    %c0_4 = arith.constant 0 : index
    %c0_5 = arith.constant 0 : index
    %5 = vector.load %arg3[%c0_4, %c0_5] : memref<1x64xf32, #tpu.memory_space<vmem>>, vector<1x64xf32>
    %6 = vector.broadcast %5 : vector<1x64xf32> to vector<4x64xf32>
    %7 = arith.addf %4, %6 : vector<4x64xf32>
    %c0_6 = arith.constant 0 : index
    %c0_7 = arith.constant 0 : index
    %8 = vector.load %arg4[%c0_6, %c0_7] : memref<4x64xf32, #tpu.memory_space<vmem>>, vector<4x64xf32>
    %9 = arith.addf %7, %8 : vector<4x64xf32>
    %c0_8 = arith.constant 0 : index
    %c0_9 = arith.constant 0 : index
    %c0_10 = arith.constant 0 : index
    %10 = vector.load %arg5[%c0_8, %c0_9, %c0_10] : memref<1x4x64xf32, #tpu.memory_space<vmem>>, vector<1x4x64xf32>
    %11 = vector.shape_cast %10 : vector<1x4x64xf32> to vector<4x64xf32>
    %12 = vector.shape_cast %9 : vector<4x64xf32> to vector<1x4x64xf32>
    tpu.vector_store %arg5[%c0_8, %c0_9, %c0_10], %12 {strides = array<i32>} : memref<1x4x64xf32, #tpu.memory_space<vmem>>, vector<1x4x64xf32>,
    return
  }
  func.func @transform_0(%arg0: i32) -> (i32, i32, i32) {
    %c0_i32 = arith.constant 0 : i32
    %c0_i32_0 = arith.constant 0 : i32
    %c0_i32_1 = arith.constant 0 : i32
    return %arg0, %c0_i32, %c0_i32_0 : i32, i32, i32
  }
  func.func @transform_1(%arg0: i32) -> (i32, i32) {
    %c0_i32 = arith.constant 0 : i32
    %c0_i32_0 = arith.constant 0 : i32
    %c0_i32_1 = arith.constant 0 : i32
    return %c0_i32, %c0_i32_0 : i32, i32
  }
  func.func @transform_2(%arg0: i32) -> (i32, i32) {
    %c0_i32 = arith.constant 0 : i32
    %c0_i32_0 = arith.constant 0 : i32
    %c0_i32_1 = arith.constant 0 : i32
    return %c0_i32, %c0_i32_0 : i32, i32
  }
  func.func @transform_3(%arg0: i32) -> (i32, i32) {
    %c0_i32 = arith.constant 0 : i32
    %c0_i32_0 = arith.constant 0 : i32
    %c0_i32_1 = arith.constant 0 : i32
    return %c0_i32, %c0_i32_0 : i32, i32
  }
  func.func @transform_4(%arg0: i32) -> (i32, i32, i32) {
    %c0_i32 = arith.constant 0 : i32
    %c0_i32_0 = arith.constant 0 : i32
    %c0_i32_1 = arith.constant 0 : i32
    return %arg0, %c0_i32, %c0_i32_0 : i32, i32, i32
  }
}

module attributes {stable_mosaic.version = 11 : i64} {
  func.func @_attn_kernel(%arg0: i32, %arg1: memref<1x5x64xf32, #tpu.memory_space<vmem>>, %arg2: memref<1x5x64xf32, #tpu.memory_space<vmem>>, %arg3: memref<1x5x64xf32, #tpu.memory_space<vmem>>, %arg4: memref<1x5x64xf32, #tpu.memory_space<vmem>>) attributes {dimension_semantics = [#tpu.dimension_semantics<parallel>], iteration_bounds = array<i64: 2>, scalar_prefetch = 0 : i64, scratch_operands = 0 : i64, tpu.core_type = #tpu.core_type<tc>, window_params = [{transform_indices = @transform_0, window_bounds = array<i64: 1, 5, 64>}, {transform_indices = @transform_1, window_bounds = array<i64: 1, 5, 64>}, {transform_indices = @transform_2, window_bounds = array<i64: 1, 5, 64>}, {transform_indices = @transform_3, window_bounds = array<i64: 1, 5, 64>}]} {
    %c0 = arith.constant 0 : index
    %c0_0 = arith.constant 0 : index
    %c0_1 = arith.constant 0 : index
    %0 = vector.load %arg1[%c0, %c0_0, %c0_1] : memref<1x5x64xf32, #tpu.memory_space<vmem>>, vector<1x5x64xf32>
    %1 = vector.shape_cast %0 : vector<1x5x64xf32> to vector<5x64xf32>
    %c0_2 = arith.constant 0 : index
    %c0_3 = arith.constant 0 : index
    %c0_4 = arith.constant 0 : index
    %2 = vector.load %arg2[%c0_2, %c0_3, %c0_4] : memref<1x5x64xf32, #tpu.memory_space<vmem>>, vector<1x5x64xf32>
    %3 = vector.shape_cast %2 : vector<1x5x64xf32> to vector<5x64xf32>
    %c0_5 = arith.constant 0 : index
    %c0_6 = arith.constant 0 : index
    %c0_7 = arith.constant 0 : index
    %4 = vector.load %arg3[%c0_5, %c0_6, %c0_7] : memref<1x5x64xf32, #tpu.memory_space<vmem>>, vector<1x5x64xf32>
    %5 = vector.shape_cast %4 : vector<1x5x64xf32> to vector<5x64xf32>
    %cst = arith.constant 1.250000e-01 : f32
    %6 = vector.broadcast %cst : f32 to vector<5x64xf32>
    %7 = arith.mulf %1, %6 : vector<5x64xf32>
    %8 = arith.truncf %7 : vector<5x64xf32> to vector<5x64xbf16>
    %9 = arith.truncf %3 : vector<5x64xf32> to vector<5x64xbf16>
    %10 = arith.truncf %5 : vector<5x64xf32> to vector<5x64xbf16>
    %cst_8 = arith.constant dense<0.000000e+00> : vector<5x5xf32>
    %11 = tpu.matmul %8, %9, %cst_8 {dimension_numbers = #tpu.dot_dimension_numbers<[1], [1], [0], [0], [0, 0, 1, 0], [], []>} : vector<5x64xbf16>, vector<5x64xbf16>, vector<5x5xf32> -> vector<5x5xf32>
    %cst_9 = arith.constant dense<0xFF800000> : vector<5xf32>
    %12 = vector.multi_reduction <maximumf>, %11, %cst_9 [1] : vector<5x5xf32> to vector<5xf32>
    %13 = vector.shape_cast %12 : vector<5xf32> to vector<5x1xf32>
    %14 = vector.broadcast %13 : vector<5x1xf32> to vector<5x5xf32>
    %15 = arith.subf %11, %14 : vector<5x5xf32>
    %16 = math.exp %15 : vector<5x5xf32>
    %cst_10 = arith.constant dense<0.000000e+00> : vector<5xf32>
    %17 = vector.multi_reduction <add>, %16, %cst_10 [1] : vector<5x5xf32> to vector<5xf32>
    %18 = vector.shape_cast %17 : vector<5xf32> to vector<5x1xf32>
    %19 = tpu.reciprocal %18 {approx = true} : vector<5x1xf32> -> vector<5x1xf32>
    %20 = vector.broadcast %19 : vector<5x1xf32> to vector<5x5xf32>
    %21 = arith.mulf %16, %20 : vector<5x5xf32>
    %22 = arith.truncf %21 : vector<5x5xf32> to vector<5x5xbf16>
    %cst_11 = arith.constant dense<0.000000e+00> : vector<5x64xf32>
    %23 = tpu.matmul %22, %10, %cst_11 {dimension_numbers = #tpu.dot_dimension_numbers<[1], [0], [0], [1], [0, 0, 1, 1], [], []>} : vector<5x5xbf16>, vector<5x64xbf16>, vector<5x64xf32> -> vector<5x64xf32>
    %c0_12 = arith.constant 0 : index
    %c0_13 = arith.constant 0 : index
    %c0_14 = arith.constant 0 : index
    %24 = vector.load %arg4[%c0_12, %c0_13, %c0_14] : memref<1x5x64xf32, #tpu.memory_space<vmem>>, vector<1x5x64xf32>
    %25 = vector.shape_cast %24 : vector<1x5x64xf32> to vector<5x64xf32>
    %26 = vector.shape_cast %23 : vector<5x64xf32> to vector<1x5x64xf32>
    tpu.vector_store %arg4[%c0_12, %c0_13, %c0_14], %26 {strides = array<i32>} : memref<1x5x64xf32, #tpu.memory_space<vmem>>, vector<1x5x64xf32>,
    return
  }
  func.func @transform_0(%arg0: i32) -> (i32, i32, i32) {
    %c0_i32 = arith.constant 0 : i32
    %c0_i32_0 = arith.constant 0 : i32
    %c0_i32_1 = arith.constant 0 : i32
    return %arg0, %c0_i32, %c0_i32_0 : i32, i32, i32
  }
  func.func @transform_1(%arg0: i32) -> (i32, i32, i32) {
    %c0_i32 = arith.constant 0 : i32
    %c0_i32_0 = arith.constant 0 : i32
    %c0_i32_1 = arith.constant 0 : i32
    return %arg0, %c0_i32, %c0_i32_0 : i32, i32, i32
  }
  func.func @transform_2(%arg0: i32) -> (i32, i32, i32) {
    %c0_i32 = arith.constant 0 : i32
    %c0_i32_0 = arith.constant 0 : i32
    %c0_i32_1 = arith.constant 0 : i32
    return %arg0, %c0_i32, %c0_i32_0 : i32, i32, i32
  }
  func.func @transform_3(%arg0: i32) -> (i32, i32, i32) {
    %c0_i32 = arith.constant 0 : i32
    %c0_i32_0 = arith.constant 0 : i32
    %c0_i32_1 = arith.constant 0 : i32
    return %arg0, %c0_i32, %c0_i32_0 : i32, i32, i32
  }
}

module attributes {stable_mosaic.version = 11 : i64} {
  func.func @_proj_residual_kernel(%arg0: i32, %arg1: memref<10x64xf32, #tpu.memory_space<vmem>>, %arg2: memref<10x64xf32, #tpu.memory_space<vmem>>, %arg3: memref<64x64xbf16, #tpu.memory_space<vmem>>, %arg4: memref<1x64xf32, #tpu.memory_space<vmem>>, %arg5: memref<10x64xf32, #tpu.memory_space<vmem>>) attributes {dimension_semantics = [#tpu.dimension_semantics<parallel>], iteration_bounds = array<i64: 1>, scalar_prefetch = 0 : i64, scratch_operands = 0 : i64, tpu.core_type = #tpu.core_type<tc>, window_params = [{transform_indices = @transform_0, window_bounds = array<i64: 10, 64>}, {transform_indices = @transform_1, window_bounds = array<i64: 10, 64>}, {pipeline_mode = #tpu.pipeline_mode<synchronous>, transform_indices = @transform_2, window_bounds = array<i64: 64, 64>}, {pipeline_mode = #tpu.pipeline_mode<synchronous>, transform_indices = @transform_3, window_bounds = array<i64: 1, 64>}, {transform_indices = @transform_4, window_bounds = array<i64: 10, 64>}]} {
    %c0 = arith.constant 0 : index
    %c0_0 = arith.constant 0 : index
    %0 = vector.load %arg2[%c0, %c0_0] : memref<10x64xf32, #tpu.memory_space<vmem>>, vector<10x64xf32>
    %1 = arith.truncf %0 : vector<10x64xf32> to vector<10x64xbf16>
    %c0_1 = arith.constant 0 : index
    %c0_2 = arith.constant 0 : index
    %2 = vector.load %arg3[%c0_1, %c0_2] : memref<64x64xbf16, #tpu.memory_space<vmem>>, vector<64x64xbf16>
    %cst = arith.constant dense<0.000000e+00> : vector<10x64xf32>
    %3 = tpu.matmul %1, %2, %cst {dimension_numbers = #tpu.dot_dimension_numbers<[1], [0], [0], [1], [0, 0, 1, 1], [], []>} : vector<10x64xbf16>, vector<64x64xbf16>, vector<10x64xf32> -> vector<10x64xf32>
    %c0_3 = arith.constant 0 : index
    %c0_4 = arith.constant 0 : index
    %4 = vector.load %arg4[%c0_3, %c0_4] : memref<1x64xf32, #tpu.memory_space<vmem>>, vector<1x64xf32>
    %5 = vector.broadcast %4 : vector<1x64xf32> to vector<10x64xf32>
    %6 = arith.addf %3, %5 : vector<10x64xf32>
    %c0_5 = arith.constant 0 : index
    %c0_6 = arith.constant 0 : index
    %7 = vector.load %arg1[%c0_5, %c0_6] : memref<10x64xf32, #tpu.memory_space<vmem>>, vector<10x64xf32>
    %8 = arith.addf %7, %6 : vector<10x64xf32>
    %c0_7 = arith.constant 0 : index
    %c0_8 = arith.constant 0 : index
    %9 = vector.load %arg5[%c0_7, %c0_8] : memref<10x64xf32, #tpu.memory_space<vmem>>, vector<10x64xf32>
    tpu.vector_store %arg5[%c0_7, %c0_8], %8 {strides = array<i32>} : memref<10x64xf32, #tpu.memory_space<vmem>>, vector<10x64xf32>,
    return
  }
  func.func @transform_0(%arg0: i32) -> (i32, i32) {
    %c0_i32 = arith.constant 0 : i32
    %c0_i32_0 = arith.constant 0 : i32
    return %arg0, %c0_i32 : i32, i32
  }
  func.func @transform_1(%arg0: i32) -> (i32, i32) {
    %c0_i32 = arith.constant 0 : i32
    %c0_i32_0 = arith.constant 0 : i32
    return %arg0, %c0_i32 : i32, i32
  }
  func.func @transform_2(%arg0: i32) -> (i32, i32) {
    %c0_i32 = arith.constant 0 : i32
    %c0_i32_0 = arith.constant 0 : i32
    %c0_i32_1 = arith.constant 0 : i32
    return %c0_i32, %c0_i32_0 : i32, i32
  }
  func.func @transform_3(%arg0: i32) -> (i32, i32) {
    %c0_i32 = arith.constant 0 : i32
    %c0_i32_0 = arith.constant 0 : i32
    %c0_i32_1 = arith.constant 0 : i32
    return %c0_i32, %c0_i32_0 : i32, i32
  }
  func.func @transform_4(%arg0: i32) -> (i32, i32) {
    %c0_i32 = arith.constant 0 : i32
    %c0_i32_0 = arith.constant 0 : i32
    return %arg0, %c0_i32 : i32, i32
  }
}

module attributes {stable_mosaic.version = 11 : i64} {
  func.func @_ln_qkv_kernel(%arg0: i32, %arg1: memref<10x64xf32, #tpu.memory_space<vmem>>, %arg2: memref<1x64xf32, #tpu.memory_space<vmem>>, %arg3: memref<1x64xf32, #tpu.memory_space<vmem>>, %arg4: memref<64x64xbf16, #tpu.memory_space<vmem>>, %arg5: memref<64x64xbf16, #tpu.memory_space<vmem>>, %arg6: memref<64x64xbf16, #tpu.memory_space<vmem>>, %arg7: memref<1x64xf32, #tpu.memory_space<vmem>>, %arg8: memref<1x64xf32, #tpu.memory_space<vmem>>, %arg9: memref<1x64xf32, #tpu.memory_space<vmem>>, %arg10: memref<10x64xf32, #tpu.memory_space<vmem>>, %arg11: memref<10x64xf32, #tpu.memory_space<vmem>>, %arg12: memref<10x64xf32, #tpu.memory_space<vmem>>) attributes {dimension_semantics = [#tpu.dimension_semantics<parallel>], iteration_bounds = array<i64: 1>, scalar_prefetch = 0 : i64, scratch_operands = 0 : i64, tpu.core_type = #tpu.core_type<tc>, window_params = [{transform_indices = @transform_0, window_bounds = array<i64: 10, 64>}, {pipeline_mode = #tpu.pipeline_mode<synchronous>, transform_indices = @transform_1, window_bounds = array<i64: 1, 64>}, {pipeline_mode = #tpu.pipeline_mode<synchronous>, transform_indices = @transform_2, window_bounds = array<i64: 1, 64>}, {pipeline_mode = #tpu.pipeline_mode<synchronous>, transform_indices = @transform_3, window_bounds = array<i64: 64, 64>}, {pipeline_mode = #tpu.pipeline_mode<synchronous>, transform_indices = @transform_4, window_bounds = array<i64: 64, 64>}, {pipeline_mode = #tpu.pipeline_mode<synchronous>, transform_indices = @transform_5, window_bounds = array<i64: 64, 64>}, {pipeline_mode = #tpu.pipeline_mode<synchronous>, transform_indices = @transform_6, window_bounds = array<i64: 1, 64>}, {pipeline_mode = #tpu.pipeline_mode<synchronous>, transform_indices = @transform_7, window_bounds = array<i64: 1, 64>}, {pipeline_mode = #tpu.pipeline_mode<synchronous>, transform_indices = @transform_8, window_bounds = array<i64: 1, 64>}, {transform_indices = @transform_9, window_bounds = array<i64: 10, 64>}, {transform_indices = @transform_10, window_bounds = array<i64: 10, 64>}, {transform_indices = @transform_11, window_bounds = array<i64: 10, 64>}]} {
    %c0 = arith.constant 0 : index
    %c0_0 = arith.constant 0 : index
    %0 = vector.load %arg1[%c0, %c0_0] : memref<10x64xf32, #tpu.memory_space<vmem>>, vector<10x64xf32>
    %c0_1 = arith.constant 0 : index
    %c0_2 = arith.constant 0 : index
    %1 = vector.load %arg2[%c0_1, %c0_2] : memref<1x64xf32, #tpu.memory_space<vmem>>, vector<1x64xf32>
    %c0_3 = arith.constant 0 : index
    %c0_4 = arith.constant 0 : index
    %2 = vector.load %arg3[%c0_3, %c0_4] : memref<1x64xf32, #tpu.memory_space<vmem>>, vector<1x64xf32>
    %cst = arith.constant dense<0.000000e+00> : vector<10xf32>
    %3 = vector.multi_reduction <add>, %0, %cst [1] : vector<10x64xf32> to vector<10xf32>
    %4 = vector.shape_cast %3 : vector<10xf32> to vector<10x1xf32>
    %cst_5 = arith.constant 6.400000e+01 : f32
    %5 = vector.broadcast %cst_5 : f32 to vector<10x1xf32>
    %6 = arith.divf %4, %5 : vector<10x1xf32>
    %7 = vector.broadcast %6 : vector<10x1xf32> to vector<10x64xf32>
    %8 = arith.subf %0, %7 : vector<10x64xf32>
    %9 = arith.mulf %8, %8 : vector<10x64xf32>
    %cst_6 = arith.constant dense<0.000000e+00> : vector<10xf32>
    %10 = vector.multi_reduction <add>, %9, %cst_6 [1] : vector<10x64xf32> to vector<10xf32>
    %11 = vector.shape_cast %10 : vector<10xf32> to vector<10x1xf32>
    %cst_7 = arith.constant 6.400000e+01 : f32
    %12 = vector.broadcast %cst_7 : f32 to vector<10x1xf32>
    %13 = arith.divf %11, %12 : vector<10x1xf32>
    %cst_8 = arith.constant 9.99999974E-6 : f32
    %14 = vector.broadcast %cst_8 : f32 to vector<10x1xf32>
    %15 = arith.addf %13, %14 : vector<10x1xf32>
    %16 = math.rsqrt %15 : vector<10x1xf32>
    %17 = vector.broadcast %16 : vector<10x1xf32> to vector<10x64xf32>
    %18 = arith.mulf %8, %17 : vector<10x64xf32>
    %19 = vector.broadcast %1 : vector<1x64xf32> to vector<10x64xf32>
    %20 = arith.mulf %18, %19 : vector<10x64xf32>
    %21 = vector.broadcast %2 : vector<1x64xf32> to vector<10x64xf32>
    %22 = arith.addf %20, %21 : vector<10x64xf32>
    %23 = arith.truncf %22 : vector<10x64xf32> to vector<10x64xbf16>
    %c0_9 = arith.constant 0 : index
    %c0_10 = arith.constant 0 : index
    %24 = vector.load %arg4[%c0_9, %c0_10] : memref<64x64xbf16, #tpu.memory_space<vmem>>, vector<64x64xbf16>
    %cst_11 = arith.constant dense<0.000000e+00> : vector<10x64xf32>
    %25 = tpu.matmul %23, %24, %cst_11 {dimension_numbers = #tpu.dot_dimension_numbers<[1], [0], [0], [1], [0, 0, 1, 1], [], []>} : vector<10x64xbf16>, vector<64x64xbf16>, vector<10x64xf32> -> vector<10x64xf32>
    %c0_12 = arith.constant 0 : index
    %c0_13 = arith.constant 0 : index
    %26 = vector.load %arg7[%c0_12, %c0_13] : memref<1x64xf32, #tpu.memory_space<vmem>>, vector<1x64xf32>
    %27 = vector.broadcast %26 : vector<1x64xf32> to vector<10x64xf32>
    %28 = arith.addf %25, %27 : vector<10x64xf32>
    %c0_14 = arith.constant 0 : index
    %c0_15 = arith.constant 0 : index
    %29 = vector.load %arg10[%c0_14, %c0_15] : memref<10x64xf32, #tpu.memory_space<vmem>>, vector<10x64xf32>
    tpu.vector_store %arg10[%c0_14, %c0_15], %28 {strides = array<i32>} : memref<10x64xf32, #tpu.memory_space<vmem>>, vector<10x64xf32>,
    %c0_16 = arith.constant 0 : index
    %c0_17 = arith.constant 0 : index
    %30 = vector.load %arg5[%c0_16, %c0_17] : memref<64x64xbf16, #tpu.memory_space<vmem>>, vector<64x64xbf16>
    %cst_18 = arith.constant dense<0.000000e+00> : vector<10x64xf32>
    %31 = tpu.matmul %23, %30, %cst_18 {dimension_numbers = #tpu.dot_dimension_numbers<[1], [0], [0], [1], [0, 0, 1, 1], [], []>} : vector<10x64xbf16>, vector<64x64xbf16>, vector<10x64xf32> -> vector<10x64xf32>
    %c0_19 = arith.constant 0 : index
    %c0_20 = arith.constant 0 : index
    %32 = vector.load %arg8[%c0_19, %c0_20] : memref<1x64xf32, #tpu.memory_space<vmem>>, vector<1x64xf32>
    %33 = vector.broadcast %32 : vector<1x64xf32> to vector<10x64xf32>
    %34 = arith.addf %31, %33 : vector<10x64xf32>
    %c0_21 = arith.constant 0 : index
    %c0_22 = arith.constant 0 : index
    %35 = vector.load %arg11[%c0_21, %c0_22] : memref<10x64xf32, #tpu.memory_space<vmem>>, vector<10x64xf32>
    tpu.vector_store %arg11[%c0_21, %c0_22], %34 {strides = array<i32>} : memref<10x64xf32, #tpu.memory_space<vmem>>, vector<10x64xf32>,
    %c0_23 = arith.constant 0 : index
    %c0_24 = arith.constant 0 : index
    %36 = vector.load %arg6[%c0_23, %c0_24] : memref<64x64xbf16, #tpu.memory_space<vmem>>, vector<64x64xbf16>
    %cst_25 = arith.constant dense<0.000000e+00> : vector<10x64xf32>
    %37 = tpu.matmul %23, %36, %cst_25 {dimension_numbers = #tpu.dot_dimension_numbers<[1], [0], [0], [1], [0, 0, 1, 1], [], []>} : vector<10x64xbf16>, vector<64x64xbf16>, vector<10x64xf32> -> vector<10x64xf32>
    %c0_26 = arith.constant 0 : index
    %c0_27 = arith.constant 0 : index
    %38 = vector.load %arg9[%c0_26, %c0_27] : memref<1x64xf32, #tpu.memory_space<vmem>>, vector<1x64xf32>
    %39 = vector.broadcast %38 : vector<1x64xf32> to vector<10x64xf32>
    %40 = arith.addf %37, %39 : vector<10x64xf32>
    %c0_28 = arith.constant 0 : index
    %c0_29 = arith.constant 0 : index
    %41 = vector.load %arg12[%c0_28, %c0_29] : memref<10x64xf32, #tpu.memory_space<vmem>>, vector<10x64xf32>
    tpu.vector_store %arg12[%c0_28, %c0_29], %40 {strides = array<i32>} : memref<10x64xf32, #tpu.memory_space<vmem>>, vector<10x64xf32>,
    return
  }
  func.func @transform_0(%arg0: i32) -> (i32, i32) {
    %c0_i32 = arith.constant 0 : i32
    %c0_i32_0 = arith.constant 0 : i32
    return %arg0, %c0_i32 : i32, i32
  }
  func.func @transform_1(%arg0: i32) -> (i32, i32) {
    %c0_i32 = arith.constant 0 : i32
    %c0_i32_0 = arith.constant 0 : i32
    %c0_i32_1 = arith.constant 0 : i32
    return %c0_i32, %c0_i32_0 : i32, i32
  }
  func.func @transform_2(%arg0: i32) -> (i32, i32) {
    %c0_i32 = arith.constant 0 : i32
    %c0_i32_0 = arith.constant 0 : i32
    %c0_i32_1 = arith.constant 0 : i32
    return %c0_i32, %c0_i32_0 : i32, i32
  }
  func.func @transform_3(%arg0: i32) -> (i32, i32) {
    %c0_i32 = arith.constant 0 : i32
    %c0_i32_0 = arith.constant 0 : i32
    %c0_i32_1 = arith.constant 0 : i32
    return %c0_i32, %c0_i32_0 : i32, i32
  }
  func.func @transform_4(%arg0: i32) -> (i32, i32) {
    %c0_i32 = arith.constant 0 : i32
    %c0_i32_0 = arith.constant 0 : i32
    %c0_i32_1 = arith.constant 0 : i32
    return %c0_i32, %c0_i32_0 : i32, i32
  }
  func.func @transform_5(%arg0: i32) -> (i32, i32) {
    %c0_i32 = arith.constant 0 : i32
    %c0_i32_0 = arith.constant 0 : i32
    %c0_i32_1 = arith.constant 0 : i32
    return %c0_i32, %c0_i32_0 : i32, i32
  }
  func.func @transform_6(%arg0: i32) -> (i32, i32) {
    %c0_i32 = arith.constant 0 : i32
    %c0_i32_0 = arith.constant 0 : i32
    %c0_i32_1 = arith.constant 0 : i32
    return %c0_i32, %c0_i32_0 : i32, i32
  }
  func.func @transform_7(%arg0: i32) -> (i32, i32) {
    %c0_i32 = arith.constant 0 : i32
    %c0_i32_0 = arith.constant 0 : i32
    %c0_i32_1 = arith.constant 0 : i32
    return %c0_i32, %c0_i32_0 : i32, i32
  }
  func.func @transform_8(%arg0: i32) -> (i32, i32) {
    %c0_i32 = arith.constant 0 : i32
    %c0_i32_0 = arith.constant 0 : i32
    %c0_i32_1 = arith.constant 0 : i32
    return %c0_i32, %c0_i32_0 : i32, i32
  }
  func.func @transform_9(%arg0: i32) -> (i32, i32) {
    %c0_i32 = arith.constant 0 : i32
    %c0_i32_0 = arith.constant 0 : i32
    return %arg0, %c0_i32 : i32, i32
  }
  func.func @transform_10(%arg0: i32) -> (i32, i32) {
    %c0_i32 = arith.constant 0 : i32
    %c0_i32_0 = arith.constant 0 : i32
    return %arg0, %c0_i32 : i32, i32
  }
  func.func @transform_11(%arg0: i32) -> (i32, i32) {
    %c0_i32 = arith.constant 0 : i32
    %c0_i32_0 = arith.constant 0 : i32
    return %arg0, %c0_i32 : i32, i32
  }
}

module attributes {stable_mosaic.version = 11 : i64} {
  func.func @_mlp_residual_kernel(%arg0: i32, %arg1: memref<10x64xf32, #tpu.memory_space<vmem>>, %arg2: memref<1x64xf32, #tpu.memory_space<vmem>>, %arg3: memref<1x64xf32, #tpu.memory_space<vmem>>, %arg4: memref<64x256xbf16, #tpu.memory_space<vmem>>, %arg5: memref<1x256xf32, #tpu.memory_space<vmem>>, %arg6: memref<256x64xbf16, #tpu.memory_space<vmem>>, %arg7: memref<1x64xf32, #tpu.memory_space<vmem>>, %arg8: memref<10x64xf32, #tpu.memory_space<vmem>>) attributes {dimension_semantics = [#tpu.dimension_semantics<parallel>], iteration_bounds = array<i64: 1>, scalar_prefetch = 0 : i64, scratch_operands = 0 : i64, tpu.core_type = #tpu.core_type<tc>, window_params = [{transform_indices = @transform_0, window_bounds = array<i64: 10, 64>}, {pipeline_mode = #tpu.pipeline_mode<synchronous>, transform_indices = @transform_1, window_bounds = array<i64: 1, 64>}, {pipeline_mode = #tpu.pipeline_mode<synchronous>, transform_indices = @transform_2, window_bounds = array<i64: 1, 64>}, {pipeline_mode = #tpu.pipeline_mode<synchronous>, transform_indices = @transform_3, window_bounds = array<i64: 64, 256>}, {pipeline_mode = #tpu.pipeline_mode<synchronous>, transform_indices = @transform_4, window_bounds = array<i64: 1, 256>}, {pipeline_mode = #tpu.pipeline_mode<synchronous>, transform_indices = @transform_5, window_bounds = array<i64: 256, 64>}, {pipeline_mode = #tpu.pipeline_mode<synchronous>, transform_indices = @transform_6, window_bounds = array<i64: 1, 64>}, {transform_indices = @transform_7, window_bounds = array<i64: 10, 64>}]} {
    %c0 = arith.constant 0 : index
    %c0_0 = arith.constant 0 : index
    %0 = vector.load %arg1[%c0, %c0_0] : memref<10x64xf32, #tpu.memory_space<vmem>>, vector<10x64xf32>
    %c0_1 = arith.constant 0 : index
    %c0_2 = arith.constant 0 : index
    %1 = vector.load %arg2[%c0_1, %c0_2] : memref<1x64xf32, #tpu.memory_space<vmem>>, vector<1x64xf32>
    %c0_3 = arith.constant 0 : index
    %c0_4 = arith.constant 0 : index
    %2 = vector.load %arg3[%c0_3, %c0_4] : memref<1x64xf32, #tpu.memory_space<vmem>>, vector<1x64xf32>
    %cst = arith.constant dense<0.000000e+00> : vector<10xf32>
    %3 = vector.multi_reduction <add>, %0, %cst [1] : vector<10x64xf32> to vector<10xf32>
    %4 = vector.shape_cast %3 : vector<10xf32> to vector<10x1xf32>
    %cst_5 = arith.constant 6.400000e+01 : f32
    %5 = vector.broadcast %cst_5 : f32 to vector<10x1xf32>
    %6 = arith.divf %4, %5 : vector<10x1xf32>
    %7 = vector.broadcast %6 : vector<10x1xf32> to vector<10x64xf32>
    %8 = arith.subf %0, %7 : vector<10x64xf32>
    %9 = arith.mulf %8, %8 : vector<10x64xf32>
    %cst_6 = arith.constant dense<0.000000e+00> : vector<10xf32>
    %10 = vector.multi_reduction <add>, %9, %cst_6 [1] : vector<10x64xf32> to vector<10xf32>
    %11 = vector.shape_cast %10 : vector<10xf32> to vector<10x1xf32>
    %cst_7 = arith.constant 6.400000e+01 : f32
    %12 = vector.broadcast %cst_7 : f32 to vector<10x1xf32>
    %13 = arith.divf %11, %12 : vector<10x1xf32>
    %cst_8 = arith.constant 9.99999974E-6 : f32
    %14 = vector.broadcast %cst_8 : f32 to vector<10x1xf32>
    %15 = arith.addf %13, %14 : vector<10x1xf32>
    %16 = math.rsqrt %15 : vector<10x1xf32>
    %17 = vector.broadcast %16 : vector<10x1xf32> to vector<10x64xf32>
    %18 = arith.mulf %8, %17 : vector<10x64xf32>
    %19 = vector.broadcast %1 : vector<1x64xf32> to vector<10x64xf32>
    %20 = arith.mulf %18, %19 : vector<10x64xf32>
    %21 = vector.broadcast %2 : vector<1x64xf32> to vector<10x64xf32>
    %22 = arith.addf %20, %21 : vector<10x64xf32>
    %23 = arith.truncf %22 : vector<10x64xf32> to vector<10x64xbf16>
    %c0_9 = arith.constant 0 : index
    %c0_10 = arith.constant 0 : index
    %24 = vector.load %arg4[%c0_9, %c0_10] : memref<64x256xbf16, #tpu.memory_space<vmem>>, vector<64x256xbf16>
    %cst_11 = arith.constant dense<0.000000e+00> : vector<10x256xf32>
    %25 = tpu.matmul %23, %24, %cst_11 {dimension_numbers = #tpu.dot_dimension_numbers<[1], [0], [0], [1], [0, 0, 1, 1], [], []>} : vector<10x64xbf16>, vector<64x256xbf16>, vector<10x256xf32> -> vector<10x256xf32>
    %c0_12 = arith.constant 0 : index
    %c0_13 = arith.constant 0 : index
    %26 = vector.load %arg5[%c0_12, %c0_13] : memref<1x256xf32, #tpu.memory_space<vmem>>, vector<1x256xf32>
    %27 = vector.broadcast %26 : vector<1x256xf32> to vector<10x256xf32>
    %28 = arith.addf %25, %27 : vector<10x256xf32>
    %cst_14 = arith.constant 5.000000e-01 : f32
    %29 = vector.broadcast %cst_14 : f32 to vector<10x256xf32>
    %30 = arith.mulf %29, %28 : vector<10x256xf32>
    %cst_15 = arith.constant 4.471500e-02 : f32
    %31 = vector.broadcast %cst_15 : f32 to vector<10x256xf32>
    %32 = arith.mulf %31, %28 : vector<10x256xf32>
    %33 = arith.mulf %32, %28 : vector<10x256xf32>
    %34 = arith.mulf %33, %28 : vector<10x256xf32>
    %35 = arith.addf %28, %34 : vector<10x256xf32>
    %cst_16 = arith.constant 0.797884583 : f32
    %36 = vector.broadcast %cst_16 : f32 to vector<10x256xf32>
    %37 = arith.mulf %36, %35 : vector<10x256xf32>
    %38 = math.tanh %37 : vector<10x256xf32>
    %cst_17 = arith.constant 1.000000e+00 : f32
    %39 = vector.broadcast %cst_17 : f32 to vector<10x256xf32>
    %40 = arith.addf %39, %38 : vector<10x256xf32>
    %41 = arith.mulf %30, %40 : vector<10x256xf32>
    %42 = arith.truncf %41 : vector<10x256xf32> to vector<10x256xbf16>
    %c0_18 = arith.constant 0 : index
    %c0_19 = arith.constant 0 : index
    %43 = vector.load %arg6[%c0_18, %c0_19] : memref<256x64xbf16, #tpu.memory_space<vmem>>, vector<256x64xbf16>
    %cst_20 = arith.constant dense<0.000000e+00> : vector<10x64xf32>
    %44 = tpu.matmul %42, %43, %cst_20 {dimension_numbers = #tpu.dot_dimension_numbers<[1], [0], [0], [1], [0, 0, 1, 1], [], []>} : vector<10x256xbf16>, vector<256x64xbf16>, vector<10x64xf32> -> vector<10x64xf32>
    %c0_21 = arith.constant 0 : index
    %c0_22 = arith.constant 0 : index
    %45 = vector.load %arg7[%c0_21, %c0_22] : memref<1x64xf32, #tpu.memory_space<vmem>>, vector<1x64xf32>
    %46 = vector.broadcast %45 : vector<1x64xf32> to vector<10x64xf32>
    %47 = arith.addf %44, %46 : vector<10x64xf32>
    %48 = arith.addf %0, %47 : vector<10x64xf32>
    %c0_23 = arith.constant 0 : index
    %c0_24 = arith.constant 0 : index
    %49 = vector.load %arg8[%c0_23, %c0_24] : memref<10x64xf32, #tpu.memory_space<vmem>>, vector<10x64xf32>
    tpu.vector_store %arg8[%c0_23, %c0_24], %48 {strides = array<i32>} : memref<10x64xf32, #tpu.memory_space<vmem>>, vector<10x64xf32>,
    return
  }
  func.func @transform_0(%arg0: i32) -> (i32, i32) {
    %c0_i32 = arith.constant 0 : i32
    %c0_i32_0 = arith.constant 0 : i32
    return %arg0, %c0_i32 : i32, i32
  }
  func.func @transform_1(%arg0: i32) -> (i32, i32) {
    %c0_i32 = arith.constant 0 : i32
    %c0_i32_0 = arith.constant 0 : i32
    %c0_i32_1 = arith.constant 0 : i32
    return %c0_i32, %c0_i32_0 : i32, i32
  }
  func.func @transform_2(%arg0: i32) -> (i32, i32) {
    %c0_i32 = arith.constant 0 : i32
    %c0_i32_0 = arith.constant 0 : i32
    %c0_i32_1 = arith.constant 0 : i32
    return %c0_i32, %c0_i32_0 : i32, i32
  }
  func.func @transform_3(%arg0: i32) -> (i32, i32) {
    %c0_i32 = arith.constant 0 : i32
    %c0_i32_0 = arith.constant 0 : i32
    %c0_i32_1 = arith.constant 0 : i32
    return %c0_i32, %c0_i32_0 : i32, i32
  }
  func.func @transform_4(%arg0: i32) -> (i32, i32) {
    %c0_i32 = arith.constant 0 : i32
    %c0_i32_0 = arith.constant 0 : i32
    %c0_i32_1 = arith.constant 0 : i32
    return %c0_i32, %c0_i32_0 : i32, i32
  }
  func.func @transform_5(%arg0: i32) -> (i32, i32) {
    %c0_i32 = arith.constant 0 : i32
    %c0_i32_0 = arith.constant 0 : i32
    %c0_i32_1 = arith.constant 0 : i32
    return %c0_i32, %c0_i32_0 : i32, i32
  }
  func.func @transform_6(%arg0: i32) -> (i32, i32) {
    %c0_i32 = arith.constant 0 : i32
    %c0_i32_0 = arith.constant 0 : i32
    %c0_i32_1 = arith.constant 0 : i32
    return %c0_i32, %c0_i32_0 : i32, i32
  }
  func.func @transform_7(%arg0: i32) -> (i32, i32) {
    %c0_i32 = arith.constant 0 : i32
    %c0_i32_0 = arith.constant 0 : i32
    return %arg0, %c0_i32 : i32, i32
  }
}

module attributes {stable_mosaic.version = 11 : i64} {
  func.func @_ln_qkv_kernel(%arg0: i32, %arg1: memref<16x64xf32, #tpu.memory_space<vmem>>, %arg2: memref<1x64xf32, #tpu.memory_space<vmem>>, %arg3: memref<1x64xf32, #tpu.memory_space<vmem>>, %arg4: memref<64x64xbf16, #tpu.memory_space<vmem>>, %arg5: memref<64x64xbf16, #tpu.memory_space<vmem>>, %arg6: memref<64x64xbf16, #tpu.memory_space<vmem>>, %arg7: memref<1x64xf32, #tpu.memory_space<vmem>>, %arg8: memref<1x64xf32, #tpu.memory_space<vmem>>, %arg9: memref<1x64xf32, #tpu.memory_space<vmem>>, %arg10: memref<16x64xf32, #tpu.memory_space<vmem>>, %arg11: memref<16x64xf32, #tpu.memory_space<vmem>>, %arg12: memref<16x64xf32, #tpu.memory_space<vmem>>) attributes {dimension_semantics = [#tpu.dimension_semantics<parallel>], iteration_bounds = array<i64: 1>, scalar_prefetch = 0 : i64, scratch_operands = 0 : i64, tpu.core_type = #tpu.core_type<tc>, window_params = [{transform_indices = @transform_0, window_bounds = array<i64: 16, 64>}, {pipeline_mode = #tpu.pipeline_mode<synchronous>, transform_indices = @transform_1, window_bounds = array<i64: 1, 64>}, {pipeline_mode = #tpu.pipeline_mode<synchronous>, transform_indices = @transform_2, window_bounds = array<i64: 1, 64>}, {pipeline_mode = #tpu.pipeline_mode<synchronous>, transform_indices = @transform_3, window_bounds = array<i64: 64, 64>}, {pipeline_mode = #tpu.pipeline_mode<synchronous>, transform_indices = @transform_4, window_bounds = array<i64: 64, 64>}, {pipeline_mode = #tpu.pipeline_mode<synchronous>, transform_indices = @transform_5, window_bounds = array<i64: 64, 64>}, {pipeline_mode = #tpu.pipeline_mode<synchronous>, transform_indices = @transform_6, window_bounds = array<i64: 1, 64>}, {pipeline_mode = #tpu.pipeline_mode<synchronous>, transform_indices = @transform_7, window_bounds = array<i64: 1, 64>}, {pipeline_mode = #tpu.pipeline_mode<synchronous>, transform_indices = @transform_8, window_bounds = array<i64: 1, 64>}, {transform_indices = @transform_9, window_bounds = array<i64: 16, 64>}, {transform_indices = @transform_10, window_bounds = array<i64: 16, 64>}, {transform_indices = @transform_11, window_bounds = array<i64: 16, 64>}]} {
    %c0 = arith.constant 0 : index
    %c0_0 = arith.constant 0 : index
    %0 = vector.load %arg1[%c0, %c0_0] : memref<16x64xf32, #tpu.memory_space<vmem>>, vector<16x64xf32>
    %c0_1 = arith.constant 0 : index
    %c0_2 = arith.constant 0 : index
    %1 = vector.load %arg2[%c0_1, %c0_2] : memref<1x64xf32, #tpu.memory_space<vmem>>, vector<1x64xf32>
    %c0_3 = arith.constant 0 : index
    %c0_4 = arith.constant 0 : index
    %2 = vector.load %arg3[%c0_3, %c0_4] : memref<1x64xf32, #tpu.memory_space<vmem>>, vector<1x64xf32>
    %cst = arith.constant dense<0.000000e+00> : vector<16xf32>
    %3 = vector.multi_reduction <add>, %0, %cst [1] : vector<16x64xf32> to vector<16xf32>
    %4 = vector.shape_cast %3 : vector<16xf32> to vector<16x1xf32>
    %cst_5 = arith.constant 6.400000e+01 : f32
    %5 = vector.broadcast %cst_5 : f32 to vector<16x1xf32>
    %6 = arith.divf %4, %5 : vector<16x1xf32>
    %7 = vector.broadcast %6 : vector<16x1xf32> to vector<16x64xf32>
    %8 = arith.subf %0, %7 : vector<16x64xf32>
    %9 = arith.mulf %8, %8 : vector<16x64xf32>
    %cst_6 = arith.constant dense<0.000000e+00> : vector<16xf32>
    %10 = vector.multi_reduction <add>, %9, %cst_6 [1] : vector<16x64xf32> to vector<16xf32>
    %11 = vector.shape_cast %10 : vector<16xf32> to vector<16x1xf32>
    %cst_7 = arith.constant 6.400000e+01 : f32
    %12 = vector.broadcast %cst_7 : f32 to vector<16x1xf32>
    %13 = arith.divf %11, %12 : vector<16x1xf32>
    %cst_8 = arith.constant 9.99999974E-6 : f32
    %14 = vector.broadcast %cst_8 : f32 to vector<16x1xf32>
    %15 = arith.addf %13, %14 : vector<16x1xf32>
    %16 = math.rsqrt %15 : vector<16x1xf32>
    %17 = vector.broadcast %16 : vector<16x1xf32> to vector<16x64xf32>
    %18 = arith.mulf %8, %17 : vector<16x64xf32>
    %19 = vector.broadcast %1 : vector<1x64xf32> to vector<16x64xf32>
    %20 = arith.mulf %18, %19 : vector<16x64xf32>
    %21 = vector.broadcast %2 : vector<1x64xf32> to vector<16x64xf32>
    %22 = arith.addf %20, %21 : vector<16x64xf32>
    %23 = arith.truncf %22 : vector<16x64xf32> to vector<16x64xbf16>
    %c0_9 = arith.constant 0 : index
    %c0_10 = arith.constant 0 : index
    %24 = vector.load %arg4[%c0_9, %c0_10] : memref<64x64xbf16, #tpu.memory_space<vmem>>, vector<64x64xbf16>
    %cst_11 = arith.constant dense<0.000000e+00> : vector<16x64xf32>
    %25 = tpu.matmul %23, %24, %cst_11 {dimension_numbers = #tpu.dot_dimension_numbers<[1], [0], [0], [1], [0, 0, 1, 1], [], []>} : vector<16x64xbf16>, vector<64x64xbf16>, vector<16x64xf32> -> vector<16x64xf32>
    %c0_12 = arith.constant 0 : index
    %c0_13 = arith.constant 0 : index
    %26 = vector.load %arg7[%c0_12, %c0_13] : memref<1x64xf32, #tpu.memory_space<vmem>>, vector<1x64xf32>
    %27 = vector.broadcast %26 : vector<1x64xf32> to vector<16x64xf32>
    %28 = arith.addf %25, %27 : vector<16x64xf32>
    %c0_14 = arith.constant 0 : index
    %c0_15 = arith.constant 0 : index
    %29 = vector.load %arg10[%c0_14, %c0_15] : memref<16x64xf32, #tpu.memory_space<vmem>>, vector<16x64xf32>
    tpu.vector_store %arg10[%c0_14, %c0_15], %28 {strides = array<i32>} : memref<16x64xf32, #tpu.memory_space<vmem>>, vector<16x64xf32>,
    %c0_16 = arith.constant 0 : index
    %c0_17 = arith.constant 0 : index
    %30 = vector.load %arg5[%c0_16, %c0_17] : memref<64x64xbf16, #tpu.memory_space<vmem>>, vector<64x64xbf16>
    %cst_18 = arith.constant dense<0.000000e+00> : vector<16x64xf32>
    %31 = tpu.matmul %23, %30, %cst_18 {dimension_numbers = #tpu.dot_dimension_numbers<[1], [0], [0], [1], [0, 0, 1, 1], [], []>} : vector<16x64xbf16>, vector<64x64xbf16>, vector<16x64xf32> -> vector<16x64xf32>
    %c0_19 = arith.constant 0 : index
    %c0_20 = arith.constant 0 : index
    %32 = vector.load %arg8[%c0_19, %c0_20] : memref<1x64xf32, #tpu.memory_space<vmem>>, vector<1x64xf32>
    %33 = vector.broadcast %32 : vector<1x64xf32> to vector<16x64xf32>
    %34 = arith.addf %31, %33 : vector<16x64xf32>
    %c0_21 = arith.constant 0 : index
    %c0_22 = arith.constant 0 : index
    %35 = vector.load %arg11[%c0_21, %c0_22] : memref<16x64xf32, #tpu.memory_space<vmem>>, vector<16x64xf32>
    tpu.vector_store %arg11[%c0_21, %c0_22], %34 {strides = array<i32>} : memref<16x64xf32, #tpu.memory_space<vmem>>, vector<16x64xf32>,
    %c0_23 = arith.constant 0 : index
    %c0_24 = arith.constant 0 : index
    %36 = vector.load %arg6[%c0_23, %c0_24] : memref<64x64xbf16, #tpu.memory_space<vmem>>, vector<64x64xbf16>
    %cst_25 = arith.constant dense<0.000000e+00> : vector<16x64xf32>
    %37 = tpu.matmul %23, %36, %cst_25 {dimension_numbers = #tpu.dot_dimension_numbers<[1], [0], [0], [1], [0, 0, 1, 1], [], []>} : vector<16x64xbf16>, vector<64x64xbf16>, vector<16x64xf32> -> vector<16x64xf32>
    %c0_26 = arith.constant 0 : index
    %c0_27 = arith.constant 0 : index
    %38 = vector.load %arg9[%c0_26, %c0_27] : memref<1x64xf32, #tpu.memory_space<vmem>>, vector<1x64xf32>
    %39 = vector.broadcast %38 : vector<1x64xf32> to vector<16x64xf32>
    %40 = arith.addf %37, %39 : vector<16x64xf32>
    %c0_28 = arith.constant 0 : index
    %c0_29 = arith.constant 0 : index
    %41 = vector.load %arg12[%c0_28, %c0_29] : memref<16x64xf32, #tpu.memory_space<vmem>>, vector<16x64xf32>
    tpu.vector_store %arg12[%c0_28, %c0_29], %40 {strides = array<i32>} : memref<16x64xf32, #tpu.memory_space<vmem>>, vector<16x64xf32>,
    return
  }
  func.func @transform_0(%arg0: i32) -> (i32, i32) {
    %c0_i32 = arith.constant 0 : i32
    %c0_i32_0 = arith.constant 0 : i32
    return %arg0, %c0_i32 : i32, i32
  }
  func.func @transform_1(%arg0: i32) -> (i32, i32) {
    %c0_i32 = arith.constant 0 : i32
    %c0_i32_0 = arith.constant 0 : i32
    %c0_i32_1 = arith.constant 0 : i32
    return %c0_i32, %c0_i32_0 : i32, i32
  }
  func.func @transform_2(%arg0: i32) -> (i32, i32) {
    %c0_i32 = arith.constant 0 : i32
    %c0_i32_0 = arith.constant 0 : i32
    %c0_i32_1 = arith.constant 0 : i32
    return %c0_i32, %c0_i32_0 : i32, i32
  }
  func.func @transform_3(%arg0: i32) -> (i32, i32) {
    %c0_i32 = arith.constant 0 : i32
    %c0_i32_0 = arith.constant 0 : i32
    %c0_i32_1 = arith.constant 0 : i32
    return %c0_i32, %c0_i32_0 : i32, i32
  }
  func.func @transform_4(%arg0: i32) -> (i32, i32) {
    %c0_i32 = arith.constant 0 : i32
    %c0_i32_0 = arith.constant 0 : i32
    %c0_i32_1 = arith.constant 0 : i32
    return %c0_i32, %c0_i32_0 : i32, i32
  }
  func.func @transform_5(%arg0: i32) -> (i32, i32) {
    %c0_i32 = arith.constant 0 : i32
    %c0_i32_0 = arith.constant 0 : i32
    %c0_i32_1 = arith.constant 0 : i32
    return %c0_i32, %c0_i32_0 : i32, i32
  }
  func.func @transform_6(%arg0: i32) -> (i32, i32) {
    %c0_i32 = arith.constant 0 : i32
    %c0_i32_0 = arith.constant 0 : i32
    %c0_i32_1 = arith.constant 0 : i32
    return %c0_i32, %c0_i32_0 : i32, i32
  }
  func.func @transform_7(%arg0: i32) -> (i32, i32) {
    %c0_i32 = arith.constant 0 : i32
    %c0_i32_0 = arith.constant 0 : i32
    %c0_i32_1 = arith.constant 0 : i32
    return %c0_i32, %c0_i32_0 : i32, i32
  }
  func.func @transform_8(%arg0: i32) -> (i32, i32) {
    %c0_i32 = arith.constant 0 : i32
    %c0_i32_0 = arith.constant 0 : i32
    %c0_i32_1 = arith.constant 0 : i32
    return %c0_i32, %c0_i32_0 : i32, i32
  }
  func.func @transform_9(%arg0: i32) -> (i32, i32) {
    %c0_i32 = arith.constant 0 : i32
    %c0_i32_0 = arith.constant 0 : i32
    return %arg0, %c0_i32 : i32, i32
  }
  func.func @transform_10(%arg0: i32) -> (i32, i32) {
    %c0_i32 = arith.constant 0 : i32
    %c0_i32_0 = arith.constant 0 : i32
    return %arg0, %c0_i32 : i32, i32
  }
  func.func @transform_11(%arg0: i32) -> (i32, i32) {
    %c0_i32 = arith.constant 0 : i32
    %c0_i32_0 = arith.constant 0 : i32
    return %arg0, %c0_i32 : i32, i32
  }
}

module attributes {stable_mosaic.version = 11 : i64} {
  func.func @_ln_linear_kernel(%arg0: i32, %arg1: memref<8x64xf32, #tpu.memory_space<vmem>>, %arg2: memref<1x64xf32, #tpu.memory_space<vmem>>, %arg3: memref<1x64xf32, #tpu.memory_space<vmem>>, %arg4: memref<64x64xbf16, #tpu.memory_space<vmem>>, %arg5: memref<1x64xf32, #tpu.memory_space<vmem>>, %arg6: memref<8x64xf32, #tpu.memory_space<vmem>>) attributes {dimension_semantics = [#tpu.dimension_semantics<parallel>], iteration_bounds = array<i64: 1>, scalar_prefetch = 0 : i64, scratch_operands = 0 : i64, tpu.core_type = #tpu.core_type<tc>, window_params = [{transform_indices = @transform_0, window_bounds = array<i64: 8, 64>}, {pipeline_mode = #tpu.pipeline_mode<synchronous>, transform_indices = @transform_1, window_bounds = array<i64: 1, 64>}, {pipeline_mode = #tpu.pipeline_mode<synchronous>, transform_indices = @transform_2, window_bounds = array<i64: 1, 64>}, {pipeline_mode = #tpu.pipeline_mode<synchronous>, transform_indices = @transform_3, window_bounds = array<i64: 64, 64>}, {pipeline_mode = #tpu.pipeline_mode<synchronous>, transform_indices = @transform_4, window_bounds = array<i64: 1, 64>}, {transform_indices = @transform_5, window_bounds = array<i64: 8, 64>}]} {
    %c0 = arith.constant 0 : index
    %c0_0 = arith.constant 0 : index
    %0 = vector.load %arg1[%c0, %c0_0] : memref<8x64xf32, #tpu.memory_space<vmem>>, vector<8x64xf32>
    %c0_1 = arith.constant 0 : index
    %c0_2 = arith.constant 0 : index
    %1 = vector.load %arg2[%c0_1, %c0_2] : memref<1x64xf32, #tpu.memory_space<vmem>>, vector<1x64xf32>
    %c0_3 = arith.constant 0 : index
    %c0_4 = arith.constant 0 : index
    %2 = vector.load %arg3[%c0_3, %c0_4] : memref<1x64xf32, #tpu.memory_space<vmem>>, vector<1x64xf32>
    %cst = arith.constant dense<0.000000e+00> : vector<8xf32>
    %3 = vector.multi_reduction <add>, %0, %cst [1] : vector<8x64xf32> to vector<8xf32>
    %4 = vector.shape_cast %3 : vector<8xf32> to vector<8x1xf32>
    %cst_5 = arith.constant 6.400000e+01 : f32
    %5 = vector.broadcast %cst_5 : f32 to vector<8x1xf32>
    %6 = arith.divf %4, %5 : vector<8x1xf32>
    %7 = vector.broadcast %6 : vector<8x1xf32> to vector<8x64xf32>
    %8 = arith.subf %0, %7 : vector<8x64xf32>
    %9 = arith.mulf %8, %8 : vector<8x64xf32>
    %cst_6 = arith.constant dense<0.000000e+00> : vector<8xf32>
    %10 = vector.multi_reduction <add>, %9, %cst_6 [1] : vector<8x64xf32> to vector<8xf32>
    %11 = vector.shape_cast %10 : vector<8xf32> to vector<8x1xf32>
    %cst_7 = arith.constant 6.400000e+01 : f32
    %12 = vector.broadcast %cst_7 : f32 to vector<8x1xf32>
    %13 = arith.divf %11, %12 : vector<8x1xf32>
    %cst_8 = arith.constant 9.99999974E-6 : f32
    %14 = vector.broadcast %cst_8 : f32 to vector<8x1xf32>
    %15 = arith.addf %13, %14 : vector<8x1xf32>
    %16 = math.rsqrt %15 : vector<8x1xf32>
    %17 = vector.broadcast %16 : vector<8x1xf32> to vector<8x64xf32>
    %18 = arith.mulf %8, %17 : vector<8x64xf32>
    %19 = vector.broadcast %1 : vector<1x64xf32> to vector<8x64xf32>
    %20 = arith.mulf %18, %19 : vector<8x64xf32>
    %21 = vector.broadcast %2 : vector<1x64xf32> to vector<8x64xf32>
    %22 = arith.addf %20, %21 : vector<8x64xf32>
    %23 = arith.truncf %22 : vector<8x64xf32> to vector<8x64xbf16>
    %c0_9 = arith.constant 0 : index
    %c0_10 = arith.constant 0 : index
    %24 = vector.load %arg4[%c0_9, %c0_10] : memref<64x64xbf16, #tpu.memory_space<vmem>>, vector<64x64xbf16>
    %cst_11 = arith.constant dense<0.000000e+00> : vector<8x64xf32>
    %25 = tpu.matmul %23, %24, %cst_11 {dimension_numbers = #tpu.dot_dimension_numbers<[1], [0], [0], [1], [0, 0, 1, 1], [], []>} : vector<8x64xbf16>, vector<64x64xbf16>, vector<8x64xf32> -> vector<8x64xf32>
    %c0_12 = arith.constant 0 : index
    %c0_13 = arith.constant 0 : index
    %26 = vector.load %arg5[%c0_12, %c0_13] : memref<1x64xf32, #tpu.memory_space<vmem>>, vector<1x64xf32>
    %27 = vector.broadcast %26 : vector<1x64xf32> to vector<8x64xf32>
    %28 = arith.addf %25, %27 : vector<8x64xf32>
    %c0_14 = arith.constant 0 : index
    %c0_15 = arith.constant 0 : index
    %29 = vector.load %arg6[%c0_14, %c0_15] : memref<8x64xf32, #tpu.memory_space<vmem>>, vector<8x64xf32>
    tpu.vector_store %arg6[%c0_14, %c0_15], %28 {strides = array<i32>} : memref<8x64xf32, #tpu.memory_space<vmem>>, vector<8x64xf32>,
    return
  }
  func.func @transform_0(%arg0: i32) -> (i32, i32) {
    %c0_i32 = arith.constant 0 : i32
    %c0_i32_0 = arith.constant 0 : i32
    return %arg0, %c0_i32 : i32, i32
  }
  func.func @transform_1(%arg0: i32) -> (i32, i32) {
    %c0_i32 = arith.constant 0 : i32
    %c0_i32_0 = arith.constant 0 : i32
    %c0_i32_1 = arith.constant 0 : i32
    return %c0_i32, %c0_i32_0 : i32, i32
  }
  func.func @transform_2(%arg0: i32) -> (i32, i32) {
    %c0_i32 = arith.constant 0 : i32
    %c0_i32_0 = arith.constant 0 : i32
    %c0_i32_1 = arith.constant 0 : i32
    return %c0_i32, %c0_i32_0 : i32, i32
  }
  func.func @transform_3(%arg0: i32) -> (i32, i32) {
    %c0_i32 = arith.constant 0 : i32
    %c0_i32_0 = arith.constant 0 : i32
    %c0_i32_1 = arith.constant 0 : i32
    return %c0_i32, %c0_i32_0 : i32, i32
  }
  func.func @transform_4(%arg0: i32) -> (i32, i32) {
    %c0_i32 = arith.constant 0 : i32
    %c0_i32_0 = arith.constant 0 : i32
    %c0_i32_1 = arith.constant 0 : i32
    return %c0_i32, %c0_i32_0 : i32, i32
  }
  func.func @transform_5(%arg0: i32) -> (i32, i32) {
    %c0_i32 = arith.constant 0 : i32
    %c0_i32_0 = arith.constant 0 : i32
    return %arg0, %c0_i32 : i32, i32
  }
}

module attributes {stable_mosaic.version = 11 : i64} {
  func.func @_attn_kernel(%arg0: i32, %arg1: memref<1x8x64xf32, #tpu.memory_space<vmem>>, %arg2: memref<1x8x64xf32, #tpu.memory_space<vmem>>, %arg3: memref<1x8x64xf32, #tpu.memory_space<vmem>>, %arg4: memref<1x8x64xf32, #tpu.memory_space<vmem>>) attributes {dimension_semantics = [#tpu.dimension_semantics<parallel>], iteration_bounds = array<i64: 2>, scalar_prefetch = 0 : i64, scratch_operands = 0 : i64, tpu.core_type = #tpu.core_type<tc>, window_params = [{transform_indices = @transform_0, window_bounds = array<i64: 1, 8, 64>}, {transform_indices = @transform_1, window_bounds = array<i64: 1, 8, 64>}, {transform_indices = @transform_2, window_bounds = array<i64: 1, 8, 64>}, {transform_indices = @transform_3, window_bounds = array<i64: 1, 8, 64>}]} {
    %c0 = arith.constant 0 : index
    %c0_0 = arith.constant 0 : index
    %c0_1 = arith.constant 0 : index
    %0 = vector.load %arg1[%c0, %c0_0, %c0_1] : memref<1x8x64xf32, #tpu.memory_space<vmem>>, vector<1x8x64xf32>
    %1 = vector.shape_cast %0 : vector<1x8x64xf32> to vector<8x64xf32>
    %c0_2 = arith.constant 0 : index
    %c0_3 = arith.constant 0 : index
    %c0_4 = arith.constant 0 : index
    %2 = vector.load %arg2[%c0_2, %c0_3, %c0_4] : memref<1x8x64xf32, #tpu.memory_space<vmem>>, vector<1x8x64xf32>
    %3 = vector.shape_cast %2 : vector<1x8x64xf32> to vector<8x64xf32>
    %c0_5 = arith.constant 0 : index
    %c0_6 = arith.constant 0 : index
    %c0_7 = arith.constant 0 : index
    %4 = vector.load %arg3[%c0_5, %c0_6, %c0_7] : memref<1x8x64xf32, #tpu.memory_space<vmem>>, vector<1x8x64xf32>
    %5 = vector.shape_cast %4 : vector<1x8x64xf32> to vector<8x64xf32>
    %cst = arith.constant 1.250000e-01 : f32
    %6 = vector.broadcast %cst : f32 to vector<8x64xf32>
    %7 = arith.mulf %1, %6 : vector<8x64xf32>
    %8 = arith.truncf %7 : vector<8x64xf32> to vector<8x64xbf16>
    %9 = arith.truncf %3 : vector<8x64xf32> to vector<8x64xbf16>
    %10 = arith.truncf %5 : vector<8x64xf32> to vector<8x64xbf16>
    %cst_8 = arith.constant dense<0.000000e+00> : vector<8x8xf32>
    %11 = tpu.matmul %8, %9, %cst_8 {dimension_numbers = #tpu.dot_dimension_numbers<[1], [1], [0], [0], [0, 0, 1, 0], [], []>} : vector<8x64xbf16>, vector<8x64xbf16>, vector<8x8xf32> -> vector<8x8xf32>
    %cst_9 = arith.constant dense<0xFF800000> : vector<8xf32>
    %12 = vector.multi_reduction <maximumf>, %11, %cst_9 [1] : vector<8x8xf32> to vector<8xf32>
    %13 = vector.shape_cast %12 : vector<8xf32> to vector<8x1xf32>
    %14 = vector.broadcast %13 : vector<8x1xf32> to vector<8x8xf32>
    %15 = arith.subf %11, %14 : vector<8x8xf32>
    %16 = math.exp %15 : vector<8x8xf32>
    %cst_10 = arith.constant dense<0.000000e+00> : vector<8xf32>
    %17 = vector.multi_reduction <add>, %16, %cst_10 [1] : vector<8x8xf32> to vector<8xf32>
    %18 = vector.shape_cast %17 : vector<8xf32> to vector<8x1xf32>
    %19 = tpu.reciprocal %18 {approx = true} : vector<8x1xf32> -> vector<8x1xf32>
    %20 = vector.broadcast %19 : vector<8x1xf32> to vector<8x8xf32>
    %21 = arith.mulf %16, %20 : vector<8x8xf32>
    %22 = arith.truncf %21 : vector<8x8xf32> to vector<8x8xbf16>
    %cst_11 = arith.constant dense<0.000000e+00> : vector<8x64xf32>
    %23 = tpu.matmul %22, %10, %cst_11 {dimension_numbers = #tpu.dot_dimension_numbers<[1], [0], [0], [1], [0, 0, 1, 1], [], []>} : vector<8x8xbf16>, vector<8x64xbf16>, vector<8x64xf32> -> vector<8x64xf32>
    %c0_12 = arith.constant 0 : index
    %c0_13 = arith.constant 0 : index
    %c0_14 = arith.constant 0 : index
    %24 = vector.load %arg4[%c0_12, %c0_13, %c0_14] : memref<1x8x64xf32, #tpu.memory_space<vmem>>, vector<1x8x64xf32>
    %25 = vector.shape_cast %24 : vector<1x8x64xf32> to vector<8x64xf32>
    %26 = vector.shape_cast %23 : vector<8x64xf32> to vector<1x8x64xf32>
    tpu.vector_store %arg4[%c0_12, %c0_13, %c0_14], %26 {strides = array<i32>} : memref<1x8x64xf32, #tpu.memory_space<vmem>>, vector<1x8x64xf32>,
    return
  }
  func.func @transform_0(%arg0: i32) -> (i32, i32, i32) {
    %c0_i32 = arith.constant 0 : i32
    %c0_i32_0 = arith.constant 0 : i32
    %c0_i32_1 = arith.constant 0 : i32
    return %arg0, %c0_i32, %c0_i32_0 : i32, i32, i32
  }
  func.func @transform_1(%arg0: i32) -> (i32, i32, i32) {
    %c0_i32 = arith.constant 0 : i32
    %c0_i32_0 = arith.constant 0 : i32
    %c0_i32_1 = arith.constant 0 : i32
    return %arg0, %c0_i32, %c0_i32_0 : i32, i32, i32
  }
  func.func @transform_2(%arg0: i32) -> (i32, i32, i32) {
    %c0_i32 = arith.constant 0 : i32
    %c0_i32_0 = arith.constant 0 : i32
    %c0_i32_1 = arith.constant 0 : i32
    return %arg0, %c0_i32, %c0_i32_0 : i32, i32, i32
  }
  func.func @transform_3(%arg0: i32) -> (i32, i32, i32) {
    %c0_i32 = arith.constant 0 : i32
    %c0_i32_0 = arith.constant 0 : i32
    %c0_i32_1 = arith.constant 0 : i32
    return %arg0, %c0_i32, %c0_i32_0 : i32, i32, i32
  }
}

module attributes {stable_mosaic.version = 11 : i64} {
  func.func @_proj_residual_kernel(%arg0: i32, %arg1: memref<16x64xf32, #tpu.memory_space<vmem>>, %arg2: memref<16x64xf32, #tpu.memory_space<vmem>>, %arg3: memref<64x64xbf16, #tpu.memory_space<vmem>>, %arg4: memref<1x64xf32, #tpu.memory_space<vmem>>, %arg5: memref<16x64xf32, #tpu.memory_space<vmem>>) attributes {dimension_semantics = [#tpu.dimension_semantics<parallel>], iteration_bounds = array<i64: 1>, scalar_prefetch = 0 : i64, scratch_operands = 0 : i64, tpu.core_type = #tpu.core_type<tc>, window_params = [{transform_indices = @transform_0, window_bounds = array<i64: 16, 64>}, {transform_indices = @transform_1, window_bounds = array<i64: 16, 64>}, {pipeline_mode = #tpu.pipeline_mode<synchronous>, transform_indices = @transform_2, window_bounds = array<i64: 64, 64>}, {pipeline_mode = #tpu.pipeline_mode<synchronous>, transform_indices = @transform_3, window_bounds = array<i64: 1, 64>}, {transform_indices = @transform_4, window_bounds = array<i64: 16, 64>}]} {
    %c0 = arith.constant 0 : index
    %c0_0 = arith.constant 0 : index
    %0 = vector.load %arg2[%c0, %c0_0] : memref<16x64xf32, #tpu.memory_space<vmem>>, vector<16x64xf32>
    %1 = arith.truncf %0 : vector<16x64xf32> to vector<16x64xbf16>
    %c0_1 = arith.constant 0 : index
    %c0_2 = arith.constant 0 : index
    %2 = vector.load %arg3[%c0_1, %c0_2] : memref<64x64xbf16, #tpu.memory_space<vmem>>, vector<64x64xbf16>
    %cst = arith.constant dense<0.000000e+00> : vector<16x64xf32>
    %3 = tpu.matmul %1, %2, %cst {dimension_numbers = #tpu.dot_dimension_numbers<[1], [0], [0], [1], [0, 0, 1, 1], [], []>} : vector<16x64xbf16>, vector<64x64xbf16>, vector<16x64xf32> -> vector<16x64xf32>
    %c0_3 = arith.constant 0 : index
    %c0_4 = arith.constant 0 : index
    %4 = vector.load %arg4[%c0_3, %c0_4] : memref<1x64xf32, #tpu.memory_space<vmem>>, vector<1x64xf32>
    %5 = vector.broadcast %4 : vector<1x64xf32> to vector<16x64xf32>
    %6 = arith.addf %3, %5 : vector<16x64xf32>
    %c0_5 = arith.constant 0 : index
    %c0_6 = arith.constant 0 : index
    %7 = vector.load %arg1[%c0_5, %c0_6] : memref<16x64xf32, #tpu.memory_space<vmem>>, vector<16x64xf32>
    %8 = arith.addf %7, %6 : vector<16x64xf32>
    %c0_7 = arith.constant 0 : index
    %c0_8 = arith.constant 0 : index
    %9 = vector.load %arg5[%c0_7, %c0_8] : memref<16x64xf32, #tpu.memory_space<vmem>>, vector<16x64xf32>
    tpu.vector_store %arg5[%c0_7, %c0_8], %8 {strides = array<i32>} : memref<16x64xf32, #tpu.memory_space<vmem>>, vector<16x64xf32>,
    return
  }
  func.func @transform_0(%arg0: i32) -> (i32, i32) {
    %c0_i32 = arith.constant 0 : i32
    %c0_i32_0 = arith.constant 0 : i32
    return %arg0, %c0_i32 : i32, i32
  }
  func.func @transform_1(%arg0: i32) -> (i32, i32) {
    %c0_i32 = arith.constant 0 : i32
    %c0_i32_0 = arith.constant 0 : i32
    return %arg0, %c0_i32 : i32, i32
  }
  func.func @transform_2(%arg0: i32) -> (i32, i32) {
    %c0_i32 = arith.constant 0 : i32
    %c0_i32_0 = arith.constant 0 : i32
    %c0_i32_1 = arith.constant 0 : i32
    return %c0_i32, %c0_i32_0 : i32, i32
  }
  func.func @transform_3(%arg0: i32) -> (i32, i32) {
    %c0_i32 = arith.constant 0 : i32
    %c0_i32_0 = arith.constant 0 : i32
    %c0_i32_1 = arith.constant 0 : i32
    return %c0_i32, %c0_i32_0 : i32, i32
  }
  func.func @transform_4(%arg0: i32) -> (i32, i32) {
    %c0_i32 = arith.constant 0 : i32
    %c0_i32_0 = arith.constant 0 : i32
    return %arg0, %c0_i32 : i32, i32
  }
}

module attributes {stable_mosaic.version = 11 : i64} {
  func.func @_mlp_residual_kernel(%arg0: i32, %arg1: memref<16x64xf32, #tpu.memory_space<vmem>>, %arg2: memref<1x64xf32, #tpu.memory_space<vmem>>, %arg3: memref<1x64xf32, #tpu.memory_space<vmem>>, %arg4: memref<64x256xbf16, #tpu.memory_space<vmem>>, %arg5: memref<1x256xf32, #tpu.memory_space<vmem>>, %arg6: memref<256x64xbf16, #tpu.memory_space<vmem>>, %arg7: memref<1x64xf32, #tpu.memory_space<vmem>>, %arg8: memref<16x64xf32, #tpu.memory_space<vmem>>) attributes {dimension_semantics = [#tpu.dimension_semantics<parallel>], iteration_bounds = array<i64: 1>, scalar_prefetch = 0 : i64, scratch_operands = 0 : i64, tpu.core_type = #tpu.core_type<tc>, window_params = [{transform_indices = @transform_0, window_bounds = array<i64: 16, 64>}, {pipeline_mode = #tpu.pipeline_mode<synchronous>, transform_indices = @transform_1, window_bounds = array<i64: 1, 64>}, {pipeline_mode = #tpu.pipeline_mode<synchronous>, transform_indices = @transform_2, window_bounds = array<i64: 1, 64>}, {pipeline_mode = #tpu.pipeline_mode<synchronous>, transform_indices = @transform_3, window_bounds = array<i64: 64, 256>}, {pipeline_mode = #tpu.pipeline_mode<synchronous>, transform_indices = @transform_4, window_bounds = array<i64: 1, 256>}, {pipeline_mode = #tpu.pipeline_mode<synchronous>, transform_indices = @transform_5, window_bounds = array<i64: 256, 64>}, {pipeline_mode = #tpu.pipeline_mode<synchronous>, transform_indices = @transform_6, window_bounds = array<i64: 1, 64>}, {transform_indices = @transform_7, window_bounds = array<i64: 16, 64>}]} {
    %c0 = arith.constant 0 : index
    %c0_0 = arith.constant 0 : index
    %0 = vector.load %arg1[%c0, %c0_0] : memref<16x64xf32, #tpu.memory_space<vmem>>, vector<16x64xf32>
    %c0_1 = arith.constant 0 : index
    %c0_2 = arith.constant 0 : index
    %1 = vector.load %arg2[%c0_1, %c0_2] : memref<1x64xf32, #tpu.memory_space<vmem>>, vector<1x64xf32>
    %c0_3 = arith.constant 0 : index
    %c0_4 = arith.constant 0 : index
    %2 = vector.load %arg3[%c0_3, %c0_4] : memref<1x64xf32, #tpu.memory_space<vmem>>, vector<1x64xf32>
    %cst = arith.constant dense<0.000000e+00> : vector<16xf32>
    %3 = vector.multi_reduction <add>, %0, %cst [1] : vector<16x64xf32> to vector<16xf32>
    %4 = vector.shape_cast %3 : vector<16xf32> to vector<16x1xf32>
    %cst_5 = arith.constant 6.400000e+01 : f32
    %5 = vector.broadcast %cst_5 : f32 to vector<16x1xf32>
    %6 = arith.divf %4, %5 : vector<16x1xf32>
    %7 = vector.broadcast %6 : vector<16x1xf32> to vector<16x64xf32>
    %8 = arith.subf %0, %7 : vector<16x64xf32>
    %9 = arith.mulf %8, %8 : vector<16x64xf32>
    %cst_6 = arith.constant dense<0.000000e+00> : vector<16xf32>
    %10 = vector.multi_reduction <add>, %9, %cst_6 [1] : vector<16x64xf32> to vector<16xf32>
    %11 = vector.shape_cast %10 : vector<16xf32> to vector<16x1xf32>
    %cst_7 = arith.constant 6.400000e+01 : f32
    %12 = vector.broadcast %cst_7 : f32 to vector<16x1xf32>
    %13 = arith.divf %11, %12 : vector<16x1xf32>
    %cst_8 = arith.constant 9.99999974E-6 : f32
    %14 = vector.broadcast %cst_8 : f32 to vector<16x1xf32>
    %15 = arith.addf %13, %14 : vector<16x1xf32>
    %16 = math.rsqrt %15 : vector<16x1xf32>
    %17 = vector.broadcast %16 : vector<16x1xf32> to vector<16x64xf32>
    %18 = arith.mulf %8, %17 : vector<16x64xf32>
    %19 = vector.broadcast %1 : vector<1x64xf32> to vector<16x64xf32>
    %20 = arith.mulf %18, %19 : vector<16x64xf32>
    %21 = vector.broadcast %2 : vector<1x64xf32> to vector<16x64xf32>
    %22 = arith.addf %20, %21 : vector<16x64xf32>
    %23 = arith.truncf %22 : vector<16x64xf32> to vector<16x64xbf16>
    %c0_9 = arith.constant 0 : index
    %c0_10 = arith.constant 0 : index
    %24 = vector.load %arg4[%c0_9, %c0_10] : memref<64x256xbf16, #tpu.memory_space<vmem>>, vector<64x256xbf16>
    %cst_11 = arith.constant dense<0.000000e+00> : vector<16x256xf32>
    %25 = tpu.matmul %23, %24, %cst_11 {dimension_numbers = #tpu.dot_dimension_numbers<[1], [0], [0], [1], [0, 0, 1, 1], [], []>} : vector<16x64xbf16>, vector<64x256xbf16>, vector<16x256xf32> -> vector<16x256xf32>
    %c0_12 = arith.constant 0 : index
    %c0_13 = arith.constant 0 : index
    %26 = vector.load %arg5[%c0_12, %c0_13] : memref<1x256xf32, #tpu.memory_space<vmem>>, vector<1x256xf32>
    %27 = vector.broadcast %26 : vector<1x256xf32> to vector<16x256xf32>
    %28 = arith.addf %25, %27 : vector<16x256xf32>
    %cst_14 = arith.constant 5.000000e-01 : f32
    %29 = vector.broadcast %cst_14 : f32 to vector<16x256xf32>
    %30 = arith.mulf %29, %28 : vector<16x256xf32>
    %cst_15 = arith.constant 4.471500e-02 : f32
    %31 = vector.broadcast %cst_15 : f32 to vector<16x256xf32>
    %32 = arith.mulf %31, %28 : vector<16x256xf32>
    %33 = arith.mulf %32, %28 : vector<16x256xf32>
    %34 = arith.mulf %33, %28 : vector<16x256xf32>
    %35 = arith.addf %28, %34 : vector<16x256xf32>
    %cst_16 = arith.constant 0.797884583 : f32
    %36 = vector.broadcast %cst_16 : f32 to vector<16x256xf32>
    %37 = arith.mulf %36, %35 : vector<16x256xf32>
    %38 = math.tanh %37 : vector<16x256xf32>
    %cst_17 = arith.constant 1.000000e+00 : f32
    %39 = vector.broadcast %cst_17 : f32 to vector<16x256xf32>
    %40 = arith.addf %39, %38 : vector<16x256xf32>
    %41 = arith.mulf %30, %40 : vector<16x256xf32>
    %42 = arith.truncf %41 : vector<16x256xf32> to vector<16x256xbf16>
    %c0_18 = arith.constant 0 : index
    %c0_19 = arith.constant 0 : index
    %43 = vector.load %arg6[%c0_18, %c0_19] : memref<256x64xbf16, #tpu.memory_space<vmem>>, vector<256x64xbf16>
    %cst_20 = arith.constant dense<0.000000e+00> : vector<16x64xf32>
    %44 = tpu.matmul %42, %43, %cst_20 {dimension_numbers = #tpu.dot_dimension_numbers<[1], [0], [0], [1], [0, 0, 1, 1], [], []>} : vector<16x256xbf16>, vector<256x64xbf16>, vector<16x64xf32> -> vector<16x64xf32>
    %c0_21 = arith.constant 0 : index
    %c0_22 = arith.constant 0 : index
    %45 = vector.load %arg7[%c0_21, %c0_22] : memref<1x64xf32, #tpu.memory_space<vmem>>, vector<1x64xf32>
    %46 = vector.broadcast %45 : vector<1x64xf32> to vector<16x64xf32>
    %47 = arith.addf %44, %46 : vector<16x64xf32>
    %48 = arith.addf %0, %47 : vector<16x64xf32>
    %c0_23 = arith.constant 0 : index
    %c0_24 = arith.constant 0 : index
    %49 = vector.load %arg8[%c0_23, %c0_24] : memref<16x64xf32, #tpu.memory_space<vmem>>, vector<16x64xf32>
    tpu.vector_store %arg8[%c0_23, %c0_24], %48 {strides = array<i32>} : memref<16x64xf32, #tpu.memory_space<vmem>>, vector<16x64xf32>,
    return
  }
  func.func @transform_0(%arg0: i32) -> (i32, i32) {
    %c0_i32 = arith.constant 0 : i32
    %c0_i32_0 = arith.constant 0 : i32
    return %arg0, %c0_i32 : i32, i32
  }
  func.func @transform_1(%arg0: i32) -> (i32, i32) {
    %c0_i32 = arith.constant 0 : i32
    %c0_i32_0 = arith.constant 0 : i32
    %c0_i32_1 = arith.constant 0 : i32
    return %c0_i32, %c0_i32_0 : i32, i32
  }
  func.func @transform_2(%arg0: i32) -> (i32, i32) {
    %c0_i32 = arith.constant 0 : i32
    %c0_i32_0 = arith.constant 0 : i32
    %c0_i32_1 = arith.constant 0 : i32
    return %c0_i32, %c0_i32_0 : i32, i32
  }
  func.func @transform_3(%arg0: i32) -> (i32, i32) {
    %c0_i32 = arith.constant 0 : i32
    %c0_i32_0 = arith.constant 0 : i32
    %c0_i32_1 = arith.constant 0 : i32
    return %c0_i32, %c0_i32_0 : i32, i32
  }
  func.func @transform_4(%arg0: i32) -> (i32, i32) {
    %c0_i32 = arith.constant 0 : i32
    %c0_i32_0 = arith.constant 0 : i32
    %c0_i32_1 = arith.constant 0 : i32
    return %c0_i32, %c0_i32_0 : i32, i32
  }
  func.func @transform_5(%arg0: i32) -> (i32, i32) {
    %c0_i32 = arith.constant 0 : i32
    %c0_i32_0 = arith.constant 0 : i32
    %c0_i32_1 = arith.constant 0 : i32
    return %c0_i32, %c0_i32_0 : i32, i32
  }
  func.func @transform_6(%arg0: i32) -> (i32, i32) {
    %c0_i32 = arith.constant 0 : i32
    %c0_i32_0 = arith.constant 0 : i32
    %c0_i32_1 = arith.constant 0 : i32
    return %c0_i32, %c0_i32_0 : i32, i32
  }
  func.func @transform_7(%arg0: i32) -> (i32, i32) {
    %c0_i32 = arith.constant 0 : i32
    %c0_i32_0 = arith.constant 0 : i32
    return %arg0, %c0_i32 : i32, i32
  }
}

module attributes {stable_mosaic.version = 11 : i64} {
  func.func @_mask_head_kernel(%arg0: i32, %arg1: memref<1x4x64xf32, #tpu.memory_space<vmem>>, %arg2: memref<1x4x64xf32, #tpu.memory_space<vmem>>, %arg3: memref<1x64xf32, #tpu.memory_space<vmem>>, %arg4: memref<1x64xf32, #tpu.memory_space<vmem>>, %arg5: memref<64x64xbf16, #tpu.memory_space<vmem>>, %arg6: memref<64x64xbf16, #tpu.memory_space<vmem>>, %arg7: memref<4x1xf32, #tpu.memory_space<vmem>>, %arg8: memref<4x1xf32, #tpu.memory_space<vmem>>, %arg9: memref<1x4x4xf32, #tpu.memory_space<vmem>>) attributes {dimension_semantics = [#tpu.dimension_semantics<parallel>], iteration_bounds = array<i64: 2>, scalar_prefetch = 0 : i64, scratch_operands = 0 : i64, tpu.core_type = #tpu.core_type<tc>, window_params = [{transform_indices = @transform_0, window_bounds = array<i64: 1, 4, 64>}, {transform_indices = @transform_1, window_bounds = array<i64: 1, 4, 64>}, {pipeline_mode = #tpu.pipeline_mode<synchronous>, transform_indices = @transform_2, window_bounds = array<i64: 1, 64>}, {pipeline_mode = #tpu.pipeline_mode<synchronous>, transform_indices = @transform_3, window_bounds = array<i64: 1, 64>}, {pipeline_mode = #tpu.pipeline_mode<synchronous>, transform_indices = @transform_4, window_bounds = array<i64: 64, 64>}, {pipeline_mode = #tpu.pipeline_mode<synchronous>, transform_indices = @transform_5, window_bounds = array<i64: 64, 64>}, {pipeline_mode = #tpu.pipeline_mode<synchronous>, transform_indices = @transform_6, window_bounds = array<i64: 4, 1>}, {pipeline_mode = #tpu.pipeline_mode<synchronous>, transform_indices = @transform_7, window_bounds = array<i64: 4, 1>}, {transform_indices = @transform_8, window_bounds = array<i64: 1, 4, 4>}]} {
    %c0 = arith.constant 0 : index
    %c0_0 = arith.constant 0 : index
    %c0_1 = arith.constant 0 : index
    %0 = vector.load %arg1[%c0, %c0_0, %c0_1] : memref<1x4x64xf32, #tpu.memory_space<vmem>>, vector<1x4x64xf32>
    %1 = vector.shape_cast %0 : vector<1x4x64xf32> to vector<4x64xf32>
    %c0_2 = arith.constant 0 : index
    %c0_3 = arith.constant 0 : index
    %2 = vector.load %arg3[%c0_2, %c0_3] : memref<1x64xf32, #tpu.memory_space<vmem>>, vector<1x64xf32>
    %c0_4 = arith.constant 0 : index
    %c0_5 = arith.constant 0 : index
    %3 = vector.load %arg4[%c0_4, %c0_5] : memref<1x64xf32, #tpu.memory_space<vmem>>, vector<1x64xf32>
    %cst = arith.constant dense<0.000000e+00> : vector<4xf32>
    %4 = vector.multi_reduction <add>, %1, %cst [1] : vector<4x64xf32> to vector<4xf32>
    %5 = vector.shape_cast %4 : vector<4xf32> to vector<4x1xf32>
    %cst_6 = arith.constant 6.400000e+01 : f32
    %6 = vector.broadcast %cst_6 : f32 to vector<4x1xf32>
    %7 = arith.divf %5, %6 : vector<4x1xf32>
    %8 = vector.broadcast %7 : vector<4x1xf32> to vector<4x64xf32>
    %9 = arith.subf %1, %8 : vector<4x64xf32>
    %10 = arith.mulf %9, %9 : vector<4x64xf32>
    %cst_7 = arith.constant dense<0.000000e+00> : vector<4xf32>
    %11 = vector.multi_reduction <add>, %10, %cst_7 [1] : vector<4x64xf32> to vector<4xf32>
    %12 = vector.shape_cast %11 : vector<4xf32> to vector<4x1xf32>
    %cst_8 = arith.constant 6.400000e+01 : f32
    %13 = vector.broadcast %cst_8 : f32 to vector<4x1xf32>
    %14 = arith.divf %12, %13 : vector<4x1xf32>
    %cst_9 = arith.constant 9.99999974E-6 : f32
    %15 = vector.broadcast %cst_9 : f32 to vector<4x1xf32>
    %16 = arith.addf %14, %15 : vector<4x1xf32>
    %17 = math.rsqrt %16 : vector<4x1xf32>
    %18 = vector.broadcast %17 : vector<4x1xf32> to vector<4x64xf32>
    %19 = arith.mulf %9, %18 : vector<4x64xf32>
    %20 = vector.broadcast %2 : vector<1x64xf32> to vector<4x64xf32>
    %21 = arith.mulf %19, %20 : vector<4x64xf32>
    %22 = vector.broadcast %3 : vector<1x64xf32> to vector<4x64xf32>
    %23 = arith.addf %21, %22 : vector<4x64xf32>
    %c0_10 = arith.constant 0 : index
    %c0_11 = arith.constant 0 : index
    %c0_12 = arith.constant 0 : index
    %24 = vector.load %arg2[%c0_10, %c0_11, %c0_12] : memref<1x4x64xf32, #tpu.memory_space<vmem>>, vector<1x4x64xf32>
    %25 = vector.shape_cast %24 : vector<1x4x64xf32> to vector<4x64xf32>
    %c0_13 = arith.constant 0 : index
    %c0_14 = arith.constant 0 : index
    %26 = vector.load %arg3[%c0_13, %c0_14] : memref<1x64xf32, #tpu.memory_space<vmem>>, vector<1x64xf32>
    %c0_15 = arith.constant 0 : index
    %c0_16 = arith.constant 0 : index
    %27 = vector.load %arg4[%c0_15, %c0_16] : memref<1x64xf32, #tpu.memory_space<vmem>>, vector<1x64xf32>
    %cst_17 = arith.constant dense<0.000000e+00> : vector<4xf32>
    %28 = vector.multi_reduction <add>, %25, %cst_17 [1] : vector<4x64xf32> to vector<4xf32>
    %29 = vector.shape_cast %28 : vector<4xf32> to vector<4x1xf32>
    %cst_18 = arith.constant 6.400000e+01 : f32
    %30 = vector.broadcast %cst_18 : f32 to vector<4x1xf32>
    %31 = arith.divf %29, %30 : vector<4x1xf32>
    %32 = vector.broadcast %31 : vector<4x1xf32> to vector<4x64xf32>
    %33 = arith.subf %25, %32 : vector<4x64xf32>
    %34 = arith.mulf %33, %33 : vector<4x64xf32>
    %cst_19 = arith.constant dense<0.000000e+00> : vector<4xf32>
    %35 = vector.multi_reduction <add>, %34, %cst_19 [1] : vector<4x64xf32> to vector<4xf32>
    %36 = vector.shape_cast %35 : vector<4xf32> to vector<4x1xf32>
    %cst_20 = arith.constant 6.400000e+01 : f32
    %37 = vector.broadcast %cst_20 : f32 to vector<4x1xf32>
    %38 = arith.divf %36, %37 : vector<4x1xf32>
    %cst_21 = arith.constant 9.99999974E-6 : f32
    %39 = vector.broadcast %cst_21 : f32 to vector<4x1xf32>
    %40 = arith.addf %38, %39 : vector<4x1xf32>
    %41 = math.rsqrt %40 : vector<4x1xf32>
    %42 = vector.broadcast %41 : vector<4x1xf32> to vector<4x64xf32>
    %43 = arith.mulf %33, %42 : vector<4x64xf32>
    %44 = vector.broadcast %26 : vector<1x64xf32> to vector<4x64xf32>
    %45 = arith.mulf %43, %44 : vector<4x64xf32>
    %46 = vector.broadcast %27 : vector<1x64xf32> to vector<4x64xf32>
    %47 = arith.addf %45, %46 : vector<4x64xf32>
    %48 = arith.truncf %23 : vector<4x64xf32> to vector<4x64xbf16>
    %c0_22 = arith.constant 0 : index
    %c0_23 = arith.constant 0 : index
    %49 = vector.load %arg5[%c0_22, %c0_23] : memref<64x64xbf16, #tpu.memory_space<vmem>>, vector<64x64xbf16>
    %cst_24 = arith.constant dense<0.000000e+00> : vector<4x64xf32>
    %50 = tpu.matmul %48, %49, %cst_24 {dimension_numbers = #tpu.dot_dimension_numbers<[1], [0], [0], [1], [0, 0, 1, 1], [], []>} : vector<4x64xbf16>, vector<64x64xbf16>, vector<4x64xf32> -> vector<4x64xf32>
    %51 = arith.truncf %47 : vector<4x64xf32> to vector<4x64xbf16>
    %c0_25 = arith.constant 0 : index
    %c0_26 = arith.constant 0 : index
    %52 = vector.load %arg6[%c0_25, %c0_26] : memref<64x64xbf16, #tpu.memory_space<vmem>>, vector<64x64xbf16>
    %cst_27 = arith.constant dense<0.000000e+00> : vector<4x64xf32>
    %53 = tpu.matmul %51, %52, %cst_27 {dimension_numbers = #tpu.dot_dimension_numbers<[1], [0], [0], [1], [0, 0, 1, 1], [], []>} : vector<4x64xbf16>, vector<64x64xbf16>, vector<4x64xf32> -> vector<4x64xf32>
    %54 = arith.mulf %50, %50 : vector<4x64xf32>
    %cst_28 = arith.constant dense<0.000000e+00> : vector<4xf32>
    %55 = vector.multi_reduction <add>, %54, %cst_28 [1] : vector<4x64xf32> to vector<4xf32>
    %56 = vector.shape_cast %55 : vector<4xf32> to vector<4x1xf32>
    %cst_29 = arith.constant 9.99999996E-13 : f32
    %57 = vector.broadcast %cst_29 : f32 to vector<4x1xf32>
    %58 = arith.addf %56, %57 : vector<4x1xf32>
    %59 = math.rsqrt %58 : vector<4x1xf32>
    %60 = vector.broadcast %59 : vector<4x1xf32> to vector<4x64xf32>
    %61 = arith.mulf %50, %60 : vector<4x64xf32>
    %62 = arith.mulf %53, %53 : vector<4x64xf32>
    %cst_30 = arith.constant dense<0.000000e+00> : vector<4xf32>
    %63 = vector.multi_reduction <add>, %62, %cst_30 [1] : vector<4x64xf32> to vector<4xf32>
    %64 = vector.shape_cast %63 : vector<4xf32> to vector<4x1xf32>
    %cst_31 = arith.constant 9.99999996E-13 : f32
    %65 = vector.broadcast %cst_31 : f32 to vector<4x1xf32>
    %66 = arith.addf %64, %65 : vector<4x1xf32>
    %67 = math.rsqrt %66 : vector<4x1xf32>
    %68 = vector.broadcast %67 : vector<4x1xf32> to vector<4x64xf32>
    %69 = arith.mulf %53, %68 : vector<4x64xf32>
    %70 = arith.truncf %69 : vector<4x64xf32> to vector<4x64xbf16>
    %71 = arith.truncf %61 : vector<4x64xf32> to vector<4x64xbf16>
    %cst_32 = arith.constant dense<0.000000e+00> : vector<4x4xf32>
    %72 = tpu.matmul %70, %71, %cst_32 {dimension_numbers = #tpu.dot_dimension_numbers<[1], [1], [0], [0], [0, 0, 1, 0], [], []>} : vector<4x64xbf16>, vector<4x64xbf16>, vector<4x4xf32> -> vector<4x4xf32>
    %cst_33 = arith.constant dense<0.000000e+00> : vector<4xf32>
    %73 = vector.multi_reduction <add>, %72, %cst_33 [0] : vector<4x4xf32> to vector<4xf32>
    %74 = vector.shape_cast %73 : vector<4xf32> to vector<1x4xf32>
    %cst_34 = arith.constant 4.000000e+00 : f32
    %75 = vector.broadcast %cst_34 : f32 to vector<1x4xf32>
    %76 = arith.divf %74, %75 : vector<1x4xf32>
    %77 = vector.broadcast %76 : vector<1x4xf32> to vector<4x4xf32>
    %78 = arith.subf %72, %77 : vector<4x4xf32>
    %79 = arith.mulf %78, %78 : vector<4x4xf32>
    %cst_35 = arith.constant dense<0.000000e+00> : vector<4xf32>
    %80 = vector.multi_reduction <add>, %79, %cst_35 [0] : vector<4x4xf32> to vector<4xf32>
    %81 = vector.shape_cast %80 : vector<4xf32> to vector<1x4xf32>
    %cst_36 = arith.constant 4.000000e+00 : f32
    %82 = vector.broadcast %cst_36 : f32 to vector<1x4xf32>
    %83 = arith.divf %81, %82 : vector<1x4xf32>
    %cst_37 = arith.constant 9.99999974E-6 : f32
    %84 = vector.broadcast %cst_37 : f32 to vector<1x4xf32>
    %85 = arith.addf %83, %84 : vector<1x4xf32>
    %86 = math.rsqrt %85 : vector<1x4xf32>
    %87 = vector.broadcast %86 : vector<1x4xf32> to vector<4x4xf32>
    %88 = arith.mulf %78, %87 : vector<4x4xf32>
    %c0_38 = arith.constant 0 : index
    %c0_39 = arith.constant 0 : index
    %89 = vector.load %arg7[%c0_38, %c0_39] : memref<4x1xf32, #tpu.memory_space<vmem>>, vector<4x1xf32>
    %90 = vector.broadcast %89 : vector<4x1xf32> to vector<4x4xf32>
    %91 = arith.mulf %88, %90 : vector<4x4xf32>
    %c0_40 = arith.constant 0 : index
    %c0_41 = arith.constant 0 : index
    %92 = vector.load %arg8[%c0_40, %c0_41] : memref<4x1xf32, #tpu.memory_space<vmem>>, vector<4x1xf32>
    %93 = vector.broadcast %92 : vector<4x1xf32> to vector<4x4xf32>
    %94 = arith.addf %91, %93 : vector<4x4xf32>
    %c0_42 = arith.constant 0 : index
    %c0_43 = arith.constant 0 : index
    %c0_44 = arith.constant 0 : index
    %95 = vector.load %arg9[%c0_42, %c0_43, %c0_44] : memref<1x4x4xf32, #tpu.memory_space<vmem>>, vector<1x4x4xf32>
    %96 = vector.shape_cast %95 : vector<1x4x4xf32> to vector<4x4xf32>
    %97 = vector.shape_cast %94 : vector<4x4xf32> to vector<1x4x4xf32>
    tpu.vector_store %arg9[%c0_42, %c0_43, %c0_44], %97 {strides = array<i32>} : memref<1x4x4xf32, #tpu.memory_space<vmem>>, vector<1x4x4xf32>,
    return
  }
  func.func @transform_0(%arg0: i32) -> (i32, i32, i32) {
    %c0_i32 = arith.constant 0 : i32
    %c0_i32_0 = arith.constant 0 : i32
    %c0_i32_1 = arith.constant 0 : i32
    return %arg0, %c0_i32, %c0_i32_0 : i32, i32, i32
  }
  func.func @transform_1(%arg0: i32) -> (i32, i32, i32) {
    %c0_i32 = arith.constant 0 : i32
    %c0_i32_0 = arith.constant 0 : i32
    %c0_i32_1 = arith.constant 0 : i32
    return %arg0, %c0_i32, %c0_i32_0 : i32, i32, i32
  }
  func.func @transform_2(%arg0: i32) -> (i32, i32) {
    %c0_i32 = arith.constant 0 : i32
    %c0_i32_0 = arith.constant 0 : i32
    %c0_i32_1 = arith.constant 0 : i32
    return %c0_i32, %c0_i32_0 : i32, i32
  }
  func.func @transform_3(%arg0: i32) -> (i32, i32) {
    %c0_i32 = arith.constant 0 : i32
    %c0_i32_0 = arith.constant 0 : i32
    %c0_i32_1 = arith.constant 0 : i32
    return %c0_i32, %c0_i32_0 : i32, i32
  }
  func.func @transform_4(%arg0: i32) -> (i32, i32) {
    %c0_i32 = arith.constant 0 : i32
    %c0_i32_0 = arith.constant 0 : i32
    %c0_i32_1 = arith.constant 0 : i32
    return %c0_i32, %c0_i32_0 : i32, i32
  }
  func.func @transform_5(%arg0: i32) -> (i32, i32) {
    %c0_i32 = arith.constant 0 : i32
    %c0_i32_0 = arith.constant 0 : i32
    %c0_i32_1 = arith.constant 0 : i32
    return %c0_i32, %c0_i32_0 : i32, i32
  }
  func.func @transform_6(%arg0: i32) -> (i32, i32) {
    %c0_i32 = arith.constant 0 : i32
    %c0_i32_0 = arith.constant 0 : i32
    %c0_i32_1 = arith.constant 0 : i32
    return %c0_i32, %c0_i32_0 : i32, i32
  }
  func.func @transform_7(%arg0: i32) -> (i32, i32) {
    %c0_i32 = arith.constant 0 : i32
    %c0_i32_0 = arith.constant 0 : i32
    %c0_i32_1 = arith.constant 0 : i32
    return %c0_i32, %c0_i32_0 : i32, i32
  }
  func.func @transform_8(%arg0: i32) -> (i32, i32, i32) {
    %c0_i32 = arith.constant 0 : i32
    %c0_i32_0 = arith.constant 0 : i32
    %c0_i32_1 = arith.constant 0 : i32
    return %arg0, %c0_i32, %c0_i32_0 : i32, i32, i32
  }
}

module attributes {stable_mosaic.version = 11 : i64} {
  func.func @_upsample_sigmoid_kernel(%arg0: i32, %arg1: memref<1x2x2xf32, #tpu.memory_space<vmem>>, %arg2: memref<32x2xf32, #tpu.memory_space<vmem>>, %arg3: memref<32x2xf32, #tpu.memory_space<vmem>>, %arg4: memref<1x32x32xf32, #tpu.memory_space<vmem>>) attributes {dimension_semantics = [#tpu.dimension_semantics<parallel>], iteration_bounds = array<i64: 8>, scalar_prefetch = 0 : i64, scratch_operands = 0 : i64, tpu.core_type = #tpu.core_type<tc>, window_params = [{transform_indices = @transform_0, window_bounds = array<i64: 1, 2, 2>}, {pipeline_mode = #tpu.pipeline_mode<synchronous>, transform_indices = @transform_1, window_bounds = array<i64: 32, 2>}, {pipeline_mode = #tpu.pipeline_mode<synchronous>, transform_indices = @transform_2, window_bounds = array<i64: 32, 2>}, {transform_indices = @transform_3, window_bounds = array<i64: 1, 32, 32>}]} {
    %c0 = arith.constant 0 : index
    %c0_0 = arith.constant 0 : index
    %c0_1 = arith.constant 0 : index
    %0 = vector.load %arg1[%c0, %c0_0, %c0_1] : memref<1x2x2xf32, #tpu.memory_space<vmem>>, vector<1x2x2xf32>
    %1 = vector.shape_cast %0 : vector<1x2x2xf32> to vector<2x2xf32>
    %c0_2 = arith.constant 0 : index
    %c0_3 = arith.constant 0 : index
    %2 = vector.load %arg2[%c0_2, %c0_3] : memref<32x2xf32, #tpu.memory_space<vmem>>, vector<32x2xf32>
    %c0_4 = arith.constant 0 : index
    %c0_5 = arith.constant 0 : index
    %3 = vector.load %arg3[%c0_4, %c0_5] : memref<32x2xf32, #tpu.memory_space<vmem>>, vector<32x2xf32>
    %cst = arith.constant dense<0.000000e+00> : vector<2x32xf32>
    %4 = tpu.matmul %1, %3, %cst {dimension_numbers = #tpu.dot_dimension_numbers<[1], [1], [0], [0], [0, 0, 1, 0], [], []>} : vector<2x2xf32>, vector<32x2xf32>, vector<2x32xf32> -> vector<2x32xf32>
    %cst_6 = arith.constant dense<0.000000e+00> : vector<32x32xf32>
    %5 = tpu.matmul %2, %4, %cst_6 {dimension_numbers = #tpu.dot_dimension_numbers<[1], [0], [0], [1], [0, 0, 1, 1], [], []>} : vector<32x2xf32>, vector<2x32xf32>, vector<32x32xf32> -> vector<32x32xf32>
    %cst_7 = arith.constant 0.000000e+00 : f32
    %6 = vector.broadcast %cst_7 : f32 to vector<32x32xf32>
    %7 = arith.subf %6, %5 : vector<32x32xf32>
    %8 = math.exp %7 : vector<32x32xf32>
    %cst_8 = arith.constant 1.000000e+00 : f32
    %9 = vector.broadcast %cst_8 : f32 to vector<32x32xf32>
    %10 = arith.addf %9, %8 : vector<32x32xf32>
    %11 = tpu.reciprocal %10 {approx = true} : vector<32x32xf32> -> vector<32x32xf32>
    %c0_9 = arith.constant 0 : index
    %c0_10 = arith.constant 0 : index
    %c0_11 = arith.constant 0 : index
    %12 = vector.load %arg4[%c0_9, %c0_10, %c0_11] : memref<1x32x32xf32, #tpu.memory_space<vmem>>, vector<1x32x32xf32>
    %13 = vector.shape_cast %12 : vector<1x32x32xf32> to vector<32x32xf32>
    %14 = vector.shape_cast %11 : vector<32x32xf32> to vector<1x32x32xf32>
    tpu.vector_store %arg4[%c0_9, %c0_10, %c0_11], %14 {strides = array<i32>} : memref<1x32x32xf32, #tpu.memory_space<vmem>>, vector<1x32x32xf32>,
    return
  }
  func.func @transform_0(%arg0: i32) -> (i32, i32, i32) {
    %c0_i32 = arith.constant 0 : i32
    %c0_i32_0 = arith.constant 0 : i32
    %c0_i32_1 = arith.constant 0 : i32
    return %arg0, %c0_i32, %c0_i32_0 : i32, i32, i32
  }
  func.func @transform_1(%arg0: i32) -> (i32, i32) {
    %c0_i32 = arith.constant 0 : i32
    %c0_i32_0 = arith.constant 0 : i32
    %c0_i32_1 = arith.constant 0 : i32
    return %c0_i32, %c0_i32_0 : i32, i32
  }
  func.func @transform_2(%arg0: i32) -> (i32, i32) {
    %c0_i32 = arith.constant 0 : i32
    %c0_i32_0 = arith.constant 0 : i32
    %c0_i32_1 = arith.constant 0 : i32
    return %c0_i32, %c0_i32_0 : i32, i32
  }
  func.func @transform_3(%arg0: i32) -> (i32, i32, i32) {
    %c0_i32 = arith.constant 0 : i32
    %c0_i32_0 = arith.constant 0 : i32
    %c0_i32_1 = arith.constant 0 : i32
    return %arg0, %c0_i32, %c0_i32_0 : i32, i32, i32
  }
}

</mosaic_0001>

<bundles_post_ra>
// kernel: segmenter2_forward.18
= control target key start
LH: loop header
LB: loop body
LE: loop exit
PB: predicated region body
PF: predicated region fallthrough
CT: control target
= control target key end

     0   :  { %s473_s12 = smov 0   ;;  %s502_s0 = inlined_call_operand.vmem [shape: f32[2,5,64], index: 0, kind: input, shape index: {}]   ;;  %s503_s1 = inlined_call_operand.vmem [shape: f32[2,5,64], index: 1, kind: input, shape index: {}]   ;;  %s504_s2 = inlined_call_operand.vmem [shape: f32[2,5,64], index: 2, kind: input, shape index: {}]   ;;  %s505_s3 = inlined_call_operand.vmem [shape: f32[2,5,64], index: 3, kind: output, shape index: {}]  }
   0x1 LB: > { %s398_s13 = sadd.s32 4294967295, %s448_s12   ;;  %p402_p0 = scmp.ge.s32.totalorder %s448_s12, 1  ;;  %s448_s12 = sphi %s473_s12, %s13_s12  }
   0x2   : > { %p154_p1 = scmp.lt.s32.totalorder %s448_s12, 3 }
   0x4   : > { %p155_p2 = pnand %p402_p0, %p154_p1 }
   0x5   : > { %p184_p3 = scmp.lt.s32.totalorder (!%p155_p2), %s398_s13, 1  ;;  %v450_v0 = vmov (!%p155_p2), 0.0   ;;  %vm451_vm0 = vmmov (!%p155_p2), 0   ;;  %vm208_vm1 = vcmask (!%p155_p2), 523264   ;;  %vm255_vm2 = vcmask (!%p155_p2), 36864  }
   0x6   : > { %158 = sbr.rel (%p155_p2) target bundleno = 770 (0x302), region = 32  ;;  %415 = vmatprep.subr.bf16.mxu0 (!%p155_p2), %v450_v0  ;;  %417 = vmatprep.mubr.msk.bf16.mxu0 (!%p155_p2), %vm451_vm0, %v450_v0  ;;  %vm272_vm3 = vcmask (!%p155_p2), 1041408   ;;  %vm273_vm4 = vcmask (!%p155_p2), 1042432   ;;  %v452_v18 = vmov (!%p155_p2), 65535   ;;  %vm268_vm5 = vcmask (!%p155_p2), 39936  }
   0x7   : > { %421 = vmatprep.subr.bf16.mxu1 (!%p155_p2), %v450_v0  ;;  %423 = vmatprep.mubr.msk.bf16.mxu1 (!%p155_p2), %vm451_vm0, %v450_v0  ;;  %v274_v19 = vsel (!%p155_p2), %vm272_vm3, 4294967295, %v452_v18  ;;  %vm319_vm6 = vcmask (!%p155_p2), 520192  }
   0x8   : > { %v275_v21 = vsel (!%p155_p2), %vm273_vm4, %v274_v19, 0 }
   0xd   : > { %s507_s13 = smov (!%p184_p3, %s398_s13), 1 }
   0xe   : > { %s481_s14 = sshll.u32 %s507_s13, 3 }
   0xf   : > { %s191_s17 = scalar_lea.vmem %s503_s1, %s481_s14  ;;  %s187_s20 = scalar_lea.vmem %s502_s0, %s481_s14 }
  0x10   : > { %v202_v1 = vld [vmem:[%s191_s17] sm:$0x1f]  ;;  %s195_s23 = scalar_lea.vmem %s504_s2, %s481_s14  ;;  %s199_s26 = scalar_lea.vmem %s505_s3, %s481_s14 }
  0x11   : > { %v201_v2 = vld [vmem:[%s187_s20] sm:$0x1f]  ;;  %v206_v3 = vpack.c.bf16 %v202_v1, %v202_v1 }
  0x12   : > { %v204_v5 = vmul.f32 0.125, %v201_v2  ;;  %v203_v17 = vld [vmem:[%s195_s23] sm:$0x1f] }
  0x13   : > { %v213_v4 = vsel %vm208_vm1, %v206_v3, 0  ;;  %v207_v20 = vpack.c.bf16 %v203_v17, %v203_v17 }
  0x14   : > { %416 = vmatpush3.bf16.xpose.msra.mxu0 %v213_v4  ;;  %v205_v6 = vpack.c.bf16 %v204_v5, %v204_v5 }
  0x15   : > { %v277_v22 = vand.u32 %v275_v21, %v207_v20 }
  0x17   : > { %422 = vmatpush3.bf16.msra.mxu1 %v277_v22 }
  0x1b   : > { %418 = vmatmul.mubr.msk.bf16.vlgmr.msra.gmra.mrb[0].mxu0 %vm208_vm1, %v205_v6 }
  0xee   : > { %v249_v7 = vpop.f32.mrb[0].mxu0 }
  0xef   : > { %v419_v8 = vpop.f32.mrb[1].mxu0  ;;  %v256_v9 = vsel %vm255_vm2, %v249_v7, -inf }
  0xf0   : > { %257 = vmax.xlane.f32.xlu0 %v256_v9  ;;  %v252_v10 = vpop.f32.mrb[2].mxu0 }
  0xf1   : > { %v420_v11 = vpop.f32.mrb[3].mxu0 }
 0x17d   : > { %v258_v12 = vpop.xlane.xlu0 %257 }
 0x17e   : > { %v259_v13 = vsub.f32 %v249_v7, %v258_v12 }
 0x180   : > { %v260_v14 = vmul.f32 1.442695, %v259_v13 }
 0x182   : > { %438 = vpow2.f32 %v260_v14 }
 0x18c   : > { %v439_v15 = vpop.eup %438 }
 0x18d   : > { %v262_v16 = vsel %vm255_vm2, %v439_v15, 0.0 }
 0x18e   : > { %263 = vadd.xlane.f32.xlu0 %v262_v16 }
 0x21b   : > { %v264_v23 = vpop.xlane.xlu0 %263 }
 0x21c   : > { %440 = vrcp.f32 %v264_v23 }
 0x226   : > { %v441_v24 = vpop.eup %440 }
 0x227   : > { %v266_v25 = vmul.f32 %v441_v24, %v439_v15 }
 0x229   : > { %v267_v26 = vpack.c.bf16 %v266_v25, %v266_v25 }
 0x22b   : > { %424 = vmatmul.mubr.msk.bf16.vlgmr.msra.gmra.mrb[0].mxu1 %vm268_vm5, %v267_v26 }
 0x2fe   : > { %v313_v27 = vpop.f32.mrb[0].mxu1 }
 0x2ff   : > { %320 = vst.msk [vmem:[%s199_s26] sm:$0x1f] %vm319_vm6, %v313_v27  ;;  %v425_v28 = vpop.f32.mrb[1].mxu1 }
 0x300   : > { %v316_v29 = vpop.f32.mrb[2].mxu1 }
 0x301   : > { %v426_v30 = vpop.f32.mrb[3].mxu1 }
 0x302 PF: > { %s13_s12 = sadd.s32 1, %s448_s12  }
 0x303   : > { %p10_p4 = scmp.ge.s32.totalorder %s13_s12, 4  }
 0x305   :  { %12 = sbr.rel (!%p10_p4) target bundleno = 1 (0x1), region = 68 }

// kernel: segmenter2_forward.19
= control target key start
LH: loop header
LB: loop body
LE: loop exit
PB: predicated region body
PF: predicated region fallthrough
CT: control target
= control target key end

     0   :  { %v145_v0 = vmov 0.0   ;;  %vm146_vm0 = vmmov 0   ;;  %vm60_vm1 = vcmask 523264   ;;  %vm110_vm2 = vcmask 517120   ;;  %s207_s2 = inlined_call_operand.vmem [shape: bf16[64,64], index: 2, kind: input, shape index: {}]   ;;  %s208_s1 = inlined_call_operand.vmem [shape: f32[10,64], index: 1, kind: input, shape index: {}]   ;;  %s209_s3 = inlined_call_operand.vmem [shape: f32[1,64], index: 3, kind: input, shape index: {}]   ;;  %s210_s0 = inlined_call_operand.vmem [shape: f32[10,64], index: 0, kind: input, shape index: {}]   ;;  %s211_s4 = inlined_call_operand.vmem [shape: f32[10,64], index: 4, kind: output, shape index: {}]  }
   0x1   :  { %127 = vmatprep.subr.bf16.mxu0 %v145_v0  ;;  %v141_v1 = vld [vmem:[%s207_s2] sm:$0xff]   ;;  %135 = vmatprep.mubr.msk.bf16.mxu0 %vm146_vm0, %v145_v0  ;;  %v142_v2 = vld [vmem:[%s207_s2 + $0x8] sm:$0xff]   ;;  %v143_v3 = vld [vmem:[%s207_s2 + $0x10] sm:$0xff]  }
   0x2   :  { %128 = vmatpush3.bf16.msra.mxu0 %v141_v1  ;;  %v144_v4 = vld [vmem:[%s207_s2 + $0x18] sm:$0xff]   ;;  %v18_v5 = vld [vmem:[%s208_s1] sm:$0xff]  ;;  %v19_v6 = vld [vmem:[%s208_s1 + $0x8] sm:$0x3] }
   0x3   :  { %129 = vmatprep.subr.bf16.mxu0 %v145_v0  ;;  %v20_v7 = vpack.c.bf16 %v19_v6, %v18_v5  ;;  %v116_v8 = vld [vmem:[%s209_s3] ss:$0 sm:$0xff]  ;;  %v106_v14 = vld [vmem:[%s210_s0 + $0x8] sm:$0x3] }
   0x4   :  { %v105_v10 = vld [vmem:[%s210_s0] sm:$0xff] }
   0x6   :  { %130 = vmatpush3.bf16.msra.mxu0 %v142_v2 }
   0x7   :  { %131 = vmatprep.subr.bf16.mxu0 %v145_v0 }
   0xa   :  { %132 = vmatpush3.bf16.msra.mxu0 %v143_v3 }
   0xb   :  { %133 = vmatprep.subr.bf16.mxu0 %v145_v0 }
   0xe   :  { %134 = vmatpush3.bf16.msra.mxu0 %v144_v4 }
  0x11   :  { %136 = vmatmul.mubr.msk.bf16.vlgmr.msra.gmra.mrb[0].mxu0 %vm60_vm1, %v20_v7 }
  0xe4   :  { %v98_v9 = vpop.f32.mrb[0].mxu0 }
  0xe5   :  { %v99_v11 = vadd.f32 %v116_v8, %v98_v9  ;;  %v137_v12 = vpop.f32.mrb[1].mxu0 }
  0xe6   :  { %v101_v13 = vpop.f32.mrb[2].mxu0 }
  0xe7   :  { %v107_v15 = vadd.f32 %v105_v10, %v99_v11  ;;  %v102_v16 = vadd.f32 %v116_v8, %v101_v13  ;;  %v138_v17 = vpop.f32.mrb[3].mxu0 }
  0xe9   :  { %109 = vst.msk [vmem:[%s211_s4] sm:$0xff] %vm60_vm1, %v107_v15  ;;  %v108_v18 = vadd.f32 %v106_v14, %v102_v16 }
  0xeb   :  { %111 = vst.msk [vmem:[%s211_s4 + $0x8] sm:$0x3] %vm110_vm2, %v108_v18 }

// kernel: segmenter2_forward.17
= control target key start
LH: loop header
LB: loop body
LE: loop exit
PB: predicated region body
PF: predicated region fallthrough
CT: control target
= control target key end

     0   :  { %vm40_vm0 = vcmask 523264   ;;  %vm44_vm1 = vcmask 517120   ;;  %v436_v15 = vmov 0.0   ;;  %vm437_vm2 = vmmov 0   ;;  %s589_s0 = inlined_call_operand.vmem [shape: f32[10,64], index: 0, kind: input, shape index: {}]   ;;  %s590_s3 = inlined_call_operand.vmem [shape: bf16[64,64], index: 3, kind: input, shape index: {}]   ;;  %s591_s4 = inlined_call_operand.vmem [shape: bf16[64,64], index: 4, kind: input, shape index: {}]   ;;  %s592_s5 = inlined_call_operand.vmem [shape: bf16[64,64], index: 5, kind: input, shape index: {}]   ;;  %s593_s1 = inlined_call_operand.vmem [shape: f32[1,64], index: 1, kind: input, shape index: {}]   ;;  %s594_s2 = inlined_call_operand.vmem [shape: f32[1,64], index: 2, kind: input, shape index: {}]   ;;  %s595_s6 = inlined_call_operand.vmem [shape: f32[1,64], index: 6, kind: input, shape index: {}]   ;;  %s596_s7 = inlined_call_operand.vmem [shape: f32[1,64], index: 7, kind: input, shape index: {}]   ;;  %s597_s9 = inlined_call_operand.vmem [shape: f32[10,64], index: 9, kind: output, shape index: {0}]   ;;  %s598_s10 = inlined_call_operand.vmem [shape: f32[10,64], index: 10, kind: output, shape index: {1}]   ;;  %s599_s8 = inlined_call_operand.vmem [shape: f32[1,64], index: 8, kind: input, shape index: {}]   ;;  %s600_s11 = inlined_call_operand.vmem [shape: f32[10,64], index: 11, kind: output, shape index: {2}]  }
   0x1   :  { %v36_v0 = vld [vmem:[%s589_s0] sm:$0xff]  ;;  %v37_v1 = vld [vmem:[%s589_s0 + $0x8] sm:$0x3]  ;;  %382 = vmatprep.subr.bf16.mxu0 %v436_v15  ;;  %394 = vmatprep.subr.bf16.mxu1 %v436_v15  ;;  %v424_v19 = vld [vmem:[%s590_s3 + $0x10] sm:$0xff]  }
   0x2   :  { %v41_v2 = vsel %vm40_vm0, %v36_v0, 0.0  ;;  %v45_v3 = vsel %vm44_vm1, %v37_v1, 0.0  ;;  %v420_v14 = vld [vmem:[%s590_s3] sm:$0xff]   ;;  %v422_v17 = vld [vmem:[%s590_s3 + $0x8] sm:$0xff]   ;;  %v425_v20 = vld [vmem:[%s591_s4 + $0x10] sm:$0xff]   ;;  %390 = vmatprep.mubr.msk.bf16.mxu0 %vm437_vm2, %v436_v15  ;;  %402 = vmatprep.mubr.msk.bf16.mxu1 %vm437_vm2, %v436_v15 }
   0x3   :  { %42 = vadd.xlane.f32.xlu0 %v41_v2  ;;  %v421_v16 = vld [vmem:[%s591_s4] sm:$0xff]   ;;  %383 = vmatpush3.bf16.msra.mxu0 %v420_v14  ;;  %v423_v18 = vld [vmem:[%s591_s4 + $0x8] sm:$0xff]   ;;  %v426_v21 = vld [vmem:[%s590_s3 + $0x18] sm:$0xff]  }
   0x4   :  { %395 = vmatpush3.bf16.msra.mxu1 %v421_v16  ;;  %384 = vmatprep.subr.bf16.mxu0 %v436_v15  ;;  %v427_v22 = vld [vmem:[%s591_s4 + $0x18] sm:$0xff]   ;;  %v347_v31 = vld [vmem:[%s593_s1] ss:$0 sm:$0xff]  ;;  %v429_v41 = vld [vmem:[%s592_s5 + $0x8] sm:$0xff]  }
   0x5   :  { %396 = vmatprep.subr.bf16.mxu1 %v436_v15  ;;  %v348_v35 = vld [vmem:[%s594_s2] ss:$0 sm:$0xff]  ;;  %v430_v42 = vld [vmem:[%s592_s5 + $0x10] sm:$0xff]   ;;  %v431_v43 = vld [vmem:[%s592_s5 + $0x18] sm:$0xff]  }
   0x6   :  { %v428_v39 = vld [vmem:[%s592_s5] sm:$0xff]  }
   0x7   :  { %46 = vadd.xlane.f32.xlu0 %v45_v3  ;;  %385 = vmatpush3.bf16.msra.mxu0 %v422_v17  ;;  %v349_v44 = vld [vmem:[%s595_s6] ss:$0 sm:$0xff] }
   0x8   :  { %397 = vmatpush3.bf16.msra.mxu1 %v423_v18  ;;  %386 = vmatprep.subr.bf16.mxu0 %v436_v15  ;;  %v355_v45 = vld [vmem:[%s596_s7] ss:$0 sm:$0xff] }
   0x9   :  { %398 = vmatprep.subr.bf16.mxu1 %v436_v15  ;;  %v361_v58 = vld [vmem:[%s599_s8] ss:$0 sm:$0xff] }
   0xb   :  { %387 = vmatpush3.bf16.msra.mxu0 %v424_v19 }
   0xc   :  { %399 = vmatpush3.bf16.msra.mxu1 %v425_v20  ;;  %388 = vmatprep.subr.bf16.mxu0 %v436_v15 }
   0xd   :  { %400 = vmatprep.subr.bf16.mxu1 %v436_v15 }
   0xf   :  { %389 = vmatpush3.bf16.msra.mxu0 %v426_v21 }
  0x10   :  { %401 = vmatpush3.bf16.msra.mxu1 %v427_v22  ;;  %406 = vmatprep.subr.bf16.mxu0 %v436_v15 }
  0x90   :  { %v43_v4 = vpop.xlane.xlu0 %42 }
  0x91   :  { %v49_v5 = vmul.f32 0.015625, %v43_v4 }
  0x93   :  { %v51_v6 = vsub.f32 %v36_v0, %v49_v5 }
  0x94   :  { %v47_v7 = vpop.xlane.xlu0 %46 }
  0x95   :  { %v50_v8 = vmul.f32 0.015625, %v47_v7  ;;  %v53_v9 = vmul.f32 %v51_v6, %v51_v6 }
  0x97   :  { %v52_v10 = vsub.f32 %v37_v1, %v50_v8  ;;  %v55_v11 = vsel %vm40_vm0, %v53_v9, 0.0 }
  0x98   :  { %56 = vadd.xlane.f32.xlu1 %v55_v11 }
  0x99   :  { %v54_v12 = vmul.f32 %v52_v10, %v52_v10 }
  0x9b   :  { %v58_v13 = vsel %vm44_vm1, %v54_v12, 0.0 }
  0x9c   :  { %59 = vadd.xlane.f32.xlu1 %v58_v13 }
 0x125   :  { %v57_v23 = vpop.xlane.xlu1 %56 }
 0x126   :  { %v61_v24 = vmul.f32 0.015625, %v57_v23 }
 0x128   :  { %v63_v25 = vadd.f32 1e-05, %v61_v24 }
 0x129   :  { %v60_v26 = vpop.xlane.xlu1 %59 }
 0x12a   :  { %432 = vrsqrt.f32 %v63_v25  ;;  %v62_v27 = vmul.f32 0.015625, %v60_v26 }
 0x12c   :  { %v64_v28 = vadd.f32 1e-05, %v62_v27 }
 0x12e   :  { %434 = vrsqrt.f32 %v64_v28 }
 0x134   :  { %v433_v29 = vpop.eup %432 }
 0x135   :  { %v67_v30 = vmul.f32 %v433_v29, %v51_v6 }
 0x137   :  { %v75_v34 = vmul.f32 %v347_v31, %v67_v30 }
 0x138   :  { %v435_v32 = vpop.eup %434 }
 0x139   :  { %v68_v33 = vmul.f32 %v435_v32, %v52_v10  ;;  %v83_v37 = vadd.f32 %v348_v35, %v75_v34 }
 0x13b   :  { %v76_v36 = vmul.f32 %v347_v31, %v68_v33 }
 0x13d   :  { %v84_v38 = vadd.f32 %v348_v35, %v76_v36 }
 0x13f   :  { %v85_v40 = vpack.c.bf16 %v84_v38, %v83_v37 }
 0x141   :  { %391 = vmatmul.mubr.msk.bf16.vlgmr.msra.gmra.mrb[0].mxu0 %vm40_vm0, %v85_v40  ;;  %403 = vmatmul.mubr.msk.bf16.vlgmr.msra.gmra.mrb[0].mxu1 %vm40_vm0, %v85_v40 }
 0x142   :  { %407 = vmatpush3.bf16.msra.mxu0 %v428_v39  ;;  %414 = vmatprep.mubr.msk.bf16.mxu0 %vm437_vm2, %v436_v15 }
 0x143   :  { %408 = vmatprep.subr.bf16.mxu0 %v436_v15 }
 0x146   :  { %409 = vmatpush3.bf16.msra.mxu0 %v429_v41 }
 0x147   :  { %410 = vmatprep.subr.bf16.mxu0 %v436_v15 }
 0x14a   :  { %411 = vmatpush3.bf16.msra.mxu0 %v430_v42 }
 0x14b   :  { %412 = vmatprep.subr.bf16.mxu0 %v436_v15 }
 0x14e   :  { %413 = vmatpush3.bf16.msra.mxu0 %v431_v43 }
 0x151   :  { %415 = vmatmul.mubr.msk.bf16.vlgmr.msra.gmra.mrb[4].mxu0 %vm40_vm0, %v85_v40 }
 0x214   :  { %v162_v46 = vpop.f32.mrb[0].mxu0  ;;  %v244_v47 = vpop.f32.mrb[0].mxu1 }
 0x215   :  { %v163_v48 = vadd.f32 %v349_v44, %v162_v46  ;;  %v245_v49 = vadd.f32 %v355_v45, %v244_v47  ;;  %v392_v50 = vpop.f32.mrb[1].mxu0  ;;  %v404_v51 = vpop.f32.mrb[1].mxu1 }
 0x216   :  { %v165_v52 = vpop.f32.mrb[2].mxu0  ;;  %v247_v53 = vpop.f32.mrb[2].mxu1 }
 0x217   :  { %169 = vst.msk [vmem:[%s597_s9] sm:$0xff] %vm40_vm0, %v163_v48  ;;  %251 = vst.msk [vmem:[%s598_s10] sm:$0xff] %vm40_vm0, %v245_v49  ;;  %v166_v54 = vadd.f32 %v349_v44, %v165_v52  ;;  %v248_v55 = vadd.f32 %v355_v45, %v247_v53  ;;  %v393_v56 = vpop.f32.mrb[3].mxu0  ;;  %v405_v57 = vpop.f32.mrb[3].mxu1 }
 0x219   :  { %170 = vst.msk [vmem:[%s597_s9 + $0x8] sm:$0x3] %vm44_vm1, %v166_v54  ;;  %252 = vst.msk [vmem:[%s598_s10 + $0x8] sm:$0x3] %vm44_vm1, %v248_v55 }
 0x224   :  { %v326_v59 = vpop.f32.mrb[4].mxu0 }
 0x225   :  { %v327_v60 = vadd.f32 %v361_v58, %v326_v59  ;;  %v416_v61 = vpop.f32.mrb[5].mxu0 }
 0x226   :  { %v329_v62 = vpop.f32.mrb[6].mxu0 }
 0x227   :  { %333 = vst.msk [vmem:[%s600_s11] sm:$0xff] %vm40_vm0, %v327_v60  ;;  %v330_v63 = vadd.f32 %v361_v58, %v329_v62  ;;  %v417_v0 = vpop.f32.mrb[7].mxu0 }
 0x229   :  { %334 = vst.msk [vmem:[%s600_s11 + $0x8] sm:$0x3] %vm44_vm1, %v330_v63 }

// kernel: segmenter2_forward.16
= control target key start
LH: loop header
LB: loop body
LE: loop exit
PB: predicated region body
PF: predicated region fallthrough
CT: control target
= control target key end

     0   :  { %s1000_s15 = smov 0   ;;  %s1180_s0 = inlined_call_operand.vmem [shape: f32[2,4,768], index: 0, kind: input, shape index: {}]   ;;  %s1181_s1 = inlined_call_operand.vmem [shape: bf16[768,64], index: 1, kind: input, shape index: {}]   ;;  %s1182_s2 = inlined_call_operand.vmem [shape: f32[1,64], index: 2, kind: input, shape index: {}]   ;;  %s1183_s3 = inlined_call_operand.vmem [shape: f32[4,64], index: 3, kind: input, shape index: {}]   ;;  %s1184_s4 = inlined_call_operand.vmem [shape: f32[2,4,64], index: 4, kind: output, shape index: {}]  }
   0x1 LB: > { %s783_s16 = sadd.s32 4294967295, %s973_s15   ;;  %p787_p0 = scmp.ge.s32.totalorder %s973_s15, 1  ;;  %s973_s15 = sphi %s1000_s15, %s14_s15  }
   0x2   : > { %p162_p1 = scmp.lt.s32.totalorder %s973_s15, 3 }
   0x4   : > { %p163_p2 = pnand %p787_p0, %p162_p1 }
   0x5   : > { %v916_v0 = vld [vmem:[%s1181_s1 + $0x40] sm:$0xff] (!%p163_p2)   ;;  %v920_v4 = vld [vmem:[%s1181_s1 + $0x48] sm:$0xff] (!%p163_p2)   ;;  %v924_v8 = vld [vmem:[%s1181_s1 + $0x50] sm:$0xff] (!%p163_p2)   ;;  %p187_p3 = scmp.lt.s32.totalorder (!%p163_p2), %s783_s16, 1  ;;  %vm728_vm0 = vcmask (!%p163_p2), 519168  }
   0x6   : > { %166 = sbr.rel (%p163_p2) target bundleno = 290 (0x122), region = 36  ;;  %v917_v1 = vld [vmem:[%s1181_s1] sm:$0xff] (!%p163_p2)   ;;  %841 = vmatprep.subr.bf16.mxu0 (!%p163_p2), %v916_v0  ;;  %v921_v5 = vld [vmem:[%s1181_s1 + $0x8] sm:$0xff] (!%p163_p2)   ;;  %v925_v9 = vld [vmem:[%s1181_s1 + $0x10] sm:$0xff] (!%p163_p2)  }
   0x7   : > { %v918_v2 = vld [vmem:[%s1181_s1 + $0xc0] sm:$0xff] (!%p163_p2)   ;;  %842 = vmatpush3.bf16.msra.mxu0 (!%p163_p2), %v917_v1  ;;  %v922_v6 = vld [vmem:[%s1181_s1 + $0xc8] sm:$0xff] (!%p163_p2)   ;;  %v926_v10 = vld [vmem:[%s1181_s1 + $0xd0] sm:$0xff] (!%p163_p2)  }
   0x8   : > { %v919_v3 = vld [vmem:[%s1181_s1 + $0x80] sm:$0xff] (!%p163_p2)   ;;  %863 = vmatprep.subr.bf16.mxu1 (!%p163_p2), %v918_v2  ;;  %843 = vmatprep.subr.bf16.mxu0 (!%p163_p2), %v920_v4  ;;  %v923_v7 = vld [vmem:[%s1181_s1 + $0x88] sm:$0xff] (!%p163_p2)   ;;  %v927_v11 = vld [vmem:[%s1181_s1 + $0x90] sm:$0xff] (!%p163_p2)  }
   0x9   : > { %864 = vmatpush3.bf16.msra.mxu1 (!%p163_p2), %v919_v3  ;;  %v928_v12 = vld [vmem:[%s1181_s1 + $0x58] sm:$0xff] (!%p163_p2)   ;;  %v932_v16 = vld [vmem:[%s1181_s1 + $0x60] sm:$0xff] (!%p163_p2)   ;;  %v936_v20 = vld [vmem:[%s1181_s1 + $0x68] sm:$0xff] (!%p163_p2)  }
   0xa   : > { %865 = vmatprep.subr.bf16.mxu1 (!%p163_p2), %v922_v6  ;;  %v929_v13 = vld [vmem:[%s1181_s1 + $0x18] sm:$0xff] (!%p163_p2)   ;;  %v933_v17 = vld [vmem:[%s1181_s1 + $0x20] sm:$0xff] (!%p163_p2)   ;;  %v937_v21 = vld [vmem:[%s1181_s1 + $0x28] sm:$0xff] (!%p163_p2)  }
   0xb   : > { %844 = vmatpush3.bf16.msra.mxu0 (!%p163_p2), %v921_v5  ;;  %v930_v14 = vld [vmem:[%s1181_s1 + $0xd8] sm:$0xff] (!%p163_p2)   ;;  %v934_v18 = vld [vmem:[%s1181_s1 + $0xe0] sm:$0xff] (!%p163_p2)   ;;  %v938_v22 = vld [vmem:[%s1181_s1 + $0xe8] sm:$0xff] (!%p163_p2)  }
   0xc   : > { %845 = vmatprep.subr.bf16.mxu0 (!%p163_p2), %v924_v8  ;;  %v931_v15 = vld [vmem:[%s1181_s1 + $0x98] sm:$0xff] (!%p163_p2)   ;;  %v935_v19 = vld [vmem:[%s1181_s1 + $0xa0] sm:$0xff] (!%p163_p2)   ;;  %v939_v23 = vld [vmem:[%s1181_s1 + $0xa8] sm:$0xff] (!%p163_p2)  }
   0xd   : > { %866 = vmatpush3.bf16.msra.mxu1 %v923_v7  ;;  %s1186_s16 = smov (!%p187_p3, %s783_s16), 1  ;;  %v940_v24 = vld [vmem:[%s1181_s1 + $0x70] sm:$0xff]   ;;  %v944_v28 = vld [vmem:[%s1181_s1 + $0x78] sm:$0xff]   ;;  %v949_v35 = vld [vmem:[%s1181_s1 + $0x140] sm:$0xff]  }
   0xe   : > { %867 = vmatprep.subr.bf16.mxu1 %v926_v10  ;;  %s907_s19 = smul.u32 24, %s1186_s16  ;;  %v941_v25 = vld [vmem:[%s1181_s1 + $0x30] sm:$0xff]   ;;  %v945_v29 = vld [vmem:[%s1181_s1 + $0x38] sm:$0xff]   ;;  %v951_v39 = vld [vmem:[%s1181_s1 + $0x100] sm:$0xff]   ;;  %s789_s23 = sshll.u32 %s1186_s16, 2 }
   0xf   : > { %846 = vmatpush3.bf16.msra.mxu0 %v925_v9  ;;  %v942_v26 = vld [vmem:[%s1181_s1 + $0xf0] sm:$0xff]   ;;  %v946_v30 = vld [vmem:[%s1181_s1 + $0xf8] sm:$0xff]   ;;  %v952_v41 = vld [vmem:[%s1181_s1 + $0x148] sm:$0xff]   ;;  %s195_s28 = scalar_lea.vmem %s1184_s4, %s789_s23 }
  0x10   : > { %847 = vmatprep.subr.bf16.mxu0 %v928_v12  ;;  %v943_v27 = vld [vmem:[%s1181_s1 + $0xb0] sm:$0xff]   ;;  %s1105_s30 = scalar_lea.vmem %s1180_s0, %s907_s19  ;;  %v948_v33 = vld [vmem:[%s1181_s1 + $0xb8] sm:$0xff]   ;;  %v953_v43 = vld [vmem:[%s1181_s1 + $0x108] sm:$0xff]  }
  0x11   : > { %868 = vmatpush3.bf16.msra.mxu1 %v927_v11  ;;  %v197_v31 = vld [vmem:[%s1105_s30] sm:$0xff]  ;;  %v198_v36 = vld [vmem:[%s1105_s30 + $0x8] sm:$0xff]  ;;  %v954_v44 = vld [vmem:[%s1181_s1 + $0x150] sm:$0xff]  }
  0x12   : > { %869 = vmatprep.subr.bf16.mxu1 %v930_v14  ;;  %v203_v32 = vcombine.high %v197_v31, %v197_v31  ;;  %v209_v34 = vpack.c.bf16 %v197_v31, %v197_v31  ;;  %v204_v38 = vcombine.high %v198_v36, %v198_v36  ;;  %v211_v40 = vpack.c.bf16 %v198_v36, %v198_v36  ;;  %v955_v45 = vld [vmem:[%s1181_s1 + $0x110] sm:$0xff]   ;;  %v956_v46 = vld [vmem:[%s1181_s1 + $0x158] sm:$0xff]   ;;  %v958_v48 = vld [vmem:[%s1181_s1 + $0x160] sm:$0xff]  }
  0x13   : > { %848 = vmatpush3.bf16.msra.mxu0 %v929_v13  ;;  %v957_v47 = vld [vmem:[%s1181_s1 + $0x118] sm:$0xff]   ;;  %v199_v49 = vld [vmem:[%s1105_s30 + $0x10] sm:$0xff]  ;;  %v959_v51 = vld [vmem:[%s1181_s1 + $0x120] sm:$0xff]  }
  0x14   : > { %849 = vmatprep.subr.bf16.mxu0 %v932_v16  ;;  %v210_v37 = vpack.c.bf16 %v203_v32, %v203_v32  ;;  %v212_v42 = vpack.c.bf16 %v204_v38, %v204_v38  ;;  %v205_v50 = vcombine.high %v199_v49, %v199_v49  ;;  %v960_v52 = vld [vmem:[%s1181_s1 + $0x168] sm:$0xff]   ;;  %v962_v55 = vld [vmem:[%s1181_s1 + $0x170] sm:$0xff]   ;;  %v964_v57 = vld [vmem:[%s1181_s1 + $0x178] sm:$0xff]   ;;  %v213_v59 = vpack.c.bf16 %v199_v49, %v199_v49 }
  0x15   : > { %870 = vmatpush3.bf16.msra.mxu1 %v931_v15  ;;  %v961_v54 = vld [vmem:[%s1181_s1 + $0x128] sm:$0xff]   ;;  %v963_v56 = vld [vmem:[%s1181_s1 + $0x130] sm:$0xff]   ;;  %v965_v58 = vld [vmem:[%s1181_s1 + $0x138] sm:$0xff]  }
  0x16   : > { %871 = vmatprep.subr.bf16.mxu1 %v934_v18  ;;  %638 = vmatprep.mubr.bf16.mxu0 %v210_v37  ;;  %v214_v53 = vpack.c.bf16 %v205_v50, %v205_v50  ;;  %v790_v61 = vld [vmem:[%s1182_s2] ss:$0 sm:$0xff] }
  0x17   : > { %850 = vmatpush3.bf16.msra.mxu0 %v933_v17  ;;  %678 = vmatprep.mubr.bf16.mxu1 %v212_v42  ;;  %v726_v13 = vld [vmem:[%s1183_s3] sm:$0xf] }
  0x18   : > { %851 = vmatprep.subr.bf16.mxu0 %v936_v20 }
  0x19   : > { %872 = vmatpush3.bf16.msra.mxu1 %v935_v19 }
  0x1a   : > { %873 = vmatprep.subr.bf16.mxu1 %v938_v22 }
  0x1b   : > { %852 = vmatpush3.bf16.msra.mxu0 %v937_v21 }
  0x1c   : > { %853 = vmatprep.subr.bf16.mxu0 %v940_v24 }
  0x1d   : > { %874 = vmatpush3.bf16.msra.mxu1 %v939_v23 }
  0x1e   : > { %875 = vmatprep.subr.bf16.mxu1 %v942_v26 }
  0x1f   : > { %854 = vmatpush3.bf16.msra.mxu0 %v941_v25 }
  0x20   : > { %855 = vmatprep.subr.bf16.mxu0 %v944_v28 }
  0x21   : > { %876 = vmatpush3.bf16.msra.mxu1 %v943_v27 }
  0x22   : > { %877 = vmatprep.subr.bf16.mxu1 %v946_v30 }
  0x23   : > { %856 = vmatpush3.bf16.msra.mxu0 %v945_v29 }
  0x24   : > { %885 = vmatprep.subr.bf16.mxu0 %v949_v35 }
  0x25   : > { %878 = vmatpush3.bf16.msra.mxu1 %v948_v33 }
  0x26   : > { %639 = vmatmul.mubr.bf16.vlgmr.msra.gmra.mrb[0].mxu0 %v209_v34 }
  0x27   : > { %886 = vmatpush3.bf16.msra.mxu0 %v951_v39  ;;  %718 = vmatprep.mubr.bf16.mxu0 %v214_v53 }
  0x28   : > { %679 = vmatmul.mubr.bf16.vlgmr.msra.gmra.mrb[0].mxu1 %v211_v40  ;;  %887 = vmatprep.subr.bf16.mxu0 %v952_v41 }
  0x2b   : > { %888 = vmatpush3.bf16.msra.mxu0 %v953_v43 }
  0x2c   : > { %889 = vmatprep.subr.bf16.mxu0 %v954_v44 }
  0x2f   : > { %890 = vmatpush3.bf16.msra.mxu0 %v955_v45 }
  0x30   : > { %891 = vmatprep.subr.bf16.mxu0 %v956_v46 }
  0x33   : > { %892 = vmatpush3.bf16.msra.mxu0 %v957_v47 }
  0x34   : > { %893 = vmatprep.subr.bf16.mxu0 %v958_v48 }
  0x37   : > { %894 = vmatpush3.bf16.msra.mxu0 %v959_v51 }
  0x38   : > { %895 = vmatprep.subr.bf16.mxu0 %v960_v52 }
  0x3b   : > { %896 = vmatpush3.bf16.msra.mxu0 %v961_v54 }
  0x3c   : > { %897 = vmatprep.subr.bf16.mxu0 %v962_v55 }
  0x3f   : > { %898 = vmatpush3.bf16.msra.mxu0 %v963_v56 }
  0x40   : > { %899 = vmatprep.subr.bf16.mxu0 %v964_v57 }
  0x43   : > { %900 = vmatpush3.bf16.msra.mxu0 %v965_v58 }
  0x46   : > { %719 = vmatmul.mubr.bf16.vlgmr.msra.gmra.mrb[4].mxu0 %v213_v59 }
  0xf9   : > { %v857_v60 = vpop.f32.mrb[0].mxu0 }
  0xfa   : > { %v858_v62 = vpop.f32.mrb[1].mxu0 }
  0xfb   : > { %v859_v63 = vadd.f32 %v858_v62, %v857_v60  ;;  %v860_v0 = vpop.f32.mrb[2].mxu0  ;;  %v879_v1 = vpop.f32.mrb[0].mxu1 }
  0xfc   : > { %v861_v2 = vpop.f32.mrb[3].mxu0  ;;  %v880_v3 = vpop.f32.mrb[1].mxu1 }
  0xfd   : > { %v641_v4 = vadd.f32 %v859_v63, %v790_v61  ;;  %v881_v5 = vadd.f32 %v880_v3, %v879_v1  ;;  %v882_v6 = vpop.f32.mrb[2].mxu1 }
  0xfe   : > { %v883_v7 = vpop.f32.mrb[3].mxu1 }
  0xff   : > { %v681_v8 = vadd.f32 %v881_v5, %v641_v4 }
 0x119   : > { %v901_v9 = vpop.f32.mrb[4].mxu0 }
 0x11a   : > { %v902_v10 = vpop.f32.mrb[5].mxu0 }
 0x11b   : > { %v903_v11 = vadd.f32 %v902_v10, %v901_v9  ;;  %v904_v12 = vpop.f32.mrb[6].mxu0 }
 0x11c   : > { %v905_v14 = vpop.f32.mrb[7].mxu0 }
 0x11d   : > { %v721_v15 = vadd.f32 %v903_v11, %v681_v8 }
 0x11f   : > { %v727_v16 = vadd.f32 %v726_v13, %v721_v15 }
 0x121   : > { %729 = vst.msk [vmem:[%s195_s28] sm:$0xf] %vm728_vm0, %v727_v16 }
 0x122 PF: > { %s14_s15 = sadd.s32 1, %s973_s15  }
 0x123   : > { %p11_p4 = scmp.ge.s32.totalorder %s14_s15, 4  }
 0x125   :  { %13 = sbr.rel (!%p11_p4) target bundleno = 1 (0x1), region = 66 }

// kernel: segmenter2_forward.25
= control target key start
LH: loop header
LB: loop body
LE: loop exit
PB: predicated region body
PF: predicated region fallthrough
CT: control target
= control target key end

     0   :  { %vm24_vm0 = vcmask 523264   ;;  %v174_v8 = vmov 0.0   ;;  %vm175_vm1 = vmmov 0   ;;  %s237_s0 = inlined_call_operand.vmem [shape: f32[8,64], index: 0, kind: input, shape index: {}]   ;;  %s238_s3 = inlined_call_operand.vmem [shape: bf16[64,64], index: 3, kind: input, shape index: {}]   ;;  %s239_s1 = inlined_call_operand.vmem [shape: f32[1,64], index: 1, kind: input, shape index: {}]   ;;  %s240_s2 = inlined_call_operand.vmem [shape: f32[1,64], index: 2, kind: input, shape index: {}]   ;;  %s241_s4 = inlined_call_operand.vmem [shape: f32[1,64], index: 4, kind: input, shape index: {}]   ;;  %s242_s5 = inlined_call_operand.vmem [shape: f32[8,64], index: 5, kind: output, shape index: {}]  }
   0x1   :  { %v21_v0 = vld [vmem:[%s237_s0] sm:$0xff]  ;;  %154 = vmatprep.subr.bf16.mxu0 %v174_v8  ;;  %v169_v9 = vld [vmem:[%s238_s3 + $0x8] sm:$0xff]   ;;  %v170_v10 = vld [vmem:[%s238_s3 + $0x10] sm:$0xff]   ;;  %162 = vmatprep.mubr.msk.bf16.mxu0 %vm175_vm1, %v174_v8 }
   0x2   :  { %v25_v1 = vsel %vm24_vm0, %v21_v0, 0.0  ;;  %v168_v7 = vld [vmem:[%s238_s3] sm:$0xff]   ;;  %v171_v11 = vld [vmem:[%s238_s3 + $0x18] sm:$0xff]  }
   0x3   :  { %26 = vadd.xlane.f32.xlu0 %v25_v1  ;;  %155 = vmatpush3.bf16.msra.mxu0 %v168_v7  ;;  %v141_v16 = vld [vmem:[%s239_s1] ss:$0 sm:$0xff] }
   0x4   :  { %156 = vmatprep.subr.bf16.mxu0 %v174_v8  ;;  %v142_v18 = vld [vmem:[%s240_s2] ss:$0 sm:$0xff] }
   0x5   :  { %v143_v22 = vld [vmem:[%s241_s4] ss:$0 sm:$0xff] }
   0x7   :  { %157 = vmatpush3.bf16.msra.mxu0 %v169_v9 }
   0x8   :  { %158 = vmatprep.subr.bf16.mxu0 %v174_v8 }
   0xb   :  { %159 = vmatpush3.bf16.msra.mxu0 %v170_v10 }
   0xc   :  { %160 = vmatprep.subr.bf16.mxu0 %v174_v8 }
   0xf   :  { %161 = vmatpush3.bf16.msra.mxu0 %v171_v11 }
  0x90   :  { %v27_v2 = vpop.xlane.xlu0 %26 }
  0x91   :  { %v29_v3 = vmul.f32 0.015625, %v27_v2 }
  0x93   :  { %v30_v4 = vsub.f32 %v21_v0, %v29_v3 }
  0x95   :  { %v31_v5 = vmul.f32 %v30_v4, %v30_v4 }
  0x97   :  { %v32_v6 = vsel %vm24_vm0, %v31_v5, 0.0 }
  0x98   :  { %33 = vadd.xlane.f32.xlu0 %v32_v6 }
 0x125   :  { %v34_v12 = vpop.xlane.xlu0 %33 }
 0x126   :  { %v35_v13 = vmul.f32 0.015625, %v34_v12 }
 0x128   :  { %v36_v14 = vadd.f32 1e-05, %v35_v13 }
 0x12a   :  { %172 = vrsqrt.f32 %v36_v14 }
 0x134   :  { %v173_v15 = vpop.eup %172 }
 0x135   :  { %v38_v17 = vmul.f32 %v173_v15, %v30_v4 }
 0x137   :  { %v45_v19 = vmul.f32 %v141_v16, %v38_v17 }
 0x139   :  { %v52_v20 = vadd.f32 %v142_v18, %v45_v19 }
 0x13b   :  { %v53_v21 = vpack.c.bf16 %v52_v20, %v52_v20 }
 0x13d   :  { %163 = vmatmul.mubr.msk.bf16.vlgmr.msra.gmra.mrb[0].mxu0 %vm24_vm0, %v53_v21 }
 0x210   :  { %v130_v23 = vpop.f32.mrb[0].mxu0 }
 0x211   :  { %v131_v24 = vadd.f32 %v143_v22, %v130_v23  ;;  %v164_v25 = vpop.f32.mrb[1].mxu0 }
 0x212   :  { %v133_v26 = vpop.f32.mrb[2].mxu0 }
 0x213   :  { %136 = vst.msk [vmem:[%s242_s5] sm:$0xff] %vm24_vm0, %v131_v24  ;;  %v165_v27 = vpop.f32.mrb[3].mxu0 }

// kernel: segmenter2_forward.26
= control target key start
LH: loop header
LB: loop body
LE: loop exit
PB: predicated region body
PF: predicated region fallthrough
CT: control target
= control target key end

     0   :  { %vm40_vm0 = vcmask 523264   ;;  %v435_v15 = vmov 0.0   ;;  %vm436_vm1 = vmmov 0   ;;  %s588_s0 = inlined_call_operand.vmem [shape: f32[16,64], index: 0, kind: input, shape index: {}]   ;;  %s589_s3 = inlined_call_operand.vmem [shape: bf16[64,64], index: 3, kind: input, shape index: {}]   ;;  %s590_s4 = inlined_call_operand.vmem [shape: bf16[64,64], index: 4, kind: input, shape index: {}]   ;;  %s591_s5 = inlined_call_operand.vmem [shape: bf16[64,64], index: 5, kind: input, shape index: {}]   ;;  %s592_s1 = inlined_call_operand.vmem [shape: f32[1,64], index: 1, kind: input, shape index: {}]   ;;  %s593_s2 = inlined_call_operand.vmem [shape: f32[1,64], index: 2, kind: input, shape index: {}]   ;;  %s594_s6 = inlined_call_operand.vmem [shape: f32[1,64], index: 6, kind: input, shape index: {}]   ;;  %s595_s7 = inlined_call_operand.vmem [shape: f32[1,64], index: 7, kind: input, shape index: {}]   ;;  %s596_s9 = inlined_call_operand.vmem [shape: f32[16,64], index: 9, kind: output, shape index: {0}]   ;;  %s597_s10 = inlined_call_operand.vmem [shape: f32[16,64], index: 10, kind: output, shape index: {1}]   ;;  %s598_s8 = inlined_call_operand.vmem [shape: f32[1,64], index: 8, kind: input, shape index: {}]   ;;  %s599_s11 = inlined_call_operand.vmem [shape: f32[16,64], index: 11, kind: output, shape index: {2}]  }
   0x1   :  { %v36_v0 = vld [vmem:[%s588_s0] sm:$0xff]  ;;  %v37_v1 = vld [vmem:[%s588_s0 + $0x8] sm:$0xff]  ;;  %381 = vmatprep.subr.bf16.mxu0 %v435_v15  ;;  %393 = vmatprep.subr.bf16.mxu1 %v435_v15  ;;  %v423_v19 = vld [vmem:[%s589_s3 + $0x10] sm:$0xff]  }
   0x2   :  { %v41_v2 = vsel %vm40_vm0, %v36_v0, 0.0  ;;  %v44_v3 = vsel %vm40_vm0, %v37_v1, 0.0  ;;  %v419_v14 = vld [vmem:[%s589_s3] sm:$0xff]   ;;  %v421_v17 = vld [vmem:[%s589_s3 + $0x8] sm:$0xff]   ;;  %v424_v20 = vld [vmem:[%s590_s4 + $0x10] sm:$0xff]   ;;  %389 = vmatprep.mubr.msk.bf16.mxu0 %vm436_vm1, %v435_v15  ;;  %401 = vmatprep.mubr.msk.bf16.mxu1 %vm436_vm1, %v435_v15 }
   0x3   :  { %42 = vadd.xlane.f32.xlu0 %v41_v2  ;;  %v420_v16 = vld [vmem:[%s590_s4] sm:$0xff]   ;;  %382 = vmatpush3.bf16.msra.mxu0 %v419_v14  ;;  %v422_v18 = vld [vmem:[%s590_s4 + $0x8] sm:$0xff]   ;;  %v425_v21 = vld [vmem:[%s589_s3 + $0x18] sm:$0xff]  }
   0x4   :  { %394 = vmatpush3.bf16.msra.mxu1 %v420_v16  ;;  %383 = vmatprep.subr.bf16.mxu0 %v435_v15  ;;  %v426_v22 = vld [vmem:[%s590_s4 + $0x18] sm:$0xff]   ;;  %v346_v31 = vld [vmem:[%s592_s1] ss:$0 sm:$0xff]  ;;  %v428_v41 = vld [vmem:[%s591_s5 + $0x8] sm:$0xff]  }
   0x5   :  { %395 = vmatprep.subr.bf16.mxu1 %v435_v15  ;;  %v347_v35 = vld [vmem:[%s593_s2] ss:$0 sm:$0xff]  ;;  %v429_v42 = vld [vmem:[%s591_s5 + $0x10] sm:$0xff]   ;;  %v430_v43 = vld [vmem:[%s591_s5 + $0x18] sm:$0xff]  }
   0x6   :  { %v427_v39 = vld [vmem:[%s591_s5] sm:$0xff]  }
   0x7   :  { %45 = vadd.xlane.f32.xlu0 %v44_v3  ;;  %384 = vmatpush3.bf16.msra.mxu0 %v421_v17  ;;  %v348_v44 = vld [vmem:[%s594_s6] ss:$0 sm:$0xff] }
   0x8   :  { %396 = vmatpush3.bf16.msra.mxu1 %v422_v18  ;;  %385 = vmatprep.subr.bf16.mxu0 %v435_v15  ;;  %v354_v45 = vld [vmem:[%s595_s7] ss:$0 sm:$0xff] }
   0x9   :  { %397 = vmatprep.subr.bf16.mxu1 %v435_v15  ;;  %v360_v58 = vld [vmem:[%s598_s8] ss:$0 sm:$0xff] }
   0xb   :  { %386 = vmatpush3.bf16.msra.mxu0 %v423_v19 }
   0xc   :  { %398 = vmatpush3.bf16.msra.mxu1 %v424_v20  ;;  %387 = vmatprep.subr.bf16.mxu0 %v435_v15 }
   0xd   :  { %399 = vmatprep.subr.bf16.mxu1 %v435_v15 }
   0xf   :  { %388 = vmatpush3.bf16.msra.mxu0 %v425_v21 }
  0x10   :  { %400 = vmatpush3.bf16.msra.mxu1 %v426_v22  ;;  %405 = vmatprep.subr.bf16.mxu0 %v435_v15 }
  0x90   :  { %v43_v4 = vpop.xlane.xlu0 %42 }
  0x91   :  { %v48_v5 = vmul.f32 0.015625, %v43_v4 }
  0x93   :  { %v50_v6 = vsub.f32 %v36_v0, %v48_v5 }
  0x94   :  { %v46_v7 = vpop.xlane.xlu0 %45 }
  0x95   :  { %v49_v8 = vmul.f32 0.015625, %v46_v7  ;;  %v52_v9 = vmul.f32 %v50_v6, %v50_v6 }
  0x97   :  { %v51_v10 = vsub.f32 %v37_v1, %v49_v8  ;;  %v54_v11 = vsel %vm40_vm0, %v52_v9, 0.0 }
  0x98   :  { %55 = vadd.xlane.f32.xlu1 %v54_v11 }
  0x99   :  { %v53_v12 = vmul.f32 %v51_v10, %v51_v10 }
  0x9b   :  { %v57_v13 = vsel %vm40_vm0, %v53_v12, 0.0 }
  0x9c   :  { %58 = vadd.xlane.f32.xlu1 %v57_v13 }
 0x125   :  { %v56_v23 = vpop.xlane.xlu1 %55 }
 0x126   :  { %v60_v24 = vmul.f32 0.015625, %v56_v23 }
 0x128   :  { %v62_v25 = vadd.f32 1e-05, %v60_v24 }
 0x129   :  { %v59_v26 = vpop.xlane.xlu1 %58 }
 0x12a   :  { %431 = vrsqrt.f32 %v62_v25  ;;  %v61_v27 = vmul.f32 0.015625, %v59_v26 }
 0x12c   :  { %v63_v28 = vadd.f32 1e-05, %v61_v27 }
 0x12e   :  { %433 = vrsqrt.f32 %v63_v28 }
 0x134   :  { %v432_v29 = vpop.eup %431 }
 0x135   :  { %v66_v30 = vmul.f32 %v432_v29, %v50_v6 }
 0x137   :  { %v74_v34 = vmul.f32 %v346_v31, %v66_v30 }
 0x138   :  { %v434_v32 = vpop.eup %433 }
 0x139   :  { %v67_v33 = vmul.f32 %v434_v32, %v51_v10  ;;  %v82_v37 = vadd.f32 %v347_v35, %v74_v34 }
 0x13b   :  { %v75_v36 = vmul.f32 %v346_v31, %v67_v33 }
 0x13d   :  { %v83_v38 = vadd.f32 %v347_v35, %v75_v36 }
 0x13f   :  { %v84_v40 = vpack.c.bf16 %v83_v38, %v82_v37 }
 0x141   :  { %390 = vmatmul.mubr.msk.bf16.vlgmr.msra.gmra.mrb[0].mxu0 %vm40_vm0, %v84_v40  ;;  %402 = vmatmul.mubr.msk.bf16.vlgmr.msra.gmra.mrb[0].mxu1 %vm40_vm0, %v84_v40 }
 0x142   :  { %406 = vmatpush3.bf16.msra.mxu0 %v427_v39  ;;  %413 = vmatprep.mubr.msk.bf16.mxu0 %vm436_vm1, %v435_v15 }
 0x143   :  { %407 = vmatprep.subr.bf16.mxu0 %v435_v15 }
 0x146   :  { %408 = vmatpush3.bf16.msra.mxu0 %v428_v41 }
 0x147   :  { %409 = vmatprep.subr.bf16.mxu0 %v435_v15 }
 0x14a   :  { %410 = vmatpush3.bf16.msra.mxu0 %v429_v42 }
 0x14b   :  { %411 = vmatprep.subr.bf16.mxu0 %v435_v15 }
 0x14e   :  { %412 = vmatpush3.bf16.msra.mxu0 %v430_v43 }
 0x151   :  { %414 = vmatmul.mubr.msk.bf16.vlgmr.msra.gmra.mrb[4].mxu0 %vm40_vm0, %v84_v40 }
 0x214   :  { %v161_v46 = vpop.f32.mrb[0].mxu0  ;;  %v243_v47 = vpop.f32.mrb[0].mxu1 }
 0x215   :  { %v162_v48 = vadd.f32 %v348_v44, %v161_v46  ;;  %v244_v49 = vadd.f32 %v354_v45, %v243_v47  ;;  %v391_v50 = vpop.f32.mrb[1].mxu0  ;;  %v403_v51 = vpop.f32.mrb[1].mxu1 }
 0x216   :  { %v164_v52 = vpop.f32.mrb[2].mxu0  ;;  %v246_v53 = vpop.f32.mrb[2].mxu1 }
 0x217   :  { %168 = vst.msk [vmem:[%s596_s9] sm:$0xff] %vm40_vm0, %v162_v48  ;;  %250 = vst.msk [vmem:[%s597_s10] sm:$0xff] %vm40_vm0, %v244_v49  ;;  %v165_v54 = vadd.f32 %v348_v44, %v164_v52  ;;  %v247_v55 = vadd.f32 %v354_v45, %v246_v53  ;;  %v392_v56 = vpop.f32.mrb[3].mxu0  ;;  %v404_v57 = vpop.f32.mrb[3].mxu1 }
 0x219   :  { %169 = vst.msk [vmem:[%s596_s9 + $0x8] sm:$0xff] %vm40_vm0, %v165_v54  ;;  %251 = vst.msk [vmem:[%s597_s10 + $0x8] sm:$0xff] %vm40_vm0, %v247_v55 }
 0x224   :  { %v325_v59 = vpop.f32.mrb[4].mxu0 }
 0x225   :  { %v326_v60 = vadd.f32 %v360_v58, %v325_v59  ;;  %v415_v61 = vpop.f32.mrb[5].mxu0 }
 0x226   :  { %v328_v62 = vpop.f32.mrb[6].mxu0 }
 0x227   :  { %332 = vst.msk [vmem:[%s599_s11] sm:$0xff] %vm40_vm0, %v326_v60  ;;  %v329_v63 = vadd.f32 %v360_v58, %v328_v62  ;;  %v416_v0 = vpop.f32.mrb[7].mxu0 }
 0x229   :  { %333 = vst.msk [vmem:[%s599_s11 + $0x8] sm:$0xff] %vm40_vm0, %v329_v63 }

// kernel: segmenter2_forward.20
= control target key start
LH: loop header
LB: loop body
LE: loop exit
PB: predicated region body
PF: predicated region fallthrough
CT: control target
= control target key end

     0   :  { %vm31_vm0 = vcmask 523264   ;;  %vm35_vm1 = vcmask 517120   ;;  %v496_v22 = vmov 0   ;;  %v87_v56 = vlaneseq  ;;  %s650_s0 = inlined_call_operand.vmem [shape: f32[10,64], index: 0, kind: input, shape index: {}]   ;;  %s651_s3 = inlined_call_operand.vmem [shape: bf16[64,256], index: 3, kind: input, shape index: {}]   ;;  %s652_s1 = inlined_call_operand.vmem [shape: f32[1,64], index: 1, kind: input, shape index: {}]   ;;  %s653_s2 = inlined_call_operand.vmem [shape: f32[1,64], index: 2, kind: input, shape index: {}]   ;;  %s654_s5 = inlined_call_operand.vmem [shape: bf16[256,64], index: 5, kind: input, shape index: {}]   ;;  %s655_s4 = inlined_call_operand.vmem [shape: f32[1,256], index: 4, kind: input, shape index: {}]   ;;  %s656_s6 = inlined_call_operand.vmem [shape: f32[1,64], index: 6, kind: input, shape index: {}]   ;;  %s657_s7 = inlined_call_operand.vmem [shape: f32[10,64], index: 7, kind: output, shape index: {}]  }
   0x1   :  { %v540_v0 = vld [vmem:[%s650_s0] sm:$0xff]  ;;  %v545_v1 = vld [vmem:[%s650_s0 + $0x8] sm:$0x3]  ;;  %v459_v16 = vld [vmem:[%s651_s3 + $0x14] ss:$8 sps:$4 sm:$0xff]   ;;  %172 = vmatprep.mubr.bf16.mxu0 %v496_v22 }
   0x2   :  { %v32_v2 = vsel %vm31_vm0, %v540_v0, 0.0  ;;  %v36_v3 = vsel %vm35_vm1, %v545_v1, 0.0  ;;  %v456_v14 = vld [vmem:[%s651_s3 + $0x4] ss:$8 sps:$4 sm:$0xff]   ;;  %v458_v15 = vld [vmem:[%s651_s3] ss:$8 sps:$4 sm:$0xff]  }
   0x3   :  { %33 = vadd.xlane.f32.xlu0 %v32_v2  ;;  %140 = vmatprep.subr.bf16.mxu0 %v456_v14  ;;  %v461_v17 = vld [vmem:[%s651_s3 + $0x10] ss:$8 sps:$4 sm:$0xff]   ;;  %v462_v18 = vld [vmem:[%s651_s3 + $0x24] ss:$8 sps:$4 sm:$0xff]   ;;  %v464_v19 = vld [vmem:[%s651_s3 + $0x20] ss:$8 sps:$4 sm:$0xff]  }
   0x4   :  { %141 = vmatpush1.bf16.msra.mxu0 %v458_v15  ;;  %v465_v20 = vld [vmem:[%s651_s3 + $0x34] ss:$8 sps:$4 sm:$0xff]   ;;  %v467_v21 = vld [vmem:[%s651_s3 + $0x30] ss:$8 sps:$4 sm:$0xff]   ;;  %v405_v31 = vld [vmem:[%s652_s1] ss:$0 sm:$0xff] }
   0x5   :  { %142 = vmatprep.subr.bf16.mxu0 %v459_v16  ;;  %v406_v35 = vld [vmem:[%s653_s2] ss:$0 sm:$0xff]  ;;  %v470_v42 = vld [vmem:[%s654_s5 + $0x48] sm:$0xff]   ;;  %v472_v44 = vld [vmem:[%s654_s5 + $0x50] sm:$0xff]   ;;  %v88_v57 = vshrl.u32 %v87_v56, 7 }
   0x6   :  { %v468_v40 = vld [vmem:[%s654_s5 + $0x40] sm:$0xff]   ;;  %v471_v43 = vld [vmem:[%s654_s5 + $0x8] sm:$0xff]   ;;  %v473_v45 = vld [vmem:[%s654_s5 + $0x10] sm:$0xff]  }
   0x7   :  { %37 = vadd.xlane.f32.xlu0 %v36_v3  ;;  %v469_v41 = vld [vmem:[%s654_s5] sm:$0xff]   ;;  %433 = vmatprep.subr.bf16.mxu1 %v468_v40  ;;  %v474_v46 = vld [vmem:[%s654_s5 + $0x58] sm:$0xff]   ;;  %v478_v50 = vld [vmem:[%s654_s5 + $0x68] sm:$0xff]   ;;  %v89_v58 = vsub.s32 0, %v88_v57  ;;  %v93_v60 = vsub.s32 1, %v88_v57 }
   0x8   :  { %143 = vmatpush1.bf16.msra.mxu0 %v461_v17  ;;  %434 = vmatpush3.bf16.msra.mxu1 %v469_v41  ;;  %v475_v47 = vld [vmem:[%s654_s5 + $0x18] sm:$0xff]   ;;  %v476_v48 = vld [vmem:[%s654_s5 + $0x60] sm:$0xff]   ;;  %v479_v51 = vld [vmem:[%s654_s5 + $0x28] sm:$0xff]  }
   0x9   :  { %144 = vmatprep.subr.bf16.mxu0 %v462_v18  ;;  %435 = vmatprep.subr.bf16.mxu1 %v470_v42  ;;  %v477_v49 = vld [vmem:[%s654_s5 + $0x20] sm:$0xff]   ;;  %v480_v52 = vld [vmem:[%s654_s5 + $0x70] sm:$0xff]   ;;  %v482_v54 = vld [vmem:[%s654_s5 + $0x78] sm:$0xff]  }
   0xa   :  { %v481_v53 = vld [vmem:[%s654_s5 + $0x30] sm:$0xff]   ;;  %v483_v55 = vld [vmem:[%s654_s5 + $0x38] sm:$0xff]   ;;  %v85_v59 = vld [vmem:[%s655_s4] sm:$0x3] }
   0xb   :  { %v90_v61 = vrot.slane %v85_v59, %v89_v58  ;;  %v94_v62 = vrot.slane %v85_v59, %v93_v60 }
   0xc   :  { %145 = vmatpush1.bf16.msra.mxu0 %v464_v19  ;;  %436 = vmatpush3.bf16.msra.mxu1 %v471_v43 }
   0xd   :  { %146 = vmatprep.subr.bf16.mxu0 %v465_v20  ;;  %437 = vmatprep.subr.bf16.mxu1 %v472_v44 }
  0x10   :  { %147 = vmatpush1.bf16.msra.mxu0 %v467_v21  ;;  %438 = vmatpush3.bf16.msra.mxu1 %v473_v45 }
  0x11   :  { %439 = vmatprep.subr.bf16.mxu1 %v474_v46 }
  0x14   :  { %440 = vmatpush3.bf16.msra.mxu1 %v475_v47 }
  0x15   :  { %441 = vmatprep.subr.bf16.mxu1 %v476_v48  ;;  %v416_v48 = vld [vmem:[%s656_s6] ss:$0 sm:$0xff] }
  0x18   :  { %442 = vmatpush3.bf16.msra.mxu1 %v477_v49 }
  0x19   :  { %443 = vmatprep.subr.bf16.mxu1 %v478_v50 }
  0x1c   :  { %444 = vmatpush3.bf16.msra.mxu1 %v479_v51 }
  0x1d   :  { %445 = vmatprep.subr.bf16.mxu1 %v480_v52 }
  0x20   :  { %446 = vmatpush3.bf16.msra.mxu1 %v481_v53 }
  0x21   :  { %447 = vmatprep.subr.bf16.mxu1 %v482_v54 }
  0x24   :  { %448 = vmatpush3.bf16.msra.mxu1 %v483_v55 }
  0x90   :  { %v34_v4 = vpop.xlane.xlu0 %33 }
  0x91   :  { %v40_v5 = vmul.f32 0.015625, %v34_v4 }
  0x93   :  { %v42_v6 = vsub.f32 %v540_v0, %v40_v5 }
  0x94   :  { %v38_v7 = vpop.xlane.xlu0 %37 }
  0x95   :  { %v41_v8 = vmul.f32 0.015625, %v38_v7  ;;  %v44_v9 = vmul.f32 %v42_v6, %v42_v6 }
  0x97   :  { %v43_v10 = vsub.f32 %v545_v1, %v41_v8  ;;  %v46_v11 = vsel %vm31_vm0, %v44_v9, 0.0 }
  0x98   :  { %47 = vadd.xlane.f32.xlu1 %v46_v11 }
  0x99   :  { %v45_v12 = vmul.f32 %v43_v10, %v43_v10 }
  0x9b   :  { %v49_v13 = vsel %vm35_vm1, %v45_v12, 0.0 }
  0x9c   :  { %50 = vadd.xlane.f32.xlu1 %v49_v13 }
 0x125   :  { %v48_v23 = vpop.xlane.xlu1 %47 }
 0x126   :  { %v52_v24 = vmul.f32 0.015625, %v48_v23 }
 0x128   :  { %v54_v25 = vadd.f32 1e-05, %v52_v24 }
 0x129   :  { %v51_v26 = vpop.xlane.xlu1 %50 }
 0x12a   :  { %484 = vrsqrt.f32 %v54_v25  ;;  %v53_v27 = vmul.f32 0.015625, %v51_v26 }
 0x12c   :  { %v55_v28 = vadd.f32 1e-05, %v53_v27 }
 0x12e   :  { %486 = vrsqrt.f32 %v55_v28 }
 0x134   :  { %v485_v29 = vpop.eup %484 }
 0x135   :  { %v58_v30 = vmul.f32 %v485_v29, %v42_v6 }
 0x137   :  { %v66_v34 = vmul.f32 %v405_v31, %v58_v30 }
 0x138   :  { %v487_v32 = vpop.eup %486 }
 0x139   :  { %v59_v33 = vmul.f32 %v487_v32, %v43_v10  ;;  %v74_v37 = vadd.f32 %v406_v35, %v66_v34 }
 0x13b   :  { %v67_v36 = vmul.f32 %v405_v31, %v59_v33 }
 0x13d   :  { %v75_v38 = vadd.f32 %v406_v35, %v67_v36 }
 0x13f   :  { %v76_v39 = vpack.c.bf16 %v75_v38, %v74_v37 }
 0x141   :  { %415 = vmatmul.mubr.msk.bf16.vlgmr.msra.gmra.mrb[0].mxu0 %vm31_vm0, %v76_v39 }
 0x214   :  { %v174_v63 = vpop.f32.mrb[0].mxu0 }
 0x215   :  { %v175_v2 = vadd.f32 %v174_v63, %v90_v61  ;;  %v176_v3 = vpop.f32.mrb[1].mxu0 }
 0x216   :  { %v177_v4 = vadd.f32 %v176_v3, %v94_v62  ;;  %v178_v5 = vpop.f32.mrb[2].mxu0 }
 0x217   :  { %v187_v6 = vmul.f32 0.044715, %v175_v2  ;;  %v179_v7 = vadd.f32 %v178_v5, %v90_v61  ;;  %v180_v8 = vpop.f32.mrb[3].mxu0  ;;  %v183_v35 = vmul.f32 0.5, %v175_v2 }
 0x218   :  { %v188_v9 = vmul.f32 0.044715, %v177_v4  ;;  %v181_v10 = vadd.f32 %v180_v8, %v94_v62  ;;  %v184_v38 = vmul.f32 0.5, %v177_v4 }
 0x219   :  { %v191_v11 = vmul.f32 %v187_v6, %v175_v2  ;;  %v189_v12 = vmul.f32 0.044715, %v179_v7  ;;  %v185_v36 = vmul.f32 0.5, %v179_v7 }
 0x21a   :  { %v190_v13 = vmul.f32 0.044715, %v181_v10  ;;  %v192_v14 = vmul.f32 %v188_v9, %v177_v4  ;;  %v186_v39 = vmul.f32 0.5, %v181_v10 }
 0x21b   :  { %v195_v15 = vmul.f32 %v191_v11, %v175_v2  ;;  %v193_v16 = vmul.f32 %v189_v12, %v179_v7 }
 0x21c   :  { %v194_v17 = vmul.f32 %v190_v13, %v181_v10  ;;  %v196_v18 = vmul.f32 %v192_v14, %v177_v4 }
 0x21d   :  { %v197_v19 = vmul.f32 %v193_v16, %v179_v7  ;;  %v199_v20 = vadd.f32 %v195_v15, %v175_v2 }
 0x21e   :  { %v198_v21 = vmul.f32 %v194_v17, %v181_v10  ;;  %v200_v22 = vadd.f32 %v196_v18, %v177_v4 }
 0x21f   :  { %v201_v23 = vadd.f32 %v197_v19, %v179_v7  ;;  %v203_v24 = vmul.f32 0.7978846, %v199_v20 }
 0x220   :  { %v202_v25 = vadd.f32 %v198_v21, %v181_v10  ;;  %v204_v26 = vmul.f32 0.7978846, %v200_v22 }
 0x221   :  { %v205_v27 = vmul.f32 0.7978846, %v201_v23  ;;  %488 = vtanh.f32 %v203_v24 }
 0x222   :  { %v206_v28 = vmul.f32 0.7978846, %v202_v25  ;;  %490 = vtanh.f32 %v204_v26 }
 0x223   :  { %492 = vtanh.f32 %v205_v27 }
 0x224   :  { %494 = vtanh.f32 %v206_v28 }
 0x22b   :  { %v489_v29 = vpop.eup %488 }
 0x22c   :  { %v491_v30 = vpop.eup %490  ;;  %v211_v31 = vadd.f32 1.0, %v489_v29 }
 0x22d   :  { %v493_v32 = vpop.eup %492  ;;  %v212_v33 = vadd.f32 1.0, %v491_v30 }
 0x22e   :  { %v495_v34 = vpop.eup %494  ;;  %v213_v37 = vadd.f32 1.0, %v493_v32  ;;  %v215_v41 = vmul.f32 %v211_v31, %v183_v35 }
 0x22f   :  { %v214_v40 = vadd.f32 1.0, %v495_v34  ;;  %v216_v43 = vmul.f32 %v212_v33, %v184_v38 }
 0x230   :  { %v217_v42 = vmul.f32 %v213_v37, %v185_v36 }
 0x231   :  { %v218_v44 = vmul.f32 %v214_v40, %v186_v39 }
 0x232   :  { %v219_v45 = vpack.c.bf16 %v217_v42, %v215_v41 }
 0x233   :  { %v220_v46 = vpack.c.bf16 %v218_v44, %v216_v43 }
 0x235   :  { %388 = vmatprep.mubr.bf16.mxu1 %v220_v46 }
 0x236   :  { %389 = vmatmul.mubr.bf16.vlgmr.msra.gmra.mrb[0].mxu1 %v219_v45 }
 0x309   :  { %v449_v47 = vpop.f32.mrb[0].mxu1 }
 0x30a   :  { %v450_v49 = vpop.f32.mrb[1].mxu1 }
 0x30b   :  { %v451_v50 = vadd.f32 %v450_v49, %v449_v47  ;;  %v452_v51 = vpop.f32.mrb[2].mxu1 }
 0x30c   :  { %v453_v52 = vpop.f32.mrb[3].mxu1 }
 0x30d   :  { %v391_v53 = vadd.f32 %v451_v50, %v416_v48  ;;  %v454_v54 = vadd.f32 %v453_v52, %v452_v51 }
 0x30f   :  { %v397_v55 = vadd.f32 %v391_v53, %v540_v0  ;;  %v394_v56 = vadd.f32 %v454_v54, %v416_v48 }
 0x311   :  { %399 = vst.msk [vmem:[%s657_s7] sm:$0xff] %vm31_vm0, %v397_v55  ;;  %v398_v57 = vadd.f32 %v394_v56, %v545_v1 }
 0x313   :  { %400 = vst.msk [vmem:[%s657_s7 + $0x8] sm:$0x3] %vm35_vm1, %v398_v57 }

// kernel: segmenter2_forward.27
= control target key start
LH: loop header
LB: loop body
LE: loop exit
PB: predicated region body
PF: predicated region fallthrough
CT: control target
= control target key end

     0   :  { %s466_s12 = smov 0   ;;  %s501_s0 = inlined_call_operand.vmem [shape: f32[2,8,64], index: 0, kind: input, shape index: {}]   ;;  %s502_s1 = inlined_call_operand.vmem [shape: f32[2,8,64], index: 1, kind: input, shape index: {}]   ;;  %s503_s2 = inlined_call_operand.vmem [shape: f32[2,8,64], index: 2, kind: input, shape index: {}]   ;;  %s504_s3 = inlined_call_operand.vmem [shape: f32[2,8,64], index: 3, kind: output, shape index: {}]  }
   0x1 LB: > { %s393_s13 = sadd.s32 4294967295, %s442_s12   ;;  %p397_p0 = scmp.ge.s32.totalorder %s442_s12, 1  ;;  %s442_s12 = sphi %s466_s12, %s13_s12  }
   0x2   : > { %p154_p1 = scmp.lt.s32.totalorder %s442_s12, 3 }
   0x4   : > { %p155_p2 = pnand %p397_p0, %p154_p1 }
   0x5   : > { %p184_p3 = scmp.lt.s32.totalorder (!%p155_p2), %s393_s13, 1  ;;  %v444_v0 = vmov (!%p155_p2), 0.0   ;;  %vm445_vm0 = vmmov (!%p155_p2), 0   ;;  %vm208_vm1 = vcmask (!%p155_p2), 523264   ;;  %vm255_vm2 = vcmask (!%p155_p2), 64512  }
   0x6   : > { %158 = sbr.rel (%p155_p2) target bundleno = 770 (0x302), region = 32  ;;  %410 = vmatprep.subr.bf16.mxu0 (!%p155_p2), %v444_v0  ;;  %412 = vmatprep.mubr.msk.bf16.mxu0 (!%p155_p2), %vm445_vm0, %v444_v0  ;;  %vm271_vm3 = vcmask (!%p155_p2), 1043456  }
   0x7   : > { %416 = vmatprep.subr.bf16.mxu1 (!%p155_p2), %v444_v0  ;;  %418 = vmatprep.mubr.msk.bf16.mxu1 (!%p155_p2), %vm445_vm0, %v444_v0 }
   0xd   : > { %s506_s13 = smov (!%p184_p3, %s393_s13), 1 }
   0xe   : > { %s474_s14 = sshll.u32 %s506_s13, 3 }
   0xf   : > { %s191_s17 = scalar_lea.vmem %s502_s1, %s474_s14  ;;  %s187_s20 = scalar_lea.vmem %s501_s0, %s474_s14 }
  0x10   : > { %v202_v1 = vld [vmem:[%s191_s17] sm:$0xff]  ;;  %s195_s23 = scalar_lea.vmem %s503_s2, %s474_s14  ;;  %s199_s26 = scalar_lea.vmem %s504_s3, %s474_s14 }
  0x11   : > { %v201_v2 = vld [vmem:[%s187_s20] sm:$0xff]  ;;  %v206_v3 = vpack.c.bf16 %v202_v1, %v202_v1 }
  0x12   : > { %v204_v5 = vmul.f32 0.125, %v201_v2  ;;  %v203_v17 = vld [vmem:[%s195_s23] sm:$0xff] }
  0x13   : > { %v213_v4 = vsel %vm208_vm1, %v206_v3, 0  ;;  %v207_v18 = vpack.c.bf16 %v203_v17, %v203_v17 }
  0x14   : > { %411 = vmatpush3.bf16.xpose.msra.mxu0 %v213_v4  ;;  %v205_v6 = vpack.c.bf16 %v204_v5, %v204_v5 }
  0x15   : > { %v273_v19 = vsel %vm271_vm3, %v207_v18, 0 }
  0x16   : > { %417 = vmatpush3.bf16.msra.mxu1 %v273_v19 }
  0x1b   : > { %413 = vmatmul.mubr.msk.bf16.vlgmr.msra.gmra.mrb[0].mxu0 %vm208_vm1, %v205_v6 }
  0xee   : > { %v249_v7 = vpop.f32.mrb[0].mxu0 }
  0xef   : > { %v414_v8 = vpop.f32.mrb[1].mxu0  ;;  %v256_v9 = vsel %vm255_vm2, %v249_v7, -inf }
  0xf0   : > { %257 = vmax.xlane.f32.xlu0 %v256_v9  ;;  %v252_v10 = vpop.f32.mrb[2].mxu0 }
  0xf1   : > { %v415_v11 = vpop.f32.mrb[3].mxu0 }
 0x17d   : > { %v258_v12 = vpop.xlane.xlu0 %257 }
 0x17e   : > { %v259_v13 = vsub.f32 %v249_v7, %v258_v12 }
 0x180   : > { %v260_v14 = vmul.f32 1.442695, %v259_v13 }
 0x182   : > { %432 = vpow2.f32 %v260_v14 }
 0x18c   : > { %v433_v15 = vpop.eup %432 }
 0x18d   : > { %v262_v16 = vsel %vm255_vm2, %v433_v15, 0.0 }
 0x18e   : > { %263 = vadd.xlane.f32.xlu0 %v262_v16 }
 0x21b   : > { %v264_v20 = vpop.xlane.xlu0 %263 }
 0x21c   : > { %434 = vrcp.f32 %v264_v20 }
 0x226   : > { %v435_v21 = vpop.eup %434 }
 0x227   : > { %v266_v22 = vmul.f32 %v435_v21, %v433_v15 }
 0x229   : > { %v267_v23 = vpack.c.bf16 %v266_v22, %v266_v22 }
 0x22b   : > { %419 = vmatmul.mubr.msk.bf16.vlgmr.msra.gmra.mrb[0].mxu1 %vm255_vm2, %v267_v23 }
 0x2fe   : > { %v309_v24 = vpop.f32.mrb[0].mxu1 }
 0x2ff   : > { %315 = vst.msk [vmem:[%s199_s26] sm:$0xff] %vm208_vm1, %v309_v24  ;;  %v420_v25 = vpop.f32.mrb[1].mxu1 }
 0x300   : > { %v312_v26 = vpop.f32.mrb[2].mxu1 }
 0x301   : > { %v421_v27 = vpop.f32.mrb[3].mxu1 }
 0x302 PF: > { %s13_s12 = sadd.s32 1, %s442_s12  }
 0x303   : > { %p10_p4 = scmp.ge.s32.totalorder %s13_s12, 4  }
 0x305   :  { %12 = sbr.rel (!%p10_p4) target bundleno = 1 (0x1), region = 68 }

// kernel: segmenter2_forward.28
= control target key start
LH: loop header
LB: loop body
LE: loop exit
PB: predicated region body
PF: predicated region fallthrough
CT: control target
= control target key end

     0   :  { %v144_v0 = vmov 0.0   ;;  %vm145_vm0 = vmmov 0   ;;  %vm60_vm1 = vcmask 523264   ;;  %s207_s2 = inlined_call_operand.vmem [shape: bf16[64,64], index: 2, kind: input, shape index: {}]   ;;  %s208_s1 = inlined_call_operand.vmem [shape: f32[16,64], index: 1, kind: input, shape index: {}]   ;;  %s209_s3 = inlined_call_operand.vmem [shape: f32[1,64], index: 3, kind: input, shape index: {}]   ;;  %s210_s0 = inlined_call_operand.vmem [shape: f32[16,64], index: 0, kind: input, shape index: {}]   ;;  %s211_s4 = inlined_call_operand.vmem [shape: f32[16,64], index: 4, kind: output, shape index: {}]  }
   0x1   :  { %126 = vmatprep.subr.bf16.mxu0 %v144_v0  ;;  %v140_v1 = vld [vmem:[%s207_s2] sm:$0xff]   ;;  %134 = vmatprep.mubr.msk.bf16.mxu0 %vm145_vm0, %v144_v0  ;;  %v141_v2 = vld [vmem:[%s207_s2 + $0x8] sm:$0xff]   ;;  %v142_v3 = vld [vmem:[%s207_s2 + $0x10] sm:$0xff]  }
   0x2   :  { %127 = vmatpush3.bf16.msra.mxu0 %v140_v1  ;;  %v143_v4 = vld [vmem:[%s207_s2 + $0x18] sm:$0xff]   ;;  %v18_v5 = vld [vmem:[%s208_s1] sm:$0xff]  ;;  %v19_v6 = vld [vmem:[%s208_s1 + $0x8] sm:$0xff] }
   0x3   :  { %128 = vmatprep.subr.bf16.mxu0 %v144_v0  ;;  %v20_v7 = vpack.c.bf16 %v19_v6, %v18_v5  ;;  %v115_v8 = vld [vmem:[%s209_s3] ss:$0 sm:$0xff]  ;;  %v106_v14 = vld [vmem:[%s210_s0 + $0x8] sm:$0xff] }
   0x4   :  { %v105_v10 = vld [vmem:[%s210_s0] sm:$0xff] }
   0x6   :  { %129 = vmatpush3.bf16.msra.mxu0 %v141_v2 }
   0x7   :  { %130 = vmatprep.subr.bf16.mxu0 %v144_v0 }
   0xa   :  { %131 = vmatpush3.bf16.msra.mxu0 %v142_v3 }
   0xb   :  { %132 = vmatprep.subr.bf16.mxu0 %v144_v0 }
   0xe   :  { %133 = vmatpush3.bf16.msra.mxu0 %v143_v4 }
  0x11   :  { %135 = vmatmul.mubr.msk.bf16.vlgmr.msra.gmra.mrb[0].mxu0 %vm60_vm1, %v20_v7 }
  0xe4   :  { %v98_v9 = vpop.f32.mrb[0].mxu0 }
  0xe5   :  { %v99_v11 = vadd.f32 %v115_v8, %v98_v9  ;;  %v136_v12 = vpop.f32.mrb[1].mxu0 }
  0xe6   :  { %v101_v13 = vpop.f32.mrb[2].mxu0 }
  0xe7   :  { %v107_v15 = vadd.f32 %v105_v10, %v99_v11  ;;  %v102_v16 = vadd.f32 %v115_v8, %v101_v13  ;;  %v137_v17 = vpop.f32.mrb[3].mxu0 }
  0xe9   :  { %109 = vst.msk [vmem:[%s211_s4] sm:$0xff] %vm60_vm1, %v107_v15  ;;  %v108_v18 = vadd.f32 %v106_v14, %v102_v16 }
  0xeb   :  { %110 = vst.msk [vmem:[%s211_s4 + $0x8] sm:$0xff] %vm60_vm1, %v108_v18 }

// kernel: segmenter2_forward.29
= control target key start
LH: loop header
LB: loop body
LE: loop exit
PB: predicated region body
PF: predicated region fallthrough
CT: control target
= control target key end

     0   :  { %vm31_vm0 = vcmask 523264   ;;  %v495_v22 = vmov 0   ;;  %v86_v56 = vlaneseq  ;;  %s649_s0 = inlined_call_operand.vmem [shape: f32[16,64], index: 0, kind: input, shape index: {}]   ;;  %s650_s3 = inlined_call_operand.vmem [shape: bf16[64,256], index: 3, kind: input, shape index: {}]   ;;  %s651_s1 = inlined_call_operand.vmem [shape: f32[1,64], index: 1, kind: input, shape index: {}]   ;;  %s652_s2 = inlined_call_operand.vmem [shape: f32[1,64], index: 2, kind: input, shape index: {}]   ;;  %s653_s5 = inlined_call_operand.vmem [shape: bf16[256,64], index: 5, kind: input, shape index: {}]   ;;  %s654_s4 = inlined_call_operand.vmem [shape: f32[1,256], index: 4, kind: input, shape index: {}]   ;;  %s655_s6 = inlined_call_operand.vmem [shape: f32[1,64], index: 6, kind: input, shape index: {}]   ;;  %s656_s7 = inlined_call_operand.vmem [shape: f32[16,64], index: 7, kind: output, shape index: {}]  }
   0x1   :  { %v539_v0 = vld [vmem:[%s649_s0] sm:$0xff]  ;;  %v544_v1 = vld [vmem:[%s649_s0 + $0x8] sm:$0xff]  ;;  %v458_v16 = vld [vmem:[%s650_s3 + $0x14] ss:$8 sps:$4 sm:$0xff]   ;;  %171 = vmatprep.mubr.bf16.mxu0 %v495_v22 }
   0x2   :  { %v32_v2 = vsel %vm31_vm0, %v539_v0, 0.0  ;;  %v35_v3 = vsel %vm31_vm0, %v544_v1, 0.0  ;;  %v455_v14 = vld [vmem:[%s650_s3 + $0x4] ss:$8 sps:$4 sm:$0xff]   ;;  %v457_v15 = vld [vmem:[%s650_s3] ss:$8 sps:$4 sm:$0xff]  }
   0x3   :  { %33 = vadd.xlane.f32.xlu0 %v32_v2  ;;  %139 = vmatprep.subr.bf16.mxu0 %v455_v14  ;;  %v460_v17 = vld [vmem:[%s650_s3 + $0x10] ss:$8 sps:$4 sm:$0xff]   ;;  %v461_v18 = vld [vmem:[%s650_s3 + $0x24] ss:$8 sps:$4 sm:$0xff]   ;;  %v463_v19 = vld [vmem:[%s650_s3 + $0x20] ss:$8 sps:$4 sm:$0xff]  }
   0x4   :  { %140 = vmatpush1.bf16.msra.mxu0 %v457_v15  ;;  %v464_v20 = vld [vmem:[%s650_s3 + $0x34] ss:$8 sps:$4 sm:$0xff]   ;;  %v466_v21 = vld [vmem:[%s650_s3 + $0x30] ss:$8 sps:$4 sm:$0xff]   ;;  %v404_v31 = vld [vmem:[%s651_s1] ss:$0 sm:$0xff] }
   0x5   :  { %141 = vmatprep.subr.bf16.mxu0 %v458_v16  ;;  %v405_v35 = vld [vmem:[%s652_s2] ss:$0 sm:$0xff]  ;;  %v469_v42 = vld [vmem:[%s653_s5 + $0x48] sm:$0xff]   ;;  %v471_v44 = vld [vmem:[%s653_s5 + $0x50] sm:$0xff]   ;;  %v87_v57 = vshrl.u32 %v86_v56, 7 }
   0x6   :  { %v467_v40 = vld [vmem:[%s653_s5 + $0x40] sm:$0xff]   ;;  %v470_v43 = vld [vmem:[%s653_s5 + $0x8] sm:$0xff]   ;;  %v472_v45 = vld [vmem:[%s653_s5 + $0x10] sm:$0xff]  }
   0x7   :  { %36 = vadd.xlane.f32.xlu0 %v35_v3  ;;  %v468_v41 = vld [vmem:[%s653_s5] sm:$0xff]   ;;  %432 = vmatprep.subr.bf16.mxu1 %v467_v40  ;;  %v473_v46 = vld [vmem:[%s653_s5 + $0x58] sm:$0xff]   ;;  %v477_v50 = vld [vmem:[%s653_s5 + $0x68] sm:$0xff]   ;;  %v88_v58 = vsub.s32 0, %v87_v57  ;;  %v92_v60 = vsub.s32 1, %v87_v57 }
   0x8   :  { %142 = vmatpush1.bf16.msra.mxu0 %v460_v17  ;;  %433 = vmatpush3.bf16.msra.mxu1 %v468_v41  ;;  %v474_v47 = vld [vmem:[%s653_s5 + $0x18] sm:$0xff]   ;;  %v475_v48 = vld [vmem:[%s653_s5 + $0x60] sm:$0xff]   ;;  %v478_v51 = vld [vmem:[%s653_s5 + $0x28] sm:$0xff]  }
   0x9   :  { %143 = vmatprep.subr.bf16.mxu0 %v461_v18  ;;  %434 = vmatprep.subr.bf16.mxu1 %v469_v42  ;;  %v476_v49 = vld [vmem:[%s653_s5 + $0x20] sm:$0xff]   ;;  %v479_v52 = vld [vmem:[%s653_s5 + $0x70] sm:$0xff]   ;;  %v481_v54 = vld [vmem:[%s653_s5 + $0x78] sm:$0xff]  }
   0xa   :  { %v480_v53 = vld [vmem:[%s653_s5 + $0x30] sm:$0xff]   ;;  %v482_v55 = vld [vmem:[%s653_s5 + $0x38] sm:$0xff]   ;;  %v84_v59 = vld [vmem:[%s654_s4] sm:$0x3] }
   0xb   :  { %v89_v61 = vrot.slane %v84_v59, %v88_v58  ;;  %v93_v62 = vrot.slane %v84_v59, %v92_v60 }
   0xc   :  { %144 = vmatpush1.bf16.msra.mxu0 %v463_v19  ;;  %435 = vmatpush3.bf16.msra.mxu1 %v470_v43 }
   0xd   :  { %145 = vmatprep.subr.bf16.mxu0 %v464_v20  ;;  %436 = vmatprep.subr.bf16.mxu1 %v471_v44 }
  0x10   :  { %146 = vmatpush1.bf16.msra.mxu0 %v466_v21  ;;  %437 = vmatpush3.bf16.msra.mxu1 %v472_v45 }
  0x11   :  { %438 = vmatprep.subr.bf16.mxu1 %v473_v46 }
  0x14   :  { %439 = vmatpush3.bf16.msra.mxu1 %v474_v47 }
  0x15   :  { %440 = vmatprep.subr.bf16.mxu1 %v475_v48  ;;  %v415_v48 = vld [vmem:[%s655_s6] ss:$0 sm:$0xff] }
  0x18   :  { %441 = vmatpush3.bf16.msra.mxu1 %v476_v49 }
  0x19   :  { %442 = vmatprep.subr.bf16.mxu1 %v477_v50 }
  0x1c   :  { %443 = vmatpush3.bf16.msra.mxu1 %v478_v51 }
  0x1d   :  { %444 = vmatprep.subr.bf16.mxu1 %v479_v52 }
  0x20   :  { %445 = vmatpush3.bf16.msra.mxu1 %v480_v53 }
  0x21   :  { %446 = vmatprep.subr.bf16.mxu1 %v481_v54 }
  0x24   :  { %447 = vmatpush3.bf16.msra.mxu1 %v482_v55 }
  0x90   :  { %v34_v4 = vpop.xlane.xlu0 %33 }
  0x91   :  { %v39_v5 = vmul.f32 0.015625, %v34_v4 }
  0x93   :  { %v41_v6 = vsub.f32 %v539_v0, %v39_v5 }
  0x94   :  { %v37_v7 = vpop.xlane.xlu0 %36 }
  0x95   :  { %v40_v8 = vmul.f32 0.015625, %v37_v7  ;;  %v43_v9 = vmul.f32 %v41_v6, %v41_v6 }
  0x97   :  { %v42_v10 = vsub.f32 %v544_v1, %v40_v8  ;;  %v45_v11 = vsel %vm31_vm0, %v43_v9, 0.0 }
  0x98   :  { %46 = vadd.xlane.f32.xlu1 %v45_v11 }
  0x99   :  { %v44_v12 = vmul.f32 %v42_v10, %v42_v10 }
  0x9b   :  { %v48_v13 = vsel %vm31_vm0, %v44_v12, 0.0 }
  0x9c   :  { %49 = vadd.xlane.f32.xlu1 %v48_v13 }
 0x125   :  { %v47_v23 = vpop.xlane.xlu1 %46 }
 0x126   :  { %v51_v24 = vmul.f32 0.015625, %v47_v23 }
 0x128   :  { %v53_v25 = vadd.f32 1e-05, %v51_v24 }
 0x129   :  { %v50_v26 = vpop.xlane.xlu1 %49 }
 0x12a   :  { %483 = vrsqrt.f32 %v53_v25  ;;  %v52_v27 = vmul.f32 0.015625, %v50_v26 }
 0x12c   :  { %v54_v28 = vadd.f32 1e-05, %v52_v27 }
 0x12e   :  { %485 = vrsqrt.f32 %v54_v28 }
 0x134   :  { %v484_v29 = vpop.eup %483 }
 0x135   :  { %v57_v30 = vmul.f32 %v484_v29, %v41_v6 }
 0x137   :  { %v65_v34 = vmul.f32 %v404_v31, %v57_v30 }
 0x138   :  { %v486_v32 = vpop.eup %485 }
 0x139   :  { %v58_v33 = vmul.f32 %v486_v32, %v42_v10  ;;  %v73_v37 = vadd.f32 %v405_v35, %v65_v34 }
 0x13b   :  { %v66_v36 = vmul.f32 %v404_v31, %v58_v33 }
 0x13d   :  { %v74_v38 = vadd.f32 %v405_v35, %v66_v36 }
 0x13f   :  { %v75_v39 = vpack.c.bf16 %v74_v38, %v73_v37 }
 0x141   :  { %414 = vmatmul.mubr.msk.bf16.vlgmr.msra.gmra.mrb[0].mxu0 %vm31_vm0, %v75_v39 }
 0x214   :  { %v173_v63 = vpop.f32.mrb[0].mxu0 }
 0x215   :  { %v174_v2 = vadd.f32 %v173_v63, %v89_v61  ;;  %v175_v3 = vpop.f32.mrb[1].mxu0 }
 0x216   :  { %v176_v4 = vadd.f32 %v175_v3, %v93_v62  ;;  %v177_v5 = vpop.f32.mrb[2].mxu0 }
 0x217   :  { %v186_v6 = vmul.f32 0.044715, %v174_v2  ;;  %v178_v7 = vadd.f32 %v177_v5, %v89_v61  ;;  %v179_v8 = vpop.f32.mrb[3].mxu0  ;;  %v182_v35 = vmul.f32 0.5, %v174_v2 }
 0x218   :  { %v187_v9 = vmul.f32 0.044715, %v176_v4  ;;  %v180_v10 = vadd.f32 %v179_v8, %v93_v62  ;;  %v183_v38 = vmul.f32 0.5, %v176_v4 }
 0x219   :  { %v190_v11 = vmul.f32 %v186_v6, %v174_v2  ;;  %v188_v12 = vmul.f32 0.044715, %v178_v7  ;;  %v184_v36 = vmul.f32 0.5, %v178_v7 }
 0x21a   :  { %v189_v13 = vmul.f32 0.044715, %v180_v10  ;;  %v191_v14 = vmul.f32 %v187_v9, %v176_v4  ;;  %v185_v39 = vmul.f32 0.5, %v180_v10 }
 0x21b   :  { %v194_v15 = vmul.f32 %v190_v11, %v174_v2  ;;  %v192_v16 = vmul.f32 %v188_v12, %v178_v7 }
 0x21c   :  { %v193_v17 = vmul.f32 %v189_v13, %v180_v10  ;;  %v195_v18 = vmul.f32 %v191_v14, %v176_v4 }
 0x21d   :  { %v196_v19 = vmul.f32 %v192_v16, %v178_v7  ;;  %v198_v20 = vadd.f32 %v194_v15, %v174_v2 }
 0x21e   :  { %v197_v21 = vmul.f32 %v193_v17, %v180_v10  ;;  %v199_v22 = vadd.f32 %v195_v18, %v176_v4 }
 0x21f   :  { %v200_v23 = vadd.f32 %v196_v19, %v178_v7  ;;  %v202_v24 = vmul.f32 0.7978846, %v198_v20 }
 0x220   :  { %v201_v25 = vadd.f32 %v197_v21, %v180_v10  ;;  %v203_v26 = vmul.f32 0.7978846, %v199_v22 }
 0x221   :  { %v204_v27 = vmul.f32 0.7978846, %v200_v23  ;;  %487 = vtanh.f32 %v202_v24 }
 0x222   :  { %v205_v28 = vmul.f32 0.7978846, %v201_v25  ;;  %489 = vtanh.f32 %v203_v26 }
 0x223   :  { %491 = vtanh.f32 %v204_v27 }
 0x224   :  { %493 = vtanh.f32 %v205_v28 }
 0x22b   :  { %v488_v29 = vpop.eup %487 }
 0x22c   :  { %v490_v30 = vpop.eup %489  ;;  %v210_v31 = vadd.f32 1.0, %v488_v29 }
 0x22d   :  { %v492_v32 = vpop.eup %491  ;;  %v211_v33 = vadd.f32 1.0, %v490_v30 }
 0x22e   :  { %v494_v34 = vpop.eup %493  ;;  %v212_v37 = vadd.f32 1.0, %v492_v32  ;;  %v214_v41 = vmul.f32 %v210_v31, %v182_v35 }
 0x22f   :  { %v213_v40 = vadd.f32 1.0, %v494_v34  ;;  %v215_v43 = vmul.f32 %v211_v33, %v183_v38 }
 0x230   :  { %v216_v42 = vmul.f32 %v212_v37, %v184_v36 }
 0x231   :  { %v217_v44 = vmul.f32 %v213_v40, %v185_v39 }
 0x232   :  { %v218_v45 = vpack.c.bf16 %v216_v42, %v214_v41 }
 0x233   :  { %v219_v46 = vpack.c.bf16 %v217_v44, %v215_v43 }
 0x235   :  { %387 = vmatprep.mubr.bf16.mxu1 %v219_v46 }
 0x236   :  { %388 = vmatmul.mubr.bf16.vlgmr.msra.gmra.mrb[0].mxu1 %v218_v45 }
 0x309   :  { %v448_v47 = vpop.f32.mrb[0].mxu1 }
 0x30a   :  { %v449_v49 = vpop.f32.mrb[1].mxu1 }
 0x30b   :  { %v450_v50 = vadd.f32 %v449_v49, %v448_v47  ;;  %v451_v51 = vpop.f32.mrb[2].mxu1 }
 0x30c   :  { %v452_v52 = vpop.f32.mrb[3].mxu1 }
 0x30d   :  { %v390_v53 = vadd.f32 %v450_v50, %v415_v48  ;;  %v453_v54 = vadd.f32 %v452_v52, %v451_v51 }
 0x30f   :  { %v396_v55 = vadd.f32 %v390_v53, %v539_v0  ;;  %v393_v56 = vadd.f32 %v453_v54, %v415_v48 }
 0x311   :  { %398 = vst.msk [vmem:[%s656_s7] sm:$0xff] %vm31_vm0, %v396_v55  ;;  %v397_v57 = vadd.f32 %v393_v56, %v544_v1 }
 0x313   :  { %399 = vst.msk [vmem:[%s656_s7 + $0x8] sm:$0xff] %vm31_vm0, %v397_v57 }

// kernel: segmenter2_forward.30
= control target key start
LH: loop header
LB: loop body
LE: loop exit
PB: predicated region body
PF: predicated region fallthrough
CT: control target
= control target key end

     0   :  { %s837_s27 = smov 0   ;;  %s914_s0 = inlined_call_operand.vmem [shape: f32[2,4,64], index: 0, kind: input, shape index: {}]   ;;  %s915_s1 = inlined_call_operand.vmem [shape: f32[2,4,64], index: 1, kind: input, shape index: {}]   ;;  %s916_s2 = inlined_call_operand.vmem [shape: f32[1,64], index: 2, kind: input, shape index: {}]   ;;  %s917_s3 = inlined_call_operand.vmem [shape: f32[1,64], index: 3, kind: input, shape index: {}]   ;;  %s918_s4 = inlined_call_operand.vmem [shape: bf16[64,64], index: 4, kind: input, shape index: {}]   ;;  %s919_s5 = inlined_call_operand.vmem [shape: bf16[64,64], index: 5, kind: input, shape index: {}]   ;;  %s920_s6 = inlined_call_operand.vmem [shape: f32[4,1], index: 6, kind: input, shape index: {}]   ;;  %s921_s7 = inlined_call_operand.vmem [shape: f32[4,1], index: 7, kind: input, shape index: {}]   ;;  %s922_s8 = inlined_call_operand.vmem [shape: f32[2,4,4], index: 8, kind: output, shape index: {}]  }
   0x1 LB: > { %s685_s28 = sadd.s32 4294967295, %s787_s27   ;;  %p689_p0 = scmp.ge.s32.totalorder %s787_s27, 1  ;;  %s787_s27 = sphi %s837_s27, %s18_s27  }
   0x2   : > { %p270_p1 = scmp.lt.s32.totalorder %s787_s27, 3 }
   0x4   : > { %p271_p2 = pnand %p689_p0, %p270_p1 }
   0x5   : > { %p306_p3 = scmp.lt.s32.totalorder (!%p271_p2), %s685_s28, 1  ;;  %vm322_vm0 = vcmask (!%p271_p2), 519168   ;;  %v763_v14 = vld [vmem:[%s918_s4] sm:$0xff] (!%p271_p2)   ;;  %v789_v15 = vmov (!%p271_p2), 0.0   ;;  %v764_v16 = vld [vmem:[%s918_s4 + $0x8] sm:$0xff] (!%p271_p2)   ;;  %vm790_vm1 = vmmov (!%p271_p2), 0  }
   0x6   : > { %274 = sbr.rel (%p271_p2) target bundleno = 980 (0x3d4), region = 52  ;;  %720 = vmatprep.subr.bf16.mxu0 (!%p271_p2), %v789_v15  ;;  %732 = vmatprep.subr.bf16.mxu1 (!%p271_p2), %v789_v15  ;;  %v765_v17 = vld [vmem:[%s919_s5] sm:$0xff] (!%p271_p2)   ;;  %v767_v18 = vld [vmem:[%s919_s5 + $0x8] sm:$0xff] (!%p271_p2)   ;;  %v766_v19 = vld [vmem:[%s918_s4 + $0x10] sm:$0xff] (!%p271_p2)   ;;  %vm400_vm2 = vcmask (!%p271_p2), 523264   ;;  %v791_v55 = vmov (!%p271_p2), 0  }
   0x7   : > { %721 = vmatpush3.bf16.msra.mxu0 (!%p271_p2), %v763_v14  ;;  %728 = vmatprep.mubr.msk.bf16.mxu0 (!%p271_p2), %vm790_vm1, %v789_v15  ;;  %v769_v20 = vld [vmem:[%s919_s5 + $0x10] sm:$0xff] (!%p271_p2)   ;;  %v768_v21 = vld [vmem:[%s918_s4 + $0x18] sm:$0xff] (!%p271_p2)   ;;  %v693_v30 = vld [vmem:[%s916_s2] ss:$0 sm:$0xff] (!%p271_p2)  ;;  %vm582_vm3 = vcmask (!%p271_p2), 27648  }
   0x8   : > { %722 = vmatprep.subr.bf16.mxu0 (!%p271_p2), %v789_v15  ;;  %733 = vmatpush3.bf16.msra.mxu1 (!%p271_p2), %v765_v17  ;;  %v770_v22 = vld [vmem:[%s919_s5 + $0x18] sm:$0xff] (!%p271_p2)   ;;  %v694_v32 = vld [vmem:[%s917_s3] ss:$0 sm:$0xff] (!%p271_p2) }
   0x9   : > { %740 = vmatprep.mubr.msk.bf16.mxu1 (!%p271_p2), %vm790_vm1, %v789_v15  ;;  %734 = vmatprep.subr.bf16.mxu1 (!%p271_p2), %v789_v15  ;;  %v605_v53 = vld [vmem:[%s920_s6] sm:$0xf] (!%p271_p2) }
   0xa   : > { %v612_v54 = vld [vmem:[%s921_s7] sm:$0xf] (!%p271_p2)  ;;  %761 = vset.pattern.permute.xlu0 (!%p271_p2), %v791_v55  ;;  %762 = vset.pattern.permute.xlu1 (!%p271_p2), %v791_v55 }
   0xb   : > { %723 = vmatpush3.bf16.msra.mxu0 (!%p271_p2), %v764_v16 }
   0xc   : > { %724 = vmatprep.subr.bf16.mxu0 (!%p271_p2), %v789_v15  ;;  %735 = vmatpush3.bf16.msra.mxu1 (!%p271_p2), %v767_v18 }
   0xd   : > { %s924_s28 = smov (!%p306_p3, %s685_s28), 1  ;;  %736 = vmatprep.subr.bf16.mxu1 %v789_v15 }
   0xe   : > { %s845_s29 = sshll.u32 %s924_s28, 2 }
   0xf   : > { %s309_s10 = scalar_lea.vmem %s914_s0, %s845_s29  ;;  %s313_s13 = scalar_lea.vmem %s915_s1, %s845_s29  ;;  %725 = vmatpush3.bf16.msra.mxu0 %v766_v19 }
  0x10   : > { %v319_v0 = vld [vmem:[%s309_s10] sm:$0xf]  ;;  %726 = vmatprep.subr.bf16.mxu0 %v789_v15  ;;  %737 = vmatpush3.bf16.msra.mxu1 %v769_v20  ;;  %s317_s20 = scalar_lea.vmem %s922_s8, %s845_s29 }
  0x11   : > { %v323_v1 = vsel %vm322_vm0, %v319_v0, 0.0  ;;  %v351_v2 = vld [vmem:[%s313_s13] sm:$0xf]  ;;  %738 = vmatprep.subr.bf16.mxu1 %v789_v15 }
  0x12   : > { %324 = vadd.xlane.f32.xlu0 %v323_v1  ;;  %v352_v3 = vsel %vm322_vm0, %v351_v2, 0.0 }
  0x13   : > { %727 = vmatpush3.bf16.msra.mxu0 %v768_v21 }
  0x14   : > { %744 = vmatprep.subr.bf16.mxu0 %v789_v15  ;;  %739 = vmatpush3.bf16.msra.mxu1 %v770_v22 }
  0x16   : > { %353 = vadd.xlane.f32.xlu0 %v352_v3 }
  0x9f   : > { %v325_v4 = vpop.xlane.xlu0 %324 }
  0xa0   : > { %v327_v5 = vmul.f32 0.015625, %v325_v4 }
  0xa2   : > { %v328_v6 = vsub.f32 %v319_v0, %v327_v5 }
  0xa3   : > { %v354_v7 = vpop.xlane.xlu0 %353 }
  0xa4   : > { %v355_v8 = vmul.f32 0.015625, %v354_v7  ;;  %v329_v9 = vmul.f32 %v328_v6, %v328_v6 }
  0xa6   : > { %v356_v10 = vsub.f32 %v351_v2, %v355_v8  ;;  %v330_v11 = vsel %vm322_vm0, %v329_v9, 0.0 }
  0xa7   : > { %331 = vadd.xlane.f32.xlu1 %v330_v11 }
  0xa8   : > { %v357_v12 = vmul.f32 %v356_v10, %v356_v10 }
  0xaa   : > { %v358_v13 = vsel %vm322_vm0, %v357_v12, 0.0 }
  0xab   : > { %359 = vadd.xlane.f32.xlu1 %v358_v13 }
 0x134   : > { %v332_v23 = vpop.xlane.xlu1 %331 }
 0x135   : > { %v333_v24 = vmul.f32 0.015625, %v332_v23 }
 0x137   : > { %v334_v25 = vadd.f32 1e-05, %v333_v24 }
 0x138   : > { %v360_v26 = vpop.xlane.xlu1 %359 }
 0x139   : > { %771 = vrsqrt.f32 %v334_v25  ;;  %v361_v27 = vmul.f32 0.015625, %v360_v26 }
 0x13b   : > { %v362_v28 = vadd.f32 1e-05, %v361_v27 }
 0x13d   : > { %773 = vrsqrt.f32 %v362_v28 }
 0x143   : > { %v772_v29 = vpop.eup %771 }
 0x144   : > { %v336_v31 = vmul.f32 %v772_v29, %v328_v6 }
 0x146   : > { %v343_v33 = vmul.f32 %v693_v30, %v336_v31 }
 0x147   : > { %v774_v34 = vpop.eup %773 }
 0x148   : > { %v350_v35 = vadd.f32 %v694_v32, %v343_v33  ;;  %v364_v36 = vmul.f32 %v774_v34, %v356_v10 }
 0x14a   : > { %v367_v37 = vpack.c.bf16 %v350_v35, %v350_v35  ;;  %v365_v38 = vmul.f32 %v693_v30, %v364_v36 }
 0x14c   : > { %729 = vmatmul.mubr.msk.bf16.vlgmr.msra.gmra.mrb[0].mxu0 %vm400_vm2, %v367_v37  ;;  %v366_v39 = vadd.f32 %v694_v32, %v365_v38 }
 0x14d   : > { %746 = vmatprep.mubr.msk.bf16.mxu0 %vm790_vm1, %v789_v15 }
 0x14e   : > { %v444_v40 = vpack.c.bf16 %v366_v39, %v366_v39 }
 0x150   : > { %741 = vmatmul.mubr.msk.bf16.vlgmr.msra.gmra.mrb[0].mxu1 %vm400_vm2, %v444_v40 }
 0x21f   : > { %v438_v41 = vpop.f32.mrb[0].mxu0 }
 0x220   : > { %v520_v42 = vmul.f32 %v438_v41, %v438_v41  ;;  %v730_v43 = vpop.f32.mrb[1].mxu0 }
 0x221   : > { %v441_v44 = vpop.f32.mrb[2].mxu0 }
 0x222   : > { %v731_v45 = vpop.f32.mrb[3].mxu0  ;;  %v521_v46 = vsel %vm322_vm0, %v520_v42, 0.0 }
 0x223   : > { %522 = vadd.xlane.f32.xlu0 %v521_v46  ;;  %v514_v47 = vpop.f32.mrb[0].mxu1 }
 0x224   : > { %v527_v48 = vmul.f32 %v514_v47, %v514_v47  ;;  %v742_v49 = vpop.f32.mrb[1].mxu1 }
 0x225   : > { %v517_v50 = vpop.f32.mrb[2].mxu1 }
 0x226   : > { %v743_v51 = vpop.f32.mrb[3].mxu1  ;;  %v528_v52 = vsel %vm322_vm0, %v527_v48, 0.0 }
 0x227   : > { %529 = vadd.xlane.f32.xlu1 %v528_v52 }
 0x238   : > { %615 = vperm.xlu1 %762, %v612_v54  }
 0x239   : > { %608 = vperm.xlu0 %761, %v605_v53  }
 0x2b0   : > { %v523_v56 = vpop.xlane.xlu0 %522 }
 0x2b1   : > { %v524_v57 = vadd.f32 1e-12, %v523_v56 }
 0x2b3   : > { %775 = vrsqrt.f32 %v524_v57 }
 0x2b4   : > { %v530_v58 = vpop.xlane.xlu1 %529 }
 0x2b5   : > { %v531_v59 = vadd.f32 1e-12, %v530_v58 }
 0x2b7   : > { %777 = vrsqrt.f32 %v531_v59 }
 0x2b8   : > { %v609_v27 = vpop.permute.xlu0 %608  ;;  %v616_v29 = vpop.permute.xlu1 %615 }
 0x2bd   : > { %v776_v60 = vpop.eup %775 }
 0x2be   : > { %v526_v61 = vmul.f32 %v776_v60, %v438_v41 }
 0x2c0   : > { %v535_v62 = vpack.c.bf16 %v526_v61, %v526_v61 }
 0x2c1   : > { %v778_v63 = vpop.eup %777 }
 0x2c2   : > { %v540_v0 = vsel %vm400_vm2, %v535_v62, 0  ;;  %v533_v1 = vmul.f32 %v778_v63, %v514_v47 }
 0x2c3   : > { %745 = vmatpush3.bf16.xpose.msra.mxu0 %v540_v0 }
 0x2c4   : > { %v534_v2 = vpack.c.bf16 %v533_v1, %v533_v1 }
 0x2ca   : > { %747 = vmatmul.mubr.msk.bf16.vlgmr.msra.gmra.mrb[4].mxu0 %vm400_vm2, %v534_v2 }
 0x39d   : > { %v576_v3 = vpop.f32.mrb[4].mxu0 }
 0x39e   : > { %v583_v4 = vsel %vm582_vm3, %v576_v3, 0.0  ;;  %v748_v5 = vpop.f32.mrb[5].mxu0 }
 0x39f   : > { %v584_v6 = vrot.slane %v583_v4, 4  ;;  %v579_v7 = vpop.f32.mrb[6].mxu0 }
 0x3a0   : > { %v749_v8 = vpop.f32.mrb[7].mxu0 }
 0x3a1   : > { %v585_v9 = vadd.f32 %v584_v6, %v583_v4 }
 0x3a3   : > { %v586_v10 = vrot.slane %v585_v9, 2 }
 0x3a5   : > { %v587_v11 = vadd.f32 %v586_v10, %v585_v9 }
 0x3a7   : > { %v588_v12 = vrot.slane %v587_v11, 1 }
 0x3a9   : > { %v589_v13 = vadd.f32 %v588_v12, %v587_v11 }
 0x3ab   : > { %v591_v14 = vmul.f32 0.25, %v589_v13 }
 0x3ad   : > { %v592_v15 = vsub.f32 %v576_v3, %v591_v14 }
 0x3af   : > { %v593_v16 = vmul.f32 %v592_v15, %v592_v15 }
 0x3b1   : > { %v594_v17 = vsel %vm582_vm3, %v593_v16, 0.0 }
 0x3b2   : > { %v595_v18 = vrot.slane %v594_v17, 4 }
 0x3b4   : > { %v596_v19 = vadd.f32 %v595_v18, %v594_v17 }
 0x3b6   : > { %v597_v20 = vrot.slane %v596_v19, 2 }
 0x3b8   : > { %v598_v21 = vadd.f32 %v597_v20, %v596_v19 }
 0x3ba   : > { %v599_v22 = vrot.slane %v598_v21, 1 }
 0x3bc   : > { %v600_v23 = vadd.f32 %v599_v22, %v598_v21 }
 0x3be   : > { %v601_v24 = vmul.f32 0.25, %v600_v23 }
 0x3c0   : > { %v602_v25 = vadd.f32 1e-05, %v601_v24 }
 0x3c2   : > { %779 = vrsqrt.f32 %v602_v25 }
 0x3cc   : > { %v780_v26 = vpop.eup %779 }
 0x3cd   : > { %v604_v28 = vmul.f32 %v780_v26, %v592_v15 }
 0x3cf   : > { %v611_v30 = vmul.f32 %v609_v27, %v604_v28 }
 0x3d1   : > { %v618_v31 = vadd.f32 %v616_v29, %v611_v30 }
 0x3d3   : > { %619 = vst.msk [vmem:[%s317_s20] sm:$0xf] %vm582_vm3, %v618_v31 }
 0x3d4 PF: > { %s18_s27 = sadd.s32 1, %s787_s27  }
 0x3d5   : > { %p15_p4 = scmp.ge.s32.totalorder %s18_s27, 4  }
 0x3d7   :  { %17 = sbr.rel (!%p15_p4) target bundleno = 1 (0x1), region = 85 }

// kernel: segmenter2_forward.31
= control target key start
LH: loop header
LB: loop body
LE: loop exit
PB: predicated region body
PF: predicated region fallthrough
CT: control target
= control target key end

     0   :  { %8 = vsyncpa [#allocation3], 0  ;;  %s806_s0 = inlined_call_operand.vmem [shape: f32[8,2,2], index: 0, kind: input, shape index: {}]   ;;  %s807_s1 = inlined_call_operand.vmem [shape: f32[32,2], index: 1, kind: input, shape index: {}, may-alias: {1,2}]   ;;  %s808_s2 = inlined_call_operand.vmem [shape: f32[32,2], index: 2, kind: input, shape index: {}, may-alias: {1,2}]   ;;  %s809_s3 = inlined_call_operand.hbm [shape: f32[8,32,32], index: 3, kind: output, shape index: {}]  }
   0x1   :  { %10 = vsyncpa [#allocation3 + $0x1], 0  ;;  %s672_s12 = smov 0   ;;  %s674_s13 = smov 0  }
   0x2   :  { %s676_s14 = smov 0   ;;  %s678_s15 = smov 0  }
   0x3 LB: > { %s693_s16 = sadd.s32 4294967295, %s644_s15   ;;  %s463_s17 = sadd.s32 4294967294, %s644_s15   ;;  %s644_s15 = sphi %s678_s15, %s815_s15   ;;  %s640_s14 = sphi %s676_s14, %s814_s14   ;;  %s636_s13 = sphi %s674_s13, %s813_s13   ;;  %s632_s12 = sphi %s672_s12, %s812_s12  }
   0x4   : > { %s697_s18 = sadd.s32 1, %s644_s15   ;;  %s91_s19 = sadd.s32 1, %s640_s14 }
   0x5   : > { %s88_s20 = ssub.s32 %s644_s15, %s697_s18  ;;  %p101_p0 = scmp.ne.s32.totalorder %s640_s14, %s636_s13 }
   0x6   : > { %p89_p1 = scmp.eq.s32.totalorder %s88_s20, 0  ;;  %p102_p2 = scmp.eq.s32.totalorder %s693_s16, 7 }
   0x7   : > { %p107_p3 = scmp.ne.s32.totalorder %s636_s13, %s632_s12  ;;  %p108_p4 = scmp.eq.s32.totalorder %s463_s17, 7 }
   0x8   : > { %s708_s21 = scalar_select %p89_p1, %s640_s14, %s91_s19  }
   0x9   : > { %p710_p5 = por %p102_p2, %p101_p0  ;;  %p714_p6 = por %p108_p4, %p107_p3 }
   0xa   : > { %p466_p7 = scmp.ge.s32.totalorder %s644_s15, 1  ;;  %p139_p8 = scmp.lt.s32.totalorder %s644_s15, 9 }
   0xc   : > { %p140_p9 = pnand %p466_p7, %p139_p8 }
   0xd   : > { %v171_v0 = vld [vmem:[%s808_s2] sm:$0xff] (!%p140_p9)  ;;  %v172_v1 = vld [vmem:[%s808_s2 + $0x8] sm:$0xff] (!%p140_p9)  ;;  %vm175_vm0 = vcmask (!%p140_p9), 15360   ;;  %v646_v2 = vmov (!%p140_p9), 0.0|0.0   ;;  %p162_p10 = scmp.lt.s32.totalorder (!%p140_p9), %s693_s16, 7  ;;  %vm647_vm2 = vmmov (!%p140_p9), 0  }
   0xe   : > { %143 = sbr.rel (%p140_p9) target bundleno = 505 (0x1f9), region = 32  ;;  %514 = vmatprep.subr.bf16.mxu0 (!%p140_p9), %v646_v2  ;;  %v515_v3 = vpack.c.bf16 (!%p140_p9), %v172_v1, %v171_v0  ;;  %vm516_vm1 = vmpackc.low (!%p140_p9), %vm175_vm0, %vm175_vm0  ;;  %v648_v4 = vmov (!%p140_p9), 0.0   ;;  %v173_v5 = vld [vmem:[%s808_s2 + $0x10] sm:$0xff] (!%p140_p9)  ;;  %v174_v6 = vld [vmem:[%s808_s2 + $0x18] sm:$0xff] (!%p140_p9)  ;;  %vm273_vm3 = vcmask (!%p140_p9), 1041408   ;;  %s159_s27 = sand.u32 (!%p140_p9), 1, %s636_s13  }
   0xf   : > { %503 = vmatprep.mubr.msk.f32.mxu0 (!%p140_p9), %vm647_vm2, %v648_v4  ;;  %v519_v7 = vpack.c.bf16 (!%p140_p9), %v174_v6, %v173_v5  ;;  %v167_v9 = vld [vmem:[%s807_s1] sm:$0xff] (!%p140_p9)  ;;  %v168_v11 = vld [vmem:[%s807_s1 + $0x8] sm:$0xff] (!%p140_p9)  ;;  %v169_v13 = vld [vmem:[%s807_s1 + $0x10] sm:$0xff] (!%p140_p9)  ;;  %s467_s28 = sshll.u32 (!%p140_p9), %s159_s27, 5  ;;  %vm382_vm4 = vcmask (!%p140_p9), 261120   ;;  %s484_s29 = sshll.u32 (!%p140_p9), %s693_s16, 9 }
  0x10   : > { %517 = vmatpush3.bf16.xpose.msk.msra.mxu0 (!%p140_p9), %vm516_vm1, %v515_v3  ;;  %508 = vmatprep.mubr.msk.f32.mxu1 (!%p140_p9), %vm175_vm0, %v167_v9  ;;  %v170_v14 = vld [vmem:[%s807_s1 + $0x18] sm:$0xff] (!%p140_p9)  ;;  %s161_s30 = scalar_lea.vmem (!%p140_p9), [#allocation2], %s467_s28  ;;  %s761_s7 = scalar_lea.hbm (!%p140_p9), %s809_s3, %s484_s29 }
  0x11   : > { %518 = vmatprep.subr.bf16.mxu0 (!%p140_p9), %v646_v2  ;;  %s401_s4 = sshll.u32 (!%p140_p9), %s161_s30, 4  ;;  %s763_s4 = int_to_ptr.vmem [resolvable:$true] %s401_s4 }
  0x12   : > { %s582_s8 = scalar_lea.vmem (!%p140_p9), %s763_s4, 512 }
  0x13   : > { %p583_p11 = scmp.ne.s32.totalorder (!%p140_p9), %s763_s4, %s582_s8 }
  0x15   : > { %s163_s5 = scalar_select %p162_p10, %s693_s16, 7 }
  0x16   : > { %s765_s16 = scalar_lea.sflag [#allocation3], %s159_s27  ;;  %p584_p12 = pnand %p583_p11, %p710_p5 }
  0x17   : > { %s468_s6 = sshll.u32 %s163_s5, 1 }
  0x18   : > { %521 = vmatpush3.bf16.xpose.msk.msra.mxu0 %vm516_vm1, %v519_v7  ;;  %s165_s9 = scalar_lea.vmem %s806_s0, %s468_s6  ;;  %p585_p13 = pneg %p584_p12 }
  0x19   : > { %v166_v8 = vld [vmem:[%s165_s9] sm:$0x3]  ;;  %s649_s9 = smov [#allocation2]  }
  0x1a   : > { %s586_s10 = sshll.u32 %s649_s9, 4  ;;  %s587_s10 = int_to_ptr.vmem [resolvable:$false] %s586_s10 }
  0x1b   : > { %s588_s11 = scalar_lea.vmem %s587_s10, 1024  ;;  %p589_p0 = scmp.lt.s32.totalorder %s763_s4, %s587_s10 }
  0x1c   : > { %p590_p1 = scmp.lt.s32.totalorder %s588_s11, %s582_s8 }
  0x1e   : > { %p591_p2 = por %p590_p1, %p589_p0 }
  0x1f   : > { %504 = vmatmul.mubr.msk.f32.vlgmr.msra.gmra.mrb[0].mxu0 %vm175_vm0, %v166_v8 }
  0x20   : > { %p592_p3 = pnand %p591_p2, %p585_p13 }
  0xf2   : > { %v257_v10 = vpop.f32.mrb[0].mxu0 }
  0xf3   : > { %v505_v12 = vpop.f32.mrb[1].mxu0  ;;  %506 = vmatprep.subr.msk.mxu1 %vm273_vm3, %v257_v10 }
  0xf4   : > { %507 = vmatpush3.msk.msra.mxu1 %vm273_vm3, %v257_v10 }
  0xf5   : > { %509 = vmatmul.mubr.msk.f32.vlgmr.msra.gmra.mrb[0].mxu1 %vm175_vm0, %v168_v11 }
  0xf6   : > { %511 = vmatprep.mubr.msk.f32.mxu1 %vm175_vm0, %v169_v13 }
  0xf9   : > { %512 = vmatmul.mubr.msk.f32.gmra.mrb[2].mxu1 %vm175_vm0, %v170_v14 }
 0x1c8   : > { %v510_v15 = vpop.f32.mrb[0].mxu1 }
 0x1c9   : > { %v363_v16 = vsub.f32 0.0, %v510_v15  ;;  %v343_v17 = vpop.f32.mrb[1].mxu1 }
 0x1ca   : > { %v362_v18 = vsub.f32 0.0, %v343_v17 }
 0x1cb   : > { %v368_v19 = vmul.f32 1.442695, %v363_v16 }
 0x1cc   : > { %v366_v20 = vmul.f32 1.442695, %v362_v18  ;;  %v513_v21 = vpop.f32.mrb[2].mxu1 }
 0x1cd   : > { %566 = vpow2.f32 %v368_v19  ;;  %v365_v22 = vsub.f32 0.0, %v513_v21  ;;  %v353_v23 = vpop.f32.mrb[3].mxu1 }
 0x1ce   : > { %568 = vpow2.f32 %v366_v20  ;;  %v364_v24 = vsub.f32 0.0, %v353_v23 }
 0x1cf   : > { %v372_v25 = vmul.f32 1.442695, %v365_v22 }
 0x1d0   : > { %v370_v26 = vmul.f32 1.442695, %v364_v24 }
 0x1d1   : > { %570 = vpow2.f32 %v372_v25 }
 0x1d2   : > { %572 = vpow2.f32 %v370_v26 }
 0x1d7   : > { %v567_v27 = vpop.eup %566 }
 0x1d8   : > { %v569_v28 = vpop.eup %568  ;;  %v375_v29 = vadd.f32 1.0, %v567_v27 }
 0x1d9   : > { %v374_v30 = vadd.f32 1.0, %v569_v28 }
 0x1da   : > { %574 = vrcp.f32 %v375_v29 }
 0x1db   : > { %v571_v31 = vpop.eup %570  ;;  %576 = vrcp.f32 %v374_v30 }
 0x1dc   : > { %v573_v32 = vpop.eup %572  ;;  %v377_v33 = vadd.f32 1.0, %v571_v31 }
 0x1dd   : > { %v376_v34 = vadd.f32 1.0, %v573_v32 }
 0x1de   : > { %578 = vrcp.f32 %v377_v33 }
 0x1df   : > { %580 = vrcp.f32 %v376_v34 }
 0x1e4   : > { %v575_v35 = vpop.eup %574 }
 0x1e5   : > { %v577_v36 = vpop.eup %576  ;;  %384 = vst.msk [vmem:[%s161_s30 + $0x8] sm:$0xff] %vm382_vm4, %v575_v35 }
 0x1e6   : > { %383 = vst.msk [vmem:[%s161_s30] sm:$0xff] %vm382_vm4, %v577_v36 }
 0x1e8   : > { %v579_v37 = vpop.eup %578 }
 0x1e9   : > { %v581_v38 = vpop.eup %580  ;;  %386 = vst.msk [vmem:[%s161_s30 + $0x18] sm:$0xff] %vm382_vm4, %v579_v37 }
 0x1ea   : > { %385 = vst.msk [vmem:[%s161_s30 + $0x10] sm:$0xff] %vm382_vm4, %v581_v38 }
 0x1eb   : > { %595 = shalt.err (!%p592_p3)
}
 0x1ec   : > { %s596_s17 = scalar_lea.hbm %s761_s7, 512  ;;  %s600_s24 = scalar_lea.hbm %s809_s3, 4096 }
 0x1ed   : > { %p597_p4 = scmp.ne.s32.totalorder %s761_s7, %s596_s17  ;;  %p601_p9 = scmp.lt.u32.totalorder %s761_s7, %s809_s3 }
 0x1ee   : > { %p602_p10 = scmp.lt.u32.totalorder %s600_s24, %s596_s17  ;;  %p604_p12 = scmp.lt.u32.totalorder %s596_s17, %s761_s7 }
 0x1ef   : > { %p598_p7 = pnand %p597_p4, %p710_p5 }
 0x1f0   : > { %p603_p11 = por %p602_p10, %p601_p9 }
 0x1f1   : > { %p599_p8 = pneg %p598_p7 }
 0x1f2   : > { %p605_p13 = por %p604_p12, %p603_p11 }
 0x1f4   : > { %p606_p0 = pnand %p605_p13, %p599_p8 }
 0x1f6   : > { %609 = shalt.err (!%p606_p0)
}
 0x1f7   : > { %s650_s27 = smov 128   ;;  %s651_s28 = smov 8  }
 0x1f8   : > { %522 = dma.vmem_to_hbm [thread:$0]  (%p710_p5), %s763_s4, 512, %s761_s7, %s765_s16, %s650_s27, %s650_s27, %s651_s28  }
 0x1f9 PF: > { %p528_p1 = scmp.ge.s32.totalorder %s644_s15, 2  ;;  %s416_s29 = sand.u32 1, %s632_s12  }
 0x1fa   : > { %s417_s30 = scalar_lea.sflag [#allocation3], %s416_s29 }
 0x1fb   : > { %p525_p2 = pnand %p528_p1, %p714_p6 }
 0x1fd   : > { %627 = dma.done.wait (!%p525_p2), %s417_s30, 512  }
 0x1fe   : > { %629 = vsyncadd (!%p525_p2), %s417_s30, 4294966784  ;;  %p13_p3 = scmp.ge.s32.totalorder %s697_s18, 10   ;;  %s812_s12 = smov %s636_s13 }
 0x1ff   : > { %s813_s13 = smov %s640_s14  ;;  %s814_s14 = smov %s708_s21 }
 0x200   : > { %s815_s15 = smov %s697_s18  ;;  %15 = sbr.rel (!%p13_p3) target bundleno = 3 (0x3), region = 67 }
 0x207   :  { %422 = vsyncpa [#allocation3], 1 }
 0x208   :  { %424 = vsyncpa [#allocation3 + $0x1], 1 }

</bundles_post_ra>
